<compile_context>
chip_gen: v7x
topology: tpu7x:2x2x1
jax: 0.10.0
libtpu: 0.0.40
codegen_flags: <defaults>
</compile_context>

<pallas_src>
import functools

import jax
import jax.numpy as jnp
from jax.experimental import pallas as pl
from jax.experimental.pallas import tpu as pltpu

IN_DIM = 5      # logical input features
HID = 400       # logical hidden width
OUT_DIM = 1     # logical output width

IN_PAD = 8      # padded feature dim (zeros in cols 5..7)
HID_PAD = 512   # padded hidden width -> 4 x 128 lanes, dense MXU passes
OUT_PAD = 128   # padded output width -> lane-dense (unmasked) output stores


def putnet_kernel(x_ref, w1_ref, b1_ref, w2_ref, b2_ref,
                  w3_ref, b3_ref, w4_ref, b4_ref, o_ref, *, relu_bf16):
    def act(h32):
        # ReLU(cast(x)) == cast(ReLU(x)) (cast is monotone & sign-preserving).
        # bf16 ReLU halves VPU/vreg traffic on v6e/v7x; keep fp32 on v5e.
        if relu_bf16:
            return jnp.maximum(h32.astype(jnp.bfloat16), 0)
        return jnp.maximum(h32, 0.0).astype(jnp.bfloat16)

    # bf16 operands on the MXU, fp32 accumulation; bias adds in fp32 on the VPU.
    x = x_ref[...]                                                   # (tb, 8) bf16
    h = act(jnp.dot(x, w1_ref[...], preferred_element_type=jnp.float32)
            + b1_ref[...])
    h = act(jnp.dot(h, w2_ref[...], preferred_element_type=jnp.float32)
            + b2_ref[...])
    h = act(jnp.dot(h, w3_ref[...], preferred_element_type=jnp.float32)
            + b3_ref[...])
    y = jnp.dot(h, w4_ref[...], preferred_element_type=jnp.float32) + b4_ref[...]
    # bf16 lane-dense store: halves HBM writeback of the padded (tb, 128) tile.
    o_ref[...] = y.astype(jnp.bfloat16)                              # (tb, 128) bf16


def pack_params(params):
    """Zero-pad logical params to MXU-friendly shapes and cast weights to bf16."""
    w1, b1, w2, b2, w3, b3, w4, b4 = params

    def pad2(a, rows, cols):
        return jnp.pad(a, ((0, rows - a.shape[0]), (0, cols - a.shape[1])))

    w1p = pad2(w1, IN_PAD, HID_PAD).astype(jnp.bfloat16)
    w2p = pad2(w2, HID_PAD, HID_PAD).astype(jnp.bfloat16)
    w3p = pad2(w3, HID_PAD, HID_PAD).astype(jnp.bfloat16)
    w4p = pad2(w4, HID_PAD, OUT_PAD).astype(jnp.bfloat16)
    b1p = pad2(b1, 1, HID_PAD).astype(jnp.float32)
    b2p = pad2(b2, 1, HID_PAD).astype(jnp.float32)
    b3p = pad2(b3, 1, HID_PAD).astype(jnp.float32)
    b4p = pad2(b4, 1, OUT_PAD).astype(jnp.float32)
    return (w1p, b1p, w2p, b2p, w3p, b3p, w4p, b4p)


def _has_bf16_vpu():
    """True on chips with a bf16 VPU path (v6e / v7x); False on v5e and earlier."""
    try:
        kind = jax.devices()[0].device_kind.lower()
    except Exception:
        return False
    return not any(tag in kind for tag in ("v2", "v3", "v4", "v5"))


def _pick_tile_b(batch):
    """Largest tile that still leaves a grid of >= 2 (keeps both v7x TCs busy
    via dimension_semantics=('parallel',)); big tiles amortize the ~0.35 us
    per-grid-step overhead."""
    for tb in (1024, 512, 256):
        if batch >= 2 * tb:
            return tb
    return 256


def putnet_forward(x, params, *, tile_b=None):
    B = x.shape[0]
    if tile_b is None:
        tile_b = _pick_tile_b(B)
    assert tile_b % 128 == 0, "tile_b must be a multiple of 128"
    n_tiles = pl.cdiv(B, tile_b)
    B_pad = n_tiles * tile_b

    # Pad batch (rows) and features (cols) with zeros; cast to bf16 once here.
    # jnp.pad (vs zeros + scatter-set) avoids an extra HBM copy of the input.
    xp = jnp.pad(x.astype(jnp.bfloat16),
                 ((0, B_pad - B), (0, IN_PAD - IN_DIM)))

    packed = pack_params(params)
    relu_bf16 = _has_bf16_vpu()

    # Weights/biases: constant block index -> fetched once, resident in VMEM.
    def w_spec(shape):
        return pl.BlockSpec(shape, lambda i: (0, 0))

    out = pl.pallas_call(
        functools.partial(putnet_kernel, relu_bf16=relu_bf16),
        out_shape=jax.ShapeDtypeStruct((B_pad, OUT_PAD), jnp.bfloat16),
        grid_spec=pltpu.PrefetchScalarGridSpec(
            num_scalar_prefetch=0,
            grid=(n_tiles,),
            in_specs=[
                pl.BlockSpec((tile_b, IN_PAD), lambda i: (i, 0)),       # x tile
                w_spec((IN_PAD, HID_PAD)),  w_spec((1, HID_PAD)),       # l1
                w_spec((HID_PAD, HID_PAD)), w_spec((1, HID_PAD)),       # l2
                w_spec((HID_PAD, HID_PAD)), w_spec((1, HID_PAD)),       # l3
                w_spec((HID_PAD, OUT_PAD)), w_spec((1, OUT_PAD)),       # out
            ],
            out_specs=pl.BlockSpec((tile_b, OUT_PAD), lambda i: (i, 0)),
        ),
        compiler_params=pltpu.CompilerParams(
            dimension_semantics=("parallel",),
            # Explicit limit: gives headroom over v5e's 16 MiB scoped default
            # when tile_b is large; still well under v7x's 64 MiB physical VMEM.
            vmem_limit_bytes=32 * 1024 * 1024,
        ),
    )(xp, *packed)

    # Slice away batch padding and padded output columns; upcast to fp32 (B, 1).
    return out[:B, :OUT_DIM].astype(jnp.float32)


def init_params(key):
    """Deterministic init mimicking PyTorch nn.Linear default U[-1/sqrt(fan_in), +...]."""
    def linear(key, fan_in, fan_out):
        kw, kb = jax.random.split(key)
        bound = 1.0 / jnp.sqrt(float(fan_in))
        # stored as (in, out) so the kernel computes x @ W  (== x @ W_pt.T)
        w = jax.random.uniform(kw, (fan_in, fan_out), jnp.float32, -bound, bound)
        b = jax.random.uniform(kb, (1, fan_out), jnp.float32, -bound, bound)
        return w, b

    k1, k2, k3, k4 = jax.random.split(key, 4)
    w1, b1 = linear(k1, IN_DIM, HID)
    w2, b2 = linear(k2, HID, HID)
    w3, b3 = linear(k3, HID, HID)
    w4, b4 = linear(k4, HID, OUT_DIM)
    return (w1, b1, w2, b2, w3, b3, w4, b4)


def putnet_ref(x, params):
    """JAX reference mirroring the kernel's numerics (bf16 dot inputs, fp32 accum)."""
    w1, b1, w2, b2, w3, b3, w4, b4 = params

    def lin(h, w, b):
        return jnp.dot(h.astype(jnp.bfloat16), w.astype(jnp.bfloat16),
                       preferred_element_type=jnp.float32) + b

    h = jax.nn.relu(lin(x, w1, b1))
    h = jax.nn.relu(lin(h, w2, b2))
    h = jax.nn.relu(lin(h, w3, b3))
    return lin(h, w4, b4)


if __name__ == "__main__":
    key = jax.random.PRNGKey(0)
    kp, kx = jax.random.split(key)
    params = init_params(kp)

    B = 300  # non-multiple of the tile on purpose; auto tile_b=256 -> grid of 2
    x = jax.random.normal(kx, (B, IN_DIM), jnp.float32)

    out = putnet_forward(x, params)
    out = jax.block_until_ready(out)

    ref = putnet_ref(x, params)
    assert out.shape == (B, OUT_DIM)
    # tolerance covers bf16 matmul inputs and the bf16 output store
    assert jnp.allclose(out, ref, atol=1e-2, rtol=1e-2), "mismatch vs JAX reference"
    print("KERNEL_OK")
</pallas_src>

<mosaic_0001>
module attributes {stable_mosaic.version = 11 : i64} {
  func.func @putnet_kernel(%arg0: i32, %arg1: memref<256x8xbf16, #tpu.memory_space<vmem>>, %arg2: memref<8x512xbf16, #tpu.memory_space<vmem>>, %arg3: memref<1x512xf32, #tpu.memory_space<vmem>>, %arg4: memref<512x512xbf16, #tpu.memory_space<vmem>>, %arg5: memref<1x512xf32, #tpu.memory_space<vmem>>, %arg6: memref<512x512xbf16, #tpu.memory_space<vmem>>, %arg7: memref<1x512xf32, #tpu.memory_space<vmem>>, %arg8: memref<512x128xbf16, #tpu.memory_space<vmem>>, %arg9: memref<1x128xf32, #tpu.memory_space<vmem>>, %arg10: memref<256x128xbf16, #tpu.memory_space<vmem>>) attributes {dimension_semantics = [#tpu.dimension_semantics<parallel>], iteration_bounds = array<i64: 2>, scalar_prefetch = 0 : i64, scratch_operands = 0 : i64, tpu.core_type = #tpu.core_type<tc>, window_params = [{transform_indices = @transform_0, window_bounds = array<i64: 256, 8>}, {pipeline_mode = #tpu.pipeline_mode<synchronous>, transform_indices = @transform_1, window_bounds = array<i64: 8, 512>}, {pipeline_mode = #tpu.pipeline_mode<synchronous>, transform_indices = @transform_2, window_bounds = array<i64: 1, 512>}, {pipeline_mode = #tpu.pipeline_mode<synchronous>, transform_indices = @transform_3, window_bounds = array<i64: 512, 512>}, {pipeline_mode = #tpu.pipeline_mode<synchronous>, transform_indices = @transform_4, window_bounds = array<i64: 1, 512>}, {pipeline_mode = #tpu.pipeline_mode<synchronous>, transform_indices = @transform_5, window_bounds = array<i64: 512, 512>}, {pipeline_mode = #tpu.pipeline_mode<synchronous>, transform_indices = @transform_6, window_bounds = array<i64: 1, 512>}, {pipeline_mode = #tpu.pipeline_mode<synchronous>, transform_indices = @transform_7, window_bounds = array<i64: 512, 128>}, {pipeline_mode = #tpu.pipeline_mode<synchronous>, transform_indices = @transform_8, window_bounds = array<i64: 1, 128>}, {transform_indices = @transform_9, window_bounds = array<i64: 256, 128>}]} {
    %c0 = arith.constant 0 : index
    %c0_0 = arith.constant 0 : index
    %0 = vector.load %arg1[%c0, %c0_0] : memref<256x8xbf16, #tpu.memory_space<vmem>>, vector<256x8xbf16>
    %c0_1 = arith.constant 0 : index
    %c0_2 = arith.constant 0 : index
    %1 = vector.load %arg2[%c0_1, %c0_2] : memref<8x512xbf16, #tpu.memory_space<vmem>>, vector<8x512xbf16>
    %cst = arith.constant dense<0.000000e+00> : vector<256x512xf32>
    %2 = tpu.matmul %0, %1, %cst {dimension_numbers = #tpu.dot_dimension_numbers<[1], [0], [0], [1], [0, 0, 1, 1], [], []>} : vector<256x8xbf16>, vector<8x512xbf16>, vector<256x512xf32> -> vector<256x512xf32>
    %c0_3 = arith.constant 0 : index
    %c0_4 = arith.constant 0 : index
    %3 = vector.load %arg3[%c0_3, %c0_4] : memref<1x512xf32, #tpu.memory_space<vmem>>, vector<1x512xf32>
    %4 = vector.broadcast %3 : vector<1x512xf32> to vector<256x512xf32>
    %5 = arith.addf %2, %4 : vector<256x512xf32>
    %6 = arith.truncf %5 : vector<256x512xf32> to vector<256x512xbf16>
    %cst_5 = arith.constant 0.000000e+00 : bf16
    %7 = vector.broadcast %cst_5 : bf16 to vector<256x512xbf16>
    %8 = arith.maximumf %6, %7 : vector<256x512xbf16>
    %c0_6 = arith.constant 0 : index
    %c0_7 = arith.constant 0 : index
    %9 = vector.load %arg4[%c0_6, %c0_7] : memref<512x512xbf16, #tpu.memory_space<vmem>>, vector<512x512xbf16>
    %cst_8 = arith.constant dense<0.000000e+00> : vector<256x512xf32>
    %10 = tpu.matmul %8, %9, %cst_8 {dimension_numbers = #tpu.dot_dimension_numbers<[1], [0], [0], [1], [0, 0, 1, 1], [], []>} : vector<256x512xbf16>, vector<512x512xbf16>, vector<256x512xf32> -> vector<256x512xf32>
    %c0_9 = arith.constant 0 : index
    %c0_10 = arith.constant 0 : index
    %11 = vector.load %arg5[%c0_9, %c0_10] : memref<1x512xf32, #tpu.memory_space<vmem>>, vector<1x512xf32>
    %12 = vector.broadcast %11 : vector<1x512xf32> to vector<256x512xf32>
    %13 = arith.addf %10, %12 : vector<256x512xf32>
    %14 = arith.truncf %13 : vector<256x512xf32> to vector<256x512xbf16>
    %cst_11 = arith.constant 0.000000e+00 : bf16
    %15 = vector.broadcast %cst_11 : bf16 to vector<256x512xbf16>
    %16 = arith.maximumf %14, %15 : vector<256x512xbf16>
    %c0_12 = arith.constant 0 : index
    %c0_13 = arith.constant 0 : index
    %17 = vector.load %arg6[%c0_12, %c0_13] : memref<512x512xbf16, #tpu.memory_space<vmem>>, vector<512x512xbf16>
    %cst_14 = arith.constant dense<0.000000e+00> : vector<256x512xf32>
    %18 = tpu.matmul %16, %17, %cst_14 {dimension_numbers = #tpu.dot_dimension_numbers<[1], [0], [0], [1], [0, 0, 1, 1], [], []>} : vector<256x512xbf16>, vector<512x512xbf16>, vector<256x512xf32> -> vector<256x512xf32>
    %c0_15 = arith.constant 0 : index
    %c0_16 = arith.constant 0 : index
    %19 = vector.load %arg7[%c0_15, %c0_16] : memref<1x512xf32, #tpu.memory_space<vmem>>, vector<1x512xf32>
    %20 = vector.broadcast %19 : vector<1x512xf32> to vector<256x512xf32>
    %21 = arith.addf %18, %20 : vector<256x512xf32>
    %22 = arith.truncf %21 : vector<256x512xf32> to vector<256x512xbf16>
    %cst_17 = arith.constant 0.000000e+00 : bf16
    %23 = vector.broadcast %cst_17 : bf16 to vector<256x512xbf16>
    %24 = arith.maximumf %22, %23 : vector<256x512xbf16>
    %c0_18 = arith.constant 0 : index
    %c0_19 = arith.constant 0 : index
    %25 = vector.load %arg8[%c0_18, %c0_19] : memref<512x128xbf16, #tpu.memory_space<vmem>>, vector<512x128xbf16>
    %cst_20 = arith.constant dense<0.000000e+00> : vector<256x128xf32>
    %26 = tpu.matmul %24, %25, %cst_20 {dimension_numbers = #tpu.dot_dimension_numbers<[1], [0], [0], [1], [0, 0, 1, 1], [], []>} : vector<256x512xbf16>, vector<512x128xbf16>, vector<256x128xf32> -> vector<256x128xf32>
    %c0_21 = arith.constant 0 : index
    %c0_22 = arith.constant 0 : index
    %27 = vector.load %arg9[%c0_21, %c0_22] : memref<1x128xf32, #tpu.memory_space<vmem>>, vector<1x128xf32>
    %28 = vector.broadcast %27 : vector<1x128xf32> to vector<256x128xf32>
    %29 = arith.addf %26, %28 : vector<256x128xf32>
    %30 = arith.truncf %29 : vector<256x128xf32> to vector<256x128xbf16>
    %c0_23 = arith.constant 0 : index
    %c0_24 = arith.constant 0 : index
    %31 = vector.load %arg10[%c0_23, %c0_24] : memref<256x128xbf16, #tpu.memory_space<vmem>>, vector<256x128xbf16>
    tpu.vector_store %arg10[%c0_23, %c0_24], %30 {strides = array<i32>} : memref<256x128xbf16, #tpu.memory_space<vmem>>, vector<256x128xbf16>,
    return
  }
  func.func @transform_0(%arg0: i32) -> (i32, i32) {
    %c0_i32 = arith.constant 0 : i32
    %c0_i32_0 = arith.constant 0 : i32
    return %arg0, %c0_i32 : i32, i32
  }
  func.func @transform_1(%arg0: i32) -> (i32, i32) {
    %c0_i32 = arith.constant 0 : i32
    %c0_i32_0 = arith.constant 0 : i32
    %c0_i32_1 = arith.constant 0 : i32
    return %c0_i32, %c0_i32_0 : i32, i32
  }
  func.func @transform_2(%arg0: i32) -> (i32, i32) {
    %c0_i32 = arith.constant 0 : i32
    %c0_i32_0 = arith.constant 0 : i32
    %c0_i32_1 = arith.constant 0 : i32
    return %c0_i32, %c0_i32_0 : i32, i32
  }
  func.func @transform_3(%arg0: i32) -> (i32, i32) {
    %c0_i32 = arith.constant 0 : i32
    %c0_i32_0 = arith.constant 0 : i32
    %c0_i32_1 = arith.constant 0 : i32
    return %c0_i32, %c0_i32_0 : i32, i32
  }
  func.func @transform_4(%arg0: i32) -> (i32, i32) {
    %c0_i32 = arith.constant 0 : i32
    %c0_i32_0 = arith.constant 0 : i32
    %c0_i32_1 = arith.constant 0 : i32
    return %c0_i32, %c0_i32_0 : i32, i32
  }
  func.func @transform_5(%arg0: i32) -> (i32, i32) {
    %c0_i32 = arith.constant 0 : i32
    %c0_i32_0 = arith.constant 0 : i32
    %c0_i32_1 = arith.constant 0 : i32
    return %c0_i32, %c0_i32_0 : i32, i32
  }
  func.func @transform_6(%arg0: i32) -> (i32, i32) {
    %c0_i32 = arith.constant 0 : i32
    %c0_i32_0 = arith.constant 0 : i32
    %c0_i32_1 = arith.constant 0 : i32
    return %c0_i32, %c0_i32_0 : i32, i32
  }
  func.func @transform_7(%arg0: i32) -> (i32, i32) {
    %c0_i32 = arith.constant 0 : i32
    %c0_i32_0 = arith.constant 0 : i32
    %c0_i32_1 = arith.constant 0 : i32
    return %c0_i32, %c0_i32_0 : i32, i32
  }
  func.func @transform_8(%arg0: i32) -> (i32, i32) {
    %c0_i32 = arith.constant 0 : i32
    %c0_i32_0 = arith.constant 0 : i32
    %c0_i32_1 = arith.constant 0 : i32
    return %c0_i32, %c0_i32_0 : i32, i32
  }
  func.func @transform_9(%arg0: i32) -> (i32, i32) {
    %c0_i32 = arith.constant 0 : i32
    %c0_i32_0 = arith.constant 0 : i32
    return %arg0, %c0_i32 : i32, i32
  }
}

</mosaic_0001>

<bundles_post_ra>
// kernel: tpu_custom_call.1
= control target key start
LH: loop header
LB: loop body
LE: loop exit
PB: predicated region body
PF: predicated region fallthrough
CT: control target
= control target key end

     0   :  { %14 = vsyncpa [#allocation3], 0  ;;  %s8879_s0 = inlined_call_operand.vmem [shape: bf16[512,8], index: 0, kind: input, shape index: {}]   ;;  %s8880_s1 = inlined_call_operand.vmem [shape: bf16[8,512], index: 1, kind: input, shape index: {}]   ;;  %s8881_s2 = inlined_call_operand.vmem [shape: f32[1,512], index: 2, kind: input, shape index: {}]   ;;  %s8882_s3 = inlined_call_operand.hbm [shape: bf16[512,512], index: 3, kind: input, shape index: {}]   ;;  %s8883_s4 = inlined_call_operand.vmem [shape: f32[1,512], index: 4, kind: input, shape index: {}]   ;;  %s8884_s5 = inlined_call_operand.hbm [shape: bf16[512,512], index: 5, kind: input, shape index: {}]   ;;  %s8885_s6 = inlined_call_operand.vmem [shape: f32[1,512], index: 6, kind: input, shape index: {}]   ;;  %s8886_s7 = inlined_call_operand.vmem [shape: bf16[512,128], index: 7, kind: input, shape index: {}]   ;;  %s8887_s8 = inlined_call_operand.vmem [shape: f32[1,128], index: 8, kind: input, shape index: {}]   ;;  %s8888_s9 = inlined_call_operand.hbm [shape: bf16[512,128], index: 9, kind: output, shape index: {}]  }
   0x1   :  { %15 = vsyncpa [#allocation6], 0 }
   0x2   :  { %16 = vsyncpa [#allocation4], 0 }
   0x3   :  { %18 = vsyncpa [#allocation4 + $0x1], 0  ;;  %s7252_s30 = smov 0   ;;  %s7254_s10 = smov 0  }
   0x4   :  { %s7256_s11 = smov 0   ;;  %s7258_s12 = smov 0  }
   0x5 LB: > { %8935 = sst [smem:[#allocation11_spill]] %s7188_s11  ;;  %s7273_s13 = sadd.s32 4294967295, %s7192_s12   ;;  %s7192_s12 = sphi %s7258_s12, %s9079_s12   ;;  %s7188_s11 = sphi %s7256_s11, %s9081_s11   ;;  %s7184_s10 = sphi %s7254_s10, %s9083_s10   ;;  %s7180_s30 = sphi %s7252_s30, %s9082_s30  }
   0x6   : > { %s5310_s14 = sadd.s32 4294967294, %s7192_s12   ;;  %s7277_s15 = sadd.s32 1, %s7192_s12  }
   0x7   : > { %8936 = sst [smem:[#allocation12_spill]] %s7277_s15  ;;  %s225_s16 = sadd.s32 1, %s7188_s11 }
   0x8   : > { %s222_s17 = ssub.s32 %s7192_s12, %s7277_s15  ;;  %p235_p0 = scmp.ne.s32.totalorder %s7188_s11, %s7184_s10 }
   0x9   : > { %p223_p1 = scmp.eq.s32.totalorder %s222_s17, 0  ;;  %p236_p2 = scmp.eq.s32.totalorder %s7273_s13, 1 }
   0xa   : > { %p241_p3 = scmp.ne.s32.totalorder %s7184_s10, %s7180_s30  ;;  %p242_p4 = scmp.eq.s32.totalorder %s5310_s14, 1 }
   0xb   : > { %s7288_s18 = scalar_select %p223_p1, %s7188_s11, %s225_s16  }
   0xc   : > { %p7290_p5 = por %p236_p2, %p235_p0  ;;  %p7294_p6 = por %p242_p4, %p241_p3 }
   0xd   : > { %8937 = sst [smem:[#allocation13_spill]] %s7288_s18  ;;  %p5311_p7 = scmp.ge.s32.totalorder %s7192_s12, 1 }
   0xe   : > { %s8938_s19 = scalar_select %p7290_p5, 1, 0 }
   0xf   : > { %s8939_s20 = scalar_select %p7294_p6, 1, 0 }
  0x10   : > { %p249_p8 = scmp.lt.s32.totalorder %s7192_s12, 3  ;;  %p8889_p9 = scmp.eq.s32.totalorder %s7273_s13, 0 }
  0x11   : > { %s7194_s22 = smov [#allocation2]   ;;  %s7195_s25 = smov [#allocation5]  }
  0x12   : > { %p7301_p10 = pnand %p5311_p7, %p249_p8  ;;  %s267_s23 = sshll.u32 %s7194_s22, 4  ;;  %s268_s23 = int_to_ptr.vmem [resolvable:$true] %s267_s23 }
  0x13   : > { %s283_s26 = sshll.u32 %s7195_s25, 4  ;;  %s7066_s29 = scalar_lea.hbm %s8882_s3, 16384  ;;  %s7313_s26 = int_to_ptr.vmem [resolvable:$true] %s283_s26 }
  0x14   : > { %s8940_s21 = scalar_select %p7301_p10, 1, 0 }
  0x15   : > { %p6575_p11 = pneg %p7301_p10  ;;  %p7067_p13 = scmp.ne.s32.totalorder %s8882_s3, %s7066_s29 }
  0x16   : > { %p7073_p3 = scmp.lt.u32.totalorder %s7066_s29, %s8882_s3 }
  0x17   : > { %p7309_p12 = pnand %p8889_p9, %p6575_p11 }
  0x19   : > { %p7068_p0 = pneg %p7309_p12 }
  0x1b   : > { %p7069_p1 = pnand %p7068_p0, %p7067_p13 }
  0x1d   : > { %p7070_p2 = pneg %p7069_p1 }
  0x1f   : > { %p7075_p4 = pnand %p7073_p3, %p7070_p2 }
  0x21   : > { %7078 = shalt.err (!%p7075_p4)
}
  0x22   : > { %s7079_s25 = scalar_lea.vmem %s268_s23, 16384  ;;  %p7087_p9 = scmp.lt.s32.totalorder %s268_s23, %s268_s23 }
  0x23   : > { %p7080_p7 = scmp.ne.s32.totalorder %s268_s23, %s7079_s25  ;;  %p7088_p6 = scmp.lt.s32.totalorder %s7079_s25, %s7079_s25 }
  0x25   : > { %p7082_p8 = pnand %p7080_p7, %p7068_p0  ;;  %p7089_p5 = por %p7088_p6, %p7087_p9 }
  0x27   : > { %p7083_p11 = pneg %p7082_p8 }
  0x29   : > { %p7090_p10 = pnand %p7089_p5, %p7083_p11 }
  0x2b   : > { %7093 = shalt.err (!%p7090_p10)
}
  0x2c   : > { %s7196_s27 = smov 256   ;;  %s7197_s28 = smov 16  }
  0x2d   : > { %6578 = dma.hbm_to_vmem [thread:$0]  (!%p7309_p12), %s8882_s3, 16384, %s268_s23, [#allocation3], %s7196_s27, %s7196_s27, %s7197_s28  }
  0x2e   : > { %s7094_s22 = scalar_lea.hbm %s8884_s5, 16384 }
  0x2f   : > { %p7095_p13 = scmp.ne.s32.totalorder %s8884_s5, %s7094_s22  ;;  %p7101_p9 = scmp.lt.u32.totalorder %s7094_s22, %s8884_s5 }
  0x31   : > { %p7097_p5 = pnand %p7095_p13, %p7068_p0 }
  0x33   : > { %p7098_p6 = pneg %p7097_p5 }
  0x35   : > { %p7103_p10 = pnand %p7101_p9, %p7098_p6 }
  0x37   : > { %7106 = shalt.err (!%p7103_p10)
}
  0x38   : > { %s7107_s23 = scalar_lea.vmem %s7313_s26, 16384  ;;  %p7115_p4 = scmp.lt.s32.totalorder %s7313_s26, %s7313_s26 }
  0x39   : > { %p7108_p1 = scmp.ne.s32.totalorder %s7313_s26, %s7107_s23  ;;  %p7116_p7 = scmp.lt.s32.totalorder %s7107_s23, %s7107_s23 }
  0x3b   : > { %p7110_p2 = pnand %p7108_p1, %p7068_p0  ;;  %p7117_p8 = por %p7116_p7, %p7115_p4 }
  0x3d   : > { %p7111_p3 = pneg %p7110_p2 }
  0x3f   : > { %p7118_p11 = pnand %p7117_p8, %p7111_p3 }
  0x41   : > { %7121 = shalt.err (!%p7118_p11)
}
  0x42   : > { %6581 = dma.hbm_to_vmem [thread:$0]  (!%p7309_p12), %s8884_s5, 16384, %s7313_s26, [#allocation6], %s7196_s27, %s7196_s27, %s7197_s28  }
  0x43   : > { %p8942_p13 = scmp.ne.s32.totalorder %s8940_s21, 0 }
  0x45   : > { %317 = sbr.rel (%p8942_p13) target bundleno = 1370 (0x55a), region = 56 }
  0x4c   : > { %p8943_p5 = scmp.eq.s32.totalorder %s7273_s13, 0 }
  0x4e   : > { %7167 = dma.done.wait (%p8943_p5), [#allocation3], 16384   ;;  %p8944_p0 = pmov %p8943_p5 }
  0x50   : > { %7169 = vsyncadd (%p8944_p0), [#allocation3], 4294950912  ;;  %p8945_p6 = pmov %p8944_p0 }
  0x51   : > { %p8946_p9 = pmov %p8944_p0 }
  0x52   : > { %7171 = dma.done.wait (%p8945_p6), [#allocation6], 16384  }
  0x53   : > { %7173 = vsyncadd (%p8946_p9), [#allocation6], 4294950912  ;;  %s5319_s18 = sshll.u32 %s7273_s13, 5  ;;  %v8895_v0 = vmov 0   ;;  %v397_v1 = vld [vmem:[%s8880_s1] sm:$0xff]  ;;  %vm560_vm0 = vcmask 1043456  }
  0x54   : > { %605 = vmatprep.mubr.bf16.mxu0 %v8895_v0  ;;  %p358_p12 = scmp.lt.s32.totalorder %s5319_s18, 63  ;;  %798 = vmatprep.mubr.bf16.mxu1 %v8895_v0  ;;  %v5338_v2 = vcombine.high %v397_v1, %v397_v1  ;;  %v5337_v3 = vcombine.low %v397_v1, %v397_v1  ;;  %vm511_vm1 = vcmask 64512   ;;  %v398_v7 = vld [vmem:[%s8880_s1 + $0x8] sm:$0xff]  ;;  %v6648_v10 = vld [vmem:[#allocation2 + $0x4] ss:$16 sps:$4 sm:$0xff]   ;;  %s354_s29 = sand.u32 1, %s7184_s10  }
  0x55   : > { %v5340_v8 = vcombine.high %v398_v7, %v398_v7  ;;  %v5339_v9 = vcombine.low %v398_v7, %v398_v7  ;;  %v6646_v11 = vld [vmem:[#allocation2] ss:$16 sps:$4 sm:$0xff]   ;;  %v6652_v13 = vld [vmem:[#allocation2 + $0x24] ss:$16 sps:$4 sm:$0xff]   ;;  %v6677_v23 = vld [vmem:[#allocation2 + $0x8] ss:$16 sps:$4 sm:$0xff]  }
  0x56   : > { %s9085_s18 = smov (!%p358_p12, %s5319_s18), 63  ;;  %5341 = vmatprep.subr.msk.bf16.mxu0 %vm560_vm0, %v5338_v2  ;;  %v562_v4 = vsel %vm560_vm0, %v5337_v3, 0  ;;  %v6650_v15 = vld [vmem:[#allocation2 + $0x20] ss:$16 sps:$4 sm:$0xff]   ;;  %v6656_v16 = vld [vmem:[#allocation2 + $0x44] ss:$16 sps:$4 sm:$0xff]  }
  0x57   : > { %s5320_s21 = sshll.u32 %s9085_s18, 2  ;;  %574 = vmatpush1.bf16.msra.mxu0 %v562_v4  ;;  %5358 = vmatprep.subr.msk.bf16.mxu1 %vm560_vm0, %v5340_v8  ;;  %v568_v12 = vsel %vm560_vm0, %v5339_v9, 0  ;;  %v6654_v17 = vld [vmem:[#allocation2 + $0x40] ss:$16 sps:$4 sm:$0xff]   ;;  %v6660_v18 = vld [vmem:[#allocation2 + $0x64] ss:$16 sps:$4 sm:$0xff]  }
  0x58   : > { %s7378_s27 = scalar_lea.vmem %s8879_s0, %s5320_s21  ;;  %767 = vmatpush1.bf16.msra.mxu1 %v568_v12  ;;  %1877 = vmatprep.subr.bf16.mxu0 %v6648_v10  ;;  %v6658_v20 = vld [vmem:[#allocation2 + $0x60] ss:$16 sps:$4 sm:$0xff]   ;;  %v6664_v21 = vld [vmem:[#allocation2 + $0x84] ss:$16 sps:$4 sm:$0xff]   ;;  %v6679_v24 = vld [vmem:[#allocation2 + $0xc] ss:$16 sps:$4 sm:$0xff]  }
  0x59   : > { %v6632_v5 = vld [vmem:[%s7378_s27] sm:$0xff]   ;;  %v6633_v6 = vld [vmem:[%s7378_s27 + $0x8] sm:$0xff]   ;;  %v6634_v14 = vld [vmem:[%s7378_s27 + $0x10] sm:$0xff]   ;;  %2263 = vmatprep.subr.bf16.mxu1 %v6679_v24  ;;  %s5318_s14 = sshll.u32 %s354_s29, 7  ;;  %s5733_s17 = sshll.u32 %s7273_s13, 11 }
  0x5a   : > { %5342 = vmatmul.mubr.msk.bf16.vlgmr.msra.gmra.mrb[0].mxu0 %vm511_vm1, %v6632_v5  ;;  %v6635_v19 = vld [vmem:[%s7378_s27 + $0x18] sm:$0xff]   ;;  %v6662_v22 = vld [vmem:[#allocation2 + $0x80] ss:$16 sps:$4 sm:$0xff]   ;;  %v6667_v25 = vld [vmem:[#allocation2 + $0xa4] ss:$16 sps:$4 sm:$0xff]   ;;  %s8779_s16 = scalar_lea.vmem [#allocation7], %s5318_s14  ;;  %s8831_s11 = scalar_lea.hbm %s8888_s9, %s5733_s17 }
  0x5b   : > { %615 = vmatprep.mubr.bf16.mxu0 %v8895_v0  ;;  %1878 = vmatpush1.bf16.msra.mxu0 %v6646_v11  ;;  %v6682_v26 = vld [vmem:[#allocation2 + $0x2c] ss:$16 sps:$4 sm:$0xff]   ;;  %v6636_v27 = vld [vmem:[%s7378_s27 + $0x20] sm:$0xff]   ;;  %v6680_v29 = vld [vmem:[#allocation2 + $0x28] ss:$16 sps:$4 sm:$0xff]   ;;  %s5226_s22 = sshll.u32 %s8779_s16, 4  ;;  %s8833_s22 = int_to_ptr.vmem [resolvable:$true] %s5226_s22 }
  0x5c   : > { %5359 = vmatmul.mubr.msk.bf16.vlgmr.msra.gmra.mrb[0].mxu1 %vm511_vm1, %v6632_v5  ;;  %1879 = vmatprep.subr.bf16.mxu0 %v6652_v13  ;;  %v6665_v28 = vld [vmem:[#allocation2 + $0xa0] ss:$16 sps:$4 sm:$0xff]   ;;  %v6688_v30 = vld [vmem:[#allocation2 + $0x4c] ss:$16 sps:$4 sm:$0xff]   ;;  %v6670_v31 = vld [vmem:[#allocation2 + $0xc4] ss:$16 sps:$4 sm:$0xff]  }
  0x5d   : > { %808 = vmatprep.mubr.bf16.mxu1 %v8895_v0  ;;  %2264 = vmatpush1.bf16.msra.mxu1 %v6677_v23  ;;  %v6668_v32 = vld [vmem:[#allocation2 + $0xc0] ss:$16 sps:$4 sm:$0xff]   ;;  %v6686_v33 = vld [vmem:[#allocation2 + $0x48] ss:$16 sps:$4 sm:$0xff]   ;;  %v6691_v34 = vld [vmem:[#allocation2 + $0x6c] ss:$16 sps:$4 sm:$0xff]  }
  0x5e   : > { %2265 = vmatprep.subr.bf16.mxu1 %v6682_v26  ;;  %v6673_v35 = vld [vmem:[#allocation2 + $0xe4] ss:$16 sps:$4 sm:$0xff]   ;;  %v6637_v36 = vld [vmem:[%s7378_s27 + $0x28] sm:$0xff]   ;;  %v6671_v37 = vld [vmem:[#allocation2 + $0xe0] ss:$16 sps:$4 sm:$0xff]   ;;  %s8838_s15 = scalar_lea.sflag [#allocation4], %s354_s29 }
  0x5f   : > { %1880 = vmatpush1.bf16.msra.mxu0 %v6650_v15  ;;  %v6689_v38 = vld [vmem:[#allocation2 + $0x68] ss:$16 sps:$4 sm:$0xff]   ;;  %v6697_v39 = vld [vmem:[#allocation2 + $0x8c] ss:$16 sps:$4 sm:$0xff]   ;;  %v6676_v40 = vld [vmem:[#allocation2 + $0x104] ss:$16 sps:$4 sm:$0xff]  }
  0x60   : > { %1881 = vmatprep.subr.bf16.mxu0 %v6656_v16  ;;  %v6674_v41 = vld [vmem:[#allocation2 + $0x100] ss:$16 sps:$4 sm:$0xff]   ;;  %v6695_v42 = vld [vmem:[#allocation2 + $0x88] ss:$16 sps:$4 sm:$0xff]   ;;  %v6700_v43 = vld [vmem:[#allocation2 + $0xac] ss:$16 sps:$4 sm:$0xff]  }
  0x61   : > { %2266 = vmatpush1.bf16.msra.mxu1 %v6680_v29  ;;  %v6685_v44 = vld [vmem:[#allocation2 + $0x124] ss:$16 sps:$4 sm:$0xff]   ;;  %v6683_v46 = vld [vmem:[#allocation2 + $0x120] ss:$16 sps:$4 sm:$0xff]   ;;  %v6698_v47 = vld [vmem:[#allocation2 + $0xa8] ss:$16 sps:$4 sm:$0xff]  }
  0x62   : > { %5343 = vmatmul.mubr.msk.bf16.gmra.mrb[4].mxu0 %vm511_vm1, %v6633_v6  ;;  %2267 = vmatprep.subr.bf16.mxu1 %v6688_v30  ;;  %v6638_v45 = vld [vmem:[%s7378_s27 + $0x30] sm:$0xff]   ;;  %v6706_v48 = vld [vmem:[#allocation2 + $0xcc] ss:$16 sps:$4 sm:$0xff]   ;;  %v6704_v51 = vld [vmem:[#allocation2 + $0xc8] ss:$16 sps:$4 sm:$0xff]   ;;  %s7122_s18 = scalar_lea.vmem %s8833_s22, 2048 }
  0x63   : > { %625 = vmatprep.mubr.bf16.mxu0 %v8895_v0  ;;  %1882 = vmatpush1.bf16.msra.mxu0 %v6654_v17  ;;  %v6694_v49 = vld [vmem:[#allocation2 + $0x144] ss:$16 sps:$4 sm:$0xff]   ;;  %v6692_v50 = vld [vmem:[#allocation2 + $0x140] ss:$16 sps:$4 sm:$0xff]   ;;  %v6709_v52 = vld [vmem:[#allocation2 + $0xec] ss:$16 sps:$4 sm:$0xff]   ;;  %p7123_p10 = scmp.ne.s32.totalorder %s8833_s22, %s7122_s18 }
  0x64   : > { %5360 = vmatmul.mubr.msk.bf16.gmra.mrb[4].mxu1 %vm511_vm1, %v6633_v6  ;;  %1883 = vmatprep.subr.bf16.mxu0 %v6660_v18  ;;  %v6703_v53 = vld [vmem:[#allocation2 + $0x164] ss:$16 sps:$4 sm:$0xff]   ;;  %v6707_v54 = vld [vmem:[#allocation2 + $0xe8] ss:$16 sps:$4 sm:$0xff]   ;;  %v6701_v55 = vld [vmem:[#allocation2 + $0x160] ss:$16 sps:$4 sm:$0xff]  }
  0x65   : > { %818 = vmatprep.mubr.bf16.mxu1 %v8895_v0  ;;  %2268 = vmatpush1.bf16.msra.mxu1 %v6686_v33  ;;  %v6715_v56 = vld [vmem:[#allocation2 + $0x10c] ss:$16 sps:$4 sm:$0xff]   ;;  %v6712_v58 = vld [vmem:[#allocation2 + $0x184] ss:$16 sps:$4 sm:$0xff]   ;;  %v6713_v59 = vld [vmem:[#allocation2 + $0x108] ss:$16 sps:$4 sm:$0xff]  }
  0x66   : > { %2269 = vmatprep.subr.bf16.mxu1 %v6691_v34  ;;  %v6639_v57 = vld [vmem:[%s7378_s27 + $0x38] sm:$0xff]   ;;  %v6710_v60 = vld [vmem:[#allocation2 + $0x180] ss:$16 sps:$4 sm:$0xff]   ;;  %v6721_v62 = vld [vmem:[#allocation2 + $0x1a4] ss:$16 sps:$4 sm:$0xff]   ;;  %p9077_p1 = scmp.ne.s32.totalorder %s8938_s19, 0 }
  0x67   : > { %1884 = vmatpush1.bf16.msra.mxu0 %v6658_v20  ;;  %v6718_v61 = vld [vmem:[#allocation2 + $0x12c] ss:$16 sps:$4 sm:$0xff]   ;;  %v6716_v63 = vld [vmem:[#allocation2 + $0x128] ss:$16 sps:$4 sm:$0xff]   ;;  %v6719_v1 = vld [vmem:[#allocation2 + $0x1a0] ss:$16 sps:$4 sm:$0xff]  }
  0x68   : > { %1885 = vmatprep.subr.bf16.mxu0 %v6664_v21  ;;  %v6724_v2 = vld [vmem:[#allocation2 + $0x14c] ss:$16 sps:$4 sm:$0xff]   ;;  %v6640_v3 = vld [vmem:[%s7378_s27 + $0x40] sm:$0xff]   ;;  %v6722_v5 = vld [vmem:[#allocation2 + $0x148] ss:$16 sps:$4 sm:$0xff]   ;;  %p7124_p2 = pnand %p7123_p10, %p9077_p1  ;;  %s7199_s13 = smov [#allocation7]  }
  0x69   : > { %2270 = vmatpush1.bf16.msra.mxu1 %v6689_v38  ;;  %v6730_v4 = vld [vmem:[#allocation2 + $0x1c4] ss:$16 sps:$4 sm:$0xff]   ;;  %v6727_v6 = vld [vmem:[#allocation2 + $0x16c] ss:$16 sps:$4 sm:$0xff]   ;;  %v6728_v7 = vld [vmem:[#allocation2 + $0x1c0] ss:$16 sps:$4 sm:$0xff]  }
  0x6a   : > { %5344 = vmatmul.mubr.msk.bf16.gmra.mrb[8].mxu0 %vm511_vm1, %v6634_v14  ;;  %2271 = vmatprep.subr.bf16.mxu1 %v6697_v39  ;;  %v6725_v8 = vld [vmem:[#allocation2 + $0x168] ss:$16 sps:$4 sm:$0xff]   ;;  %v6733_v9 = vld [vmem:[#allocation2 + $0x18c] ss:$16 sps:$4 sm:$0xff]   ;;  %v6739_v18 = vld [vmem:[#allocation2 + $0x1e4] ss:$16 sps:$4 sm:$0xff]   ;;  %p7125_p3 = pneg %p7124_p2 }
  0x6b   : > { %635 = vmatprep.mubr.bf16.mxu0 %v8895_v0  ;;  %1886 = vmatpush1.bf16.msra.mxu0 %v6662_v22  ;;  %v6641_v10 = vld [vmem:[%s7378_s27 + $0x48] sm:$0xff]   ;;  %v6643_v15 = vld [vmem:[%s7378_s27 + $0x58] sm:$0xff]   ;;  %v6737_v20 = vld [vmem:[#allocation2 + $0x1e0] ss:$16 sps:$4 sm:$0xff]   ;;  %s7126_s21 = sshll.u32 %s7199_s13, 4  ;;  %s7127_s21 = int_to_ptr.vmem [resolvable:$false] %s7126_s21 }
  0x6c   : > { %5361 = vmatmul.mubr.msk.bf16.gmra.mrb[8].mxu1 %vm511_vm1, %v6634_v14  ;;  %1887 = vmatprep.subr.bf16.mxu0 %v6667_v25  ;;  %v6731_v11 = vld [vmem:[#allocation2 + $0x188] ss:$16 sps:$4 sm:$0xff]   ;;  %v6736_v12 = vld [vmem:[#allocation2 + $0x1ac] ss:$16 sps:$4 sm:$0xff]   ;;  %v6642_v14 = vld [vmem:[%s7378_s27 + $0x50] sm:$0xff]   ;;  %s7128_s24 = scalar_lea.vmem %s7127_s21, 4096  ;;  %p7129_p4 = scmp.lt.s32.totalorder %s8833_s22, %s7127_s21 }
  0x6d   : > { %828 = vmatprep.mubr.bf16.mxu1 %v8895_v0  ;;  %2272 = vmatpush1.bf16.msra.mxu1 %v6695_v42  ;;  %v6734_v13 = vld [vmem:[#allocation2 + $0x1a8] ss:$16 sps:$4 sm:$0xff]   ;;  %v6742_v16 = vld [vmem:[#allocation2 + $0x1cc] ss:$16 sps:$4 sm:$0xff]   ;;  %v6649_v22 = vld [vmem:[%s7378_s27 + $0x60] sm:$0xff]   ;;  %p7130_p7 = scmp.lt.s32.totalorder %s7128_s24, %s7122_s18 }
  0x6e   : > { %2273 = vmatprep.subr.bf16.mxu1 %v6700_v43  ;;  %v6740_v17 = vld [vmem:[#allocation2 + $0x1c8] ss:$16 sps:$4 sm:$0xff]   ;;  %v6748_v23 = vld [vmem:[#allocation2 + $0x204] ss:$16 sps:$4 sm:$0xff]  }
  0x6f   : > { %1888 = vmatpush1.bf16.msra.mxu0 %v6665_v28  ;;  %v6743_v21 = vld [vmem:[#allocation2 + $0x1e8] ss:$16 sps:$4 sm:$0xff]   ;;  %v6657_v25 = vld [vmem:[%s7378_s27 + $0x70] sm:$0xff]   ;;  %v401_v28 = vlaneseq  ;;  %p7131_p8 = por %p7130_p7, %p7129_p4 }
  0x70   : > { %1889 = vmatprep.subr.bf16.mxu0 %v6670_v31  ;;  %v6653_v24 = vld [vmem:[%s7378_s27 + $0x68] sm:$0xff]   ;;  %v6661_v26 = vld [vmem:[%s7378_s27 + $0x78] sm:$0xff]   ;;  %v399_v31 = vld [vmem:[%s8881_s2] sm:$0xf] }
  0x71   : > { %2274 = vmatpush1.bf16.msra.mxu1 %v6698_v47  ;;  %v402_v29 = vshrl.u32 %v401_v28, 7  ;;  %p7132_p11 = pnand %p7131_p8, %p7125_p3 }
  0x72   : > { %5345 = vmatmul.mubr.msk.bf16.gmra.mrb[12].mxu0 %vm511_vm1, %v6635_v19  ;;  %2275 = vmatprep.subr.bf16.mxu1 %v6706_v48 }
  0x73   : > { %645 = vmatprep.mubr.bf16.mxu0 %v8895_v0  ;;  %1890 = vmatpush1.bf16.msra.mxu0 %v6668_v32  ;;  %v7468_v30 = vsub.s32 0, %v402_v29  ;;  %v7473_v32 = vsub.s32 1, %v402_v29 }
  0x74   : > { %5362 = vmatmul.mubr.msk.bf16.gmra.mrb[12].mxu1 %vm511_vm1, %v6635_v19  ;;  %1891 = vmatprep.subr.bf16.mxu0 %v6673_v35  ;;  %v6745_v19 = vld [vmem:[#allocation2 + $0x1ec] ss:$16 sps:$4 sm:$0xff]  }
  0x75   : > { %838 = vmatprep.mubr.bf16.mxu1 %v8895_v0  ;;  %2276 = vmatpush1.bf16.msra.mxu1 %v6704_v51  ;;  %8947 = vst [vmem:[#allocation14_spill] sm:$0xff] %v7468_v30  ;;  %8948 = vst [vmem:[#allocation15_spill] sm:$0xff] %v7473_v32  ;;  %v7476_v33 = vrot.slane %v399_v31, %v7468_v30  ;;  %v7479_v35 = vrot.slane %v399_v31, %v7473_v32 }
  0x76   : > { %2277 = vmatprep.subr.bf16.mxu1 %v6709_v52 }
  0x77   : > { %1892 = vmatpush1.bf16.msra.mxu0 %v6671_v37 }
  0x78   : > { %1893 = vmatprep.subr.bf16.mxu0 %v6676_v40 }
  0x79   : > { %2278 = vmatpush1.bf16.msra.mxu1 %v6707_v54  ;;  %v6778_v54 = vld [vmem:[#allocation2 + $0x22c] ss:$16 sps:$4 sm:$0xff]  }
  0x7a   : > { %5346 = vmatmul.mubr.msk.bf16.gmra.mrb[16].mxu0 %vm511_vm1, %v6636_v27  ;;  %2279 = vmatprep.subr.bf16.mxu1 %v6715_v56 }
  0x7b   : > { %655 = vmatprep.mubr.bf16.mxu0 %v8895_v0  ;;  %1894 = vmatpush1.bf16.msra.mxu0 %v6674_v41 }
  0x7c   : > { %5363 = vmatmul.mubr.msk.bf16.gmra.mrb[16].mxu1 %vm511_vm1, %v6636_v27  ;;  %1895 = vmatprep.subr.bf16.mxu0 %v6685_v44  ;;  %v6775_v27 = vld [vmem:[#allocation2 + $0x20c] ss:$16 sps:$4 sm:$0xff]   ;;  %v7485_v44 = vsub.s32 2, %v402_v29 }
  0x7d   : > { %848 = vmatprep.mubr.bf16.mxu1 %v8895_v0  ;;  %2280 = vmatpush1.bf16.msra.mxu1 %v6713_v59 }
  0x7e   : > { %2281 = vmatprep.subr.bf16.mxu1 %v6718_v61  ;;  %8949 = vst [vmem:[#allocation16_spill] sm:$0xff] %v7485_v44 }
  0x7f   : > { %1896 = vmatpush1.bf16.msra.mxu0 %v6683_v46  ;;  %v7487_v46 = vsub.s32 3, %v402_v29 }
  0x80   : > { %1897 = vmatprep.subr.bf16.mxu0 %v6694_v49  ;;  %v6746_v49 = vld [vmem:[#allocation2 + $0x200] ss:$16 sps:$4 sm:$0xff]  }
  0x81   : > { %2282 = vmatpush1.bf16.msra.mxu1 %v6716_v63  ;;  %8950 = vst [vmem:[#allocation17_spill] sm:$0xff] %v7487_v46  ;;  %v6749_v63 = vld [vmem:[#allocation2 + $0x220] ss:$16 sps:$4 sm:$0xff]  }
  0x82   : > { %5347 = vmatmul.mubr.msk.bf16.gmra.mrb[20].mxu0 %vm511_vm1, %v6637_v36  ;;  %2283 = vmatprep.subr.bf16.mxu1 %v6724_v2 }
  0x83   : > { %665 = vmatprep.mubr.bf16.mxu0 %v8895_v0  ;;  %1898 = vmatpush1.bf16.msra.mxu0 %v6692_v50  ;;  %v6773_v50 = vld [vmem:[#allocation2 + $0x208] ss:$16 sps:$4 sm:$0xff]  }
  0x84   : > { %5364 = vmatmul.mubr.msk.bf16.gmra.mrb[20].mxu1 %vm511_vm1, %v6637_v36  ;;  %1899 = vmatprep.subr.bf16.mxu0 %v6703_v53  ;;  %v6751_v53 = vld [vmem:[#allocation2 + $0x224] ss:$16 sps:$4 sm:$0xff]  }
  0x85   : > { %858 = vmatprep.mubr.bf16.mxu1 %v8895_v0  ;;  %2284 = vmatpush1.bf16.msra.mxu1 %v6722_v5  ;;  %v6784_v5 = vld [vmem:[#allocation2 + $0x24c] ss:$16 sps:$4 sm:$0xff]  }
  0x86   : > { %2285 = vmatprep.subr.bf16.mxu1 %v6727_v6 }
  0x87   : > { %1900 = vmatpush1.bf16.msra.mxu0 %v6701_v55  ;;  %v7492_v55 = vrot.slane %v399_v31, %v7485_v44  ;;  %v6844_v44 = vld [vmem:[#allocation5 + $0x4] ss:$16 sps:$4 sm:$0xff]  }
  0x88   : > { %1901 = vmatprep.subr.bf16.mxu0 %v6712_v58 }
  0x89   : > { %2286 = vmatpush1.bf16.msra.mxu1 %v6725_v8 }
  0x8a   : > { %5348 = vmatmul.mubr.msk.bf16.gmra.mrb[24].mxu0 %vm511_vm1, %v6638_v45  ;;  %2287 = vmatprep.subr.bf16.mxu1 %v6733_v9 }
  0x8b   : > { %675 = vmatprep.mubr.bf16.mxu0 %v8895_v0  ;;  %1902 = vmatpush1.bf16.msra.mxu0 %v6710_v60 }
  0x8c   : > { %5365 = vmatmul.mubr.msk.bf16.gmra.mrb[24].mxu1 %vm511_vm1, %v6638_v45  ;;  %1903 = vmatprep.subr.bf16.mxu0 %v6721_v62 }
  0x8d   : > { %868 = vmatprep.mubr.bf16.mxu1 %v8895_v0  ;;  %2288 = vmatpush1.bf16.msra.mxu1 %v6731_v11 }
  0x8e   : > { %2289 = vmatprep.subr.bf16.mxu1 %v6736_v12 }
  0x8f   : > { %1904 = vmatpush1.bf16.msra.mxu0 %v6719_v1  ;;  %v6776_v1 = vld [vmem:[#allocation2 + $0x228] ss:$16 sps:$4 sm:$0xff]  }
  0x90   : > { %1905 = vmatprep.subr.bf16.mxu0 %v6730_v4  ;;  %v6754_v4 = vld [vmem:[#allocation2 + $0x244] ss:$16 sps:$4 sm:$0xff]  }
  0x91   : > { %2290 = vmatpush1.bf16.msra.mxu1 %v6734_v13 }
  0x92   : > { %5349 = vmatmul.mubr.msk.bf16.gmra.mrb[28].mxu0 %vm511_vm1, %v6639_v57  ;;  %2291 = vmatprep.subr.bf16.mxu1 %v6742_v16  ;;  %v6782_v16 = vld [vmem:[#allocation2 + $0x248] ss:$16 sps:$4 sm:$0xff]  }
  0x93   : > { %685 = vmatprep.mubr.bf16.mxu0 %v8895_v0  ;;  %1906 = vmatpush1.bf16.msra.mxu0 %v6728_v7 }
  0x94   : > { %5366 = vmatmul.mubr.msk.bf16.gmra.mrb[28].mxu1 %vm511_vm1, %v6639_v57  ;;  %1907 = vmatprep.subr.bf16.mxu0 %v6739_v18  ;;  %v7495_v57 = vrot.slane %v399_v31, %v7487_v46  ;;  %v6755_v31 = vld [vmem:[#allocation2 + $0x260] ss:$16 sps:$4 sm:$0xff]   ;;  %v8954_v46 = vmov 0  }
  0x95   : > { %878 = vmatprep.mubr.bf16.mxu1 %v8895_v0  ;;  %2292 = vmatpush1.bf16.msra.mxu1 %v6740_v17 }
  0x96   : > { %2293 = vmatprep.subr.bf16.mxu1 %v6745_v19 }
  0x97   : > { %1908 = vmatpush1.bf16.msra.mxu0 %v6737_v20  ;;  %v6757_v20 = vld [vmem:[#allocation2 + $0x264] ss:$16 sps:$4 sm:$0xff]  }
  0x98   : > { %2070 = vmatprep.subr.bf16.mxu0 %v6748_v23 }
  0x99   : > { %2294 = vmatpush1.bf16.msra.mxu1 %v6743_v21  ;;  %v6787_v21 = vld [vmem:[#allocation2 + $0x26c] ss:$16 sps:$4 sm:$0xff]  }
  0x9a   : > { %5350 = vmatmul.mubr.msk.bf16.gmra.mrb[32].mxu0 %vm511_vm1, %v6640_v3  ;;  %2456 = vmatprep.subr.bf16.mxu1 %v6775_v27 }
  0x9b   : > { %695 = vmatprep.mubr.bf16.mxu0 %v8895_v0 }
  0x9c   : > { %5367 = vmatmul.mubr.msk.bf16.gmra.mrb[32].mxu1 %vm511_vm1, %v6640_v3 }
  0x9d   : > { %888 = vmatprep.mubr.bf16.mxu1 %v8895_v0 }
  0xa2   : > { %5351 = vmatmul.mubr.msk.bf16.gmra.mrb[36].mxu0 %vm511_vm1, %v6641_v10 }
  0xa3   : > { %705 = vmatprep.mubr.bf16.mxu0 %v8895_v0 }
  0xa4   : > { %5368 = vmatmul.mubr.msk.bf16.gmra.mrb[36].mxu1 %vm511_vm1, %v6641_v10 }
  0xa5   : > { %898 = vmatprep.mubr.bf16.mxu1 %v8895_v0 }
  0xaa   : > { %5352 = vmatmul.mubr.msk.bf16.gmra.mrb[40].mxu0 %vm511_vm1, %v6642_v14 }
  0xab   : > { %715 = vmatprep.mubr.bf16.mxu0 %v8895_v0 }
  0xac   : > { %5369 = vmatmul.mubr.msk.bf16.gmra.mrb[40].mxu1 %vm511_vm1, %v6642_v14 }
  0xad   : > { %908 = vmatprep.mubr.bf16.mxu1 %v8895_v0 }
  0xb2   : > { %5353 = vmatmul.mubr.msk.bf16.gmra.mrb[44].mxu0 %vm511_vm1, %v6643_v15 }
  0xb3   : > { %725 = vmatprep.mubr.bf16.mxu0 %v8895_v0 }
  0xb4   : > { %5370 = vmatmul.mubr.msk.bf16.gmra.mrb[44].mxu1 %vm511_vm1, %v6643_v15  ;;  %v6752_v15 = vld [vmem:[#allocation2 + $0x240] ss:$16 sps:$4 sm:$0xff]  }
  0xb5   : > { %918 = vmatprep.mubr.bf16.mxu1 %v8895_v0 }
  0xba   : > { %5354 = vmatmul.mubr.msk.bf16.gmra.mrb[48].mxu0 %vm511_vm1, %v6649_v22 }
  0xbb   : > { %735 = vmatprep.mubr.bf16.mxu0 %v8895_v0 }
  0xbc   : > { %5371 = vmatmul.mubr.msk.bf16.gmra.mrb[48].mxu1 %vm511_vm1, %v6649_v22 }
  0xbd   : > { %928 = vmatprep.mubr.bf16.mxu1 %v8895_v0 }
  0xc2   : > { %5355 = vmatmul.mubr.msk.bf16.gmra.mrb[52].mxu0 %vm511_vm1, %v6653_v24 }
  0xc3   : > { %745 = vmatprep.mubr.bf16.mxu0 %v8895_v0 }
  0xc4   : > { %5372 = vmatmul.mubr.msk.bf16.gmra.mrb[52].mxu1 %vm511_vm1, %v6653_v24 }
  0xc5   : > { %938 = vmatprep.mubr.bf16.mxu1 %v8895_v0 }
  0xca   : > { %5356 = vmatmul.mubr.msk.bf16.gmra.mrb[56].mxu0 %vm511_vm1, %v6657_v25 }
  0xcb   : > { %755 = vmatprep.mubr.bf16.mxu0 %v8895_v0 }
  0xcc   : > { %5373 = vmatmul.mubr.msk.bf16.gmra.mrb[56].mxu1 %vm511_vm1, %v6657_v25 }
  0xcd   : > { %948 = vmatprep.mubr.bf16.mxu1 %v8895_v0 }
  0xd2   : > { %5357 = vmatmul.mubr.msk.bf16.gmra.mrb[60].mxu0 %vm511_vm1, %v6661_v26 }
  0xd4   : > { %5374 = vmatmul.mubr.msk.bf16.gmra.mrb[60].mxu1 %vm511_vm1, %v6661_v26 }
 0x12d   : > { %v607_v34 = vpop.f32.mrb[0].mxu0 }
 0x12e   : > { %v609_v36 = vpop.f32.mrb[1].mxu0  ;;  %v608_v38 = vadd.f32 %v607_v34, %v7476_v33  ;;  %v6785_v34 = vld [vmem:[#allocation2 + $0x268] ss:$16 sps:$4 sm:$0xff]  }
 0x12f   : > { %v611_v37 = vpop.f32.mrb[2].mxu0  ;;  %v610_v41 = vadd.f32 %v609_v36, %v7479_v35  ;;  %v800_v2 = vpop.f32.mrb[0].mxu1 }
 0x130   : > { %v612_v39 = vadd.f32 %v611_v37, %v7476_v33  ;;  %v613_v40 = vpop.f32.mrb[3].mxu0  ;;  %v7502_v6 = vadd.f32 %v800_v2, %v7492_v55  ;;  %v802_v7 = vpop.f32.mrb[1].mxu1 }
 0x131   : > { %v614_v42 = vadd.f32 %v613_v40, %v7479_v35  ;;  %v7505_v9 = vadd.f32 %v802_v7, %v7495_v57  ;;  %v804_v10 = vpop.f32.mrb[2].mxu1  ;;  %v6794_v7 = vld [vmem:[#allocation2 + $0x2a8] ss:$16 sps:$4 sm:$0xff]  }
 0x132   : > { %v959_v43 = vpack.c.bf16 %v612_v39, %v608_v38  ;;  %v7508_v11 = vadd.f32 %v804_v10, %v7492_v55  ;;  %v806_v12 = vpop.f32.mrb[3].mxu1  ;;  %v6760_v38 = vld [vmem:[#allocation2 + $0x284] ss:$16 sps:$4 sm:$0xff]   ;;  %v6793_v39 = vld [vmem:[#allocation2 + $0x28c] ss:$16 sps:$4 sm:$0xff]  }
 0x133   : > { %v960_v45 = vpack.c.bf16 %v614_v42, %v610_v41  ;;  %v7512_v17 = vadd.f32 %v806_v12, %v7495_v57  ;;  %v6766_v12 = vld [vmem:[#allocation2 + $0x2c4] ss:$16 sps:$4 sm:$0xff]  }
 0x134   : > { %v1023_v51 = vmax.bf16 %v8895_v0, %v959_v43 }
 0x135   : > { %v617_v47 = vpop.f32.mrb[4].mxu0  ;;  %v1024_v48 = vmax.bf16 %v8895_v0, %v960_v45 }
 0x136   : > { %v619_v52 = vpop.f32.mrb[5].mxu0  ;;  %v618_v58 = vadd.f32 %v617_v47, %v7476_v33 }
 0x137   : > { %v621_v56 = vpop.f32.mrb[6].mxu0  ;;  %1909 = vmatprep.mubr.bf16.mxu0 %v1024_v48  ;;  %2295 = vmatprep.mubr.bf16.mxu1 %v1024_v48  ;;  %v620_v61 = vadd.f32 %v619_v52, %v7479_v35  ;;  %v810_v36 = vpop.f32.mrb[4].mxu1  ;;  %v6791_v52 = vld [vmem:[#allocation2 + $0x288] ss:$16 sps:$4 sm:$0xff]  }
 0x138   : > { %v622_v59 = vadd.f32 %v621_v56, %v7476_v33  ;;  %v623_v60 = vpop.f32.mrb[7].mxu0  ;;  %1910 = vmatmul.mubr.bf16.vlgmr.msra.gmra.mrb[64].mxu0 %v1023_v51  ;;  %2296 = vmatmul.mubr.bf16.vlgmr.msra.gmra.mrb[64].mxu1 %v1023_v51  ;;  %v7524_v40 = vadd.f32 %v810_v36, %v7492_v55  ;;  %v812_v41 = vpop.f32.mrb[5].mxu1  ;;  %v6758_v51 = vld [vmem:[#allocation2 + $0x280] ss:$16 sps:$4 sm:$0xff]   ;;  %v6805_v36 = vld [vmem:[#allocation2 + $0x2ec] ss:$16 sps:$4 sm:$0xff]  }
 0x139   : > { %v624_v62 = vadd.f32 %v623_v60, %v7479_v35  ;;  %2071 = vmatpush1.bf16.msra.mxu0 %v6746_v49  ;;  %2457 = vmatpush1.bf16.msra.mxu1 %v6773_v50  ;;  %v7527_v43 = vadd.f32 %v812_v41, %v7495_v57  ;;  %v814_v45 = vpop.f32.mrb[6].mxu1 }
 0x13a   : > { %v963_v3 = vpack.c.bf16 %v622_v59, %v618_v58  ;;  %2072 = vmatprep.subr.bf16.mxu0 %v6751_v53  ;;  %2458 = vmatprep.subr.bf16.mxu1 %v6778_v54  ;;  %v7530_v47 = vadd.f32 %v814_v45, %v7492_v55  ;;  %v816_v48 = vpop.f32.mrb[7].mxu1  ;;  %v6763_v58 = vld [vmem:[#allocation2 + $0x2a4] ss:$16 sps:$4 sm:$0xff]   ;;  %v6796_v59 = vld [vmem:[#allocation2 + $0x2ac] ss:$16 sps:$4 sm:$0xff]  }
 0x13b   : > { %v964_v8 = vpack.c.bf16 %v624_v62, %v620_v61  ;;  %v7534_v53 = vadd.f32 %v816_v48, %v7495_v57 }
 0x13c   : > { %v1027_v19 = vmax.bf16 %v8895_v0, %v963_v3 }
 0x13d   : > { %v627_v13 = vpop.f32.mrb[8].mxu0  ;;  %v1028_v14 = vmax.bf16 %v8895_v0, %v964_v8  ;;  %2073 = vmatpush1.bf16.msra.mxu0 %v6749_v63  ;;  %2459 = vmatpush1.bf16.msra.mxu1 %v6776_v1 }
 0x13e   : > { %v629_v18 = vpop.f32.mrb[9].mxu0  ;;  %2074 = vmatprep.subr.bf16.mxu0 %v6754_v4  ;;  %2460 = vmatprep.subr.bf16.mxu1 %v6784_v5  ;;  %v628_v25 = vadd.f32 %v627_v13, %v7476_v33  ;;  %v6761_v5 = vld [vmem:[#allocation2 + $0x2a0] ss:$16 sps:$4 sm:$0xff]   ;;  %v6802_v13 = vld [vmem:[#allocation2 + $0x2cc] ss:$16 sps:$4 sm:$0xff]  }
 0x13f   : > { %v631_v23 = vpop.f32.mrb[10].mxu0  ;;  %1919 = vmatprep.mubr.bf16.mxu0 %v1028_v14  ;;  %2305 = vmatprep.mubr.bf16.mxu1 %v1028_v14  ;;  %v630_v28 = vadd.f32 %v629_v18, %v7479_v35  ;;  %v820_v8 = vpop.f32.mrb[8].mxu1 }
 0x140   : > { %v632_v26 = vadd.f32 %v631_v23, %v7476_v33  ;;  %v633_v27 = vpop.f32.mrb[11].mxu0  ;;  %1920 = vmatmul.mubr.bf16.gmra.mrb[68].mxu0 %v1027_v19  ;;  %2306 = vmatmul.mubr.bf16.gmra.mrb[68].mxu1 %v1027_v19  ;;  %v7546_v14 = vadd.f32 %v820_v8, %v7492_v55  ;;  %v6770_v8 = vld [vmem:[#allocation2 + $0x300] ss:$16 sps:$4 sm:$0xff]  }
 0x141   : > { %v634_v29 = vadd.f32 %v633_v27, %v7479_v35  ;;  %2075 = vmatpush1.bf16.msra.mxu0 %v6752_v15  ;;  %2461 = vmatpush1.bf16.msra.mxu1 %v6782_v16  ;;  %v822_v15 = vpop.f32.mrb[9].mxu1  ;;  %v6800_v27 = vld [vmem:[#allocation2 + $0x2c8] ss:$16 sps:$4 sm:$0xff]  }
 0x142   : > { %v967_v37 = vpack.c.bf16 %v632_v26, %v628_v25  ;;  %2076 = vmatprep.subr.bf16.mxu0 %v6757_v20  ;;  %2462 = vmatprep.subr.bf16.mxu1 %v6787_v21  ;;  %v7549_v18 = vadd.f32 %v822_v15, %v7495_v57  ;;  %v824_v19 = vpop.f32.mrb[10].mxu1  ;;  %v6764_v26 = vld [vmem:[#allocation2 + $0x2c0] ss:$16 sps:$4 sm:$0xff]  }
 0x143   : > { %v968_v42 = vpack.c.bf16 %v634_v29, %v630_v28  ;;  %v7552_v20 = vadd.f32 %v824_v19, %v7492_v55  ;;  %v826_v21 = vpop.f32.mrb[11].mxu1  ;;  %v6814_v19 = vld [vmem:[#allocation2 + $0x32c] ss:$16 sps:$4 sm:$0xff]  }
 0x144   : > { %v1031_v56 = vmax.bf16 %v8895_v0, %v967_v37  ;;  %v7556_v28 = vadd.f32 %v826_v21, %v7495_v57 }
 0x145   : > { %v637_v49 = vpop.f32.mrb[12].mxu0  ;;  %v1032_v50 = vmax.bf16 %v8895_v0, %v968_v42  ;;  %2077 = vmatpush1.bf16.msra.mxu0 %v6755_v31  ;;  %2463 = vmatpush1.bf16.msra.mxu1 %v6785_v34  ;;  %v6769_v34 = vld [vmem:[#allocation2 + $0x2e4] ss:$16 sps:$4 sm:$0xff]  }
 0x146   : > { %v639_v54 = vpop.f32.mrb[13].mxu0  ;;  %2078 = vmatprep.subr.bf16.mxu0 %v6760_v38  ;;  %2464 = vmatprep.subr.bf16.mxu1 %v6793_v39  ;;  %v638_v63 = vadd.f32 %v637_v49, %v7476_v33 }
 0x147   : > { %v641_v61 = vpop.f32.mrb[14].mxu0  ;;  %1929 = vmatprep.mubr.bf16.mxu0 %v1032_v50  ;;  %2315 = vmatprep.mubr.bf16.mxu1 %v1032_v50  ;;  %v640_v3 = vadd.f32 %v639_v54, %v7479_v35  ;;  %v6767_v50 = vld [vmem:[#allocation2 + $0x2e0] ss:$16 sps:$4 sm:$0xff]  }
 0x148   : > { %v642_v1 = vadd.f32 %v641_v61, %v7476_v33  ;;  %v643_v2 = vpop.f32.mrb[15].mxu0  ;;  %1930 = vmatmul.mubr.bf16.gmra.mrb[72].mxu0 %v1031_v56  ;;  %2316 = vmatmul.mubr.bf16.gmra.mrb[72].mxu1 %v1031_v56  ;;  %v6772_v56 = vld [vmem:[#allocation2 + $0x304] ss:$16 sps:$4 sm:$0xff]  }
 0x149   : > { %v644_v4 = vadd.f32 %v643_v2, %v7479_v35  ;;  %2079 = vmatpush1.bf16.msra.mxu0 %v6758_v51  ;;  %2465 = vmatpush1.bf16.msra.mxu1 %v6791_v52  ;;  %v6803_v51 = vld [vmem:[#allocation2 + $0x2e8] ss:$16 sps:$4 sm:$0xff]   ;;  %v830_v52 = vpop.f32.mrb[12].mxu1 }
 0x14a   : > { %v971_v10 = vpack.c.bf16 %v642_v1, %v638_v63  ;;  %2080 = vmatprep.subr.bf16.mxu0 %v6763_v58  ;;  %2466 = vmatprep.subr.bf16.mxu1 %v6796_v59  ;;  %v6811_v58 = vld [vmem:[#allocation2 + $0x30c] ss:$16 sps:$4 sm:$0xff]   ;;  %v7568_v59 = vadd.f32 %v830_v52, %v7492_v55  ;;  %v832_v61 = vpop.f32.mrb[13].mxu1 }
 0x14b   : > { %v972_v16 = vpack.c.bf16 %v644_v4, %v640_v3  ;;  %v7571_v1 = vadd.f32 %v832_v61, %v7495_v57  ;;  %v834_v2 = vpop.f32.mrb[14].mxu1 }
 0x14c   : > { %v1035_v31 = vmax.bf16 %v8895_v0, %v971_v10  ;;  %v7574_v3 = vadd.f32 %v834_v2, %v7492_v55  ;;  %v836_v4 = vpop.f32.mrb[15].mxu1  ;;  %v6809_v10 = vld [vmem:[#allocation2 + $0x308] ss:$16 sps:$4 sm:$0xff]   ;;  %v6788_v2 = vld [vmem:[#allocation2 + $0x340] ss:$16 sps:$4 sm:$0xff]  }
 0x14d   : > { %v647_v23 = vpop.f32.mrb[16].mxu0  ;;  %v1036_v25 = vmax.bf16 %v8895_v0, %v972_v16  ;;  %2081 = vmatpush1.bf16.msra.mxu0 %v6761_v5  ;;  %2467 = vmatpush1.bf16.msra.mxu1 %v6794_v7  ;;  %v6781_v16 = vld [vmem:[#allocation2 + $0x324] ss:$16 sps:$4 sm:$0xff]  }
 0x14e   : > { %v649_v29 = vpop.f32.mrb[17].mxu0  ;;  %2082 = vmatprep.subr.bf16.mxu0 %v6766_v12  ;;  %2468 = vmatprep.subr.bf16.mxu1 %v6802_v13  ;;  %v648_v41 = vadd.f32 %v647_v23, %v7476_v33  ;;  %v7578_v12 = vadd.f32 %v836_v4, %v7495_v57  ;;  %v6818_v4 = vld [vmem:[#allocation2 + $0x348] ss:$16 sps:$4 sm:$0xff]  }
 0x14f   : > { %v651_v38 = vpop.f32.mrb[18].mxu0  ;;  %1939 = vmatprep.mubr.bf16.mxu0 %v1036_v25  ;;  %2325 = vmatprep.mubr.bf16.mxu1 %v1036_v25  ;;  %v650_v48 = vadd.f32 %v649_v29, %v7479_v35 }
 0x150   : > { %v652_v42 = vadd.f32 %v651_v38, %v7476_v33  ;;  %v653_v45 = vpop.f32.mrb[19].mxu0  ;;  %1940 = vmatmul.mubr.bf16.gmra.mrb[76].mxu0 %v1035_v31  ;;  %2326 = vmatmul.mubr.bf16.gmra.mrb[76].mxu1 %v1035_v31  ;;  %v6812_v38 = vld [vmem:[#allocation2 + $0x328] ss:$16 sps:$4 sm:$0xff]  }
 0x151   : > { %v654_v49 = vadd.f32 %v653_v45, %v7479_v35  ;;  %2083 = vmatpush1.bf16.msra.mxu0 %v6764_v26  ;;  %2469 = vmatpush1.bf16.msra.mxu1 %v6800_v27  ;;  %v6790_v45 = vld [vmem:[#allocation2 + $0x344] ss:$16 sps:$4 sm:$0xff]  }
 0x152   : > { %v975_v54 = vpack.c.bf16 %v652_v42, %v648_v41  ;;  %2084 = vmatprep.subr.bf16.mxu0 %v6769_v34  ;;  %2470 = vmatprep.subr.bf16.mxu1 %v6805_v36  ;;  %v6779_v36 = vld [vmem:[#allocation2 + $0x320] ss:$16 sps:$4 sm:$0xff]   ;;  %v840_v41 = vpop.f32.mrb[16].mxu1 }
 0x153   : > { %v976_v63 = vpack.c.bf16 %v654_v49, %v650_v48  ;;  %v6820_v48 = vld [vmem:[#allocation2 + $0x34c] ss:$16 sps:$4 sm:$0xff]   ;;  %v7590_v49 = vadd.f32 %v840_v41, %v7492_v55 }
 0x154   : > { %v1039_v15 = vmax.bf16 %v8895_v0, %v975_v54 }
 0x155   : > { %v657_v5 = vpop.f32.mrb[20].mxu0  ;;  %v1040_v7 = vmax.bf16 %v8895_v0, %v976_v63  ;;  %2085 = vmatpush1.bf16.msra.mxu0 %v6767_v50  ;;  %2471 = vmatpush1.bf16.msra.mxu1 %v6803_v51  ;;  %v842_v50 = vpop.f32.mrb[17].mxu1 }
 0x156   : > { %v659_v13 = vpop.f32.mrb[21].mxu0  ;;  %2086 = vmatprep.subr.bf16.mxu0 %v6772_v56  ;;  %2472 = vmatprep.subr.bf16.mxu1 %v6811_v58  ;;  %v658_v26 = vadd.f32 %v657_v5, %v7476_v33  ;;  %v7593_v52 = vadd.f32 %v842_v50, %v7495_v57  ;;  %v844_v54 = vpop.f32.mrb[18].mxu1 }
 0x157   : > { %v661_v23 = vpop.f32.mrb[22].mxu0  ;;  %1949 = vmatprep.mubr.bf16.mxu0 %v1040_v7  ;;  %2335 = vmatprep.mubr.bf16.mxu1 %v1040_v7  ;;  %v660_v31 = vadd.f32 %v659_v13, %v7479_v35  ;;  %v7596_v56 = vadd.f32 %v844_v54, %v7492_v55  ;;  %v846_v58 = vpop.f32.mrb[19].mxu1  ;;  %v6823_v13 = vld [vmem:[#allocation2 + $0x36c] ss:$16 sps:$4 sm:$0xff]  }
 0x158   : > { %v662_v27 = vadd.f32 %v661_v23, %v7476_v33  ;;  %v663_v29 = vpop.f32.mrb[23].mxu0  ;;  %1950 = vmatmul.mubr.bf16.gmra.mrb[80].mxu0 %v1039_v15  ;;  %2336 = vmatmul.mubr.bf16.gmra.mrb[80].mxu1 %v1039_v15  ;;  %v7600_v5 = vadd.f32 %v846_v58, %v7495_v57 }
 0x159   : > { %v664_v34 = vadd.f32 %v663_v29, %v7479_v35  ;;  %2087 = vmatpush1.bf16.msra.mxu0 %v6770_v8  ;;  %2473 = vmatpush1.bf16.msra.mxu1 %v6809_v10  ;;  %v6799_v10 = vld [vmem:[#allocation2 + $0x364] ss:$16 sps:$4 sm:$0xff]  }
 0x15a   : > { %v979_v42 = vpack.c.bf16 %v662_v27, %v658_v26  ;;  %2088 = vmatprep.subr.bf16.mxu0 %v6781_v16  ;;  %2474 = vmatprep.subr.bf16.mxu1 %v6814_v19 }
 0x15b   : > { %v980_v51 = vpack.c.bf16 %v664_v34, %v660_v31  ;;  %v6797_v34 = vld [vmem:[#allocation2 + $0x360] ss:$16 sps:$4 sm:$0xff]  }
 0x15c   : > { %v1043_v8 = vmax.bf16 %v8895_v0, %v979_v42  ;;  %v6808_v42 = vld [vmem:[#allocation2 + $0x384] ss:$16 sps:$4 sm:$0xff]  }
 0x15d   : > { %v667_v61 = vpop.f32.mrb[24].mxu0  ;;  %v1044_v63 = vmax.bf16 %v8895_v0, %v980_v51  ;;  %2089 = vmatpush1.bf16.msra.mxu0 %v6779_v36  ;;  %2475 = vmatpush1.bf16.msra.mxu1 %v6812_v38  ;;  %v6821_v36 = vld [vmem:[#allocation2 + $0x368] ss:$16 sps:$4 sm:$0xff]   ;;  %v850_v38 = vpop.f32.mrb[20].mxu1 }
 0x15e   : > { %v669_v7 = vpop.f32.mrb[25].mxu0  ;;  %2090 = vmatprep.subr.bf16.mxu0 %v6790_v45  ;;  %2476 = vmatprep.subr.bf16.mxu1 %v6820_v48  ;;  %v668_v23 = vadd.f32 %v667_v61, %v7476_v33  ;;  %v6829_v45 = vld [vmem:[#allocation2 + $0x38c] ss:$16 sps:$4 sm:$0xff]   ;;  %v7612_v48 = vadd.f32 %v850_v38, %v7492_v55  ;;  %v852_v50 = vpop.f32.mrb[21].mxu1 }
 0x15f   : > { %v671_v16 = vpop.f32.mrb[26].mxu0  ;;  %1959 = vmatprep.mubr.bf16.mxu0 %v1044_v63  ;;  %2345 = vmatprep.mubr.bf16.mxu1 %v1044_v63  ;;  %v670_v29 = vadd.f32 %v669_v7, %v7479_v35  ;;  %v7615_v54 = vadd.f32 %v852_v50, %v7495_v57  ;;  %v854_v58 = vpop.f32.mrb[22].mxu1  ;;  %v6806_v7 = vld [vmem:[#allocation2 + $0x380] ss:$16 sps:$4 sm:$0xff]   ;;  %v6830_v50 = vld [vmem:[#allocation2 + $0x3a8] ss:$16 sps:$4 sm:$0xff]  }
 0x160   : > { %v672_v26 = vadd.f32 %v671_v16, %v7476_v33  ;;  %v673_v27 = vpop.f32.mrb[27].mxu0  ;;  %1960 = vmatmul.mubr.bf16.gmra.mrb[84].mxu0 %v1043_v8  ;;  %2346 = vmatmul.mubr.bf16.gmra.mrb[84].mxu1 %v1043_v8  ;;  %v7618_v61 = vadd.f32 %v854_v58, %v7492_v55  ;;  %v856_v63 = vpop.f32.mrb[23].mxu1  ;;  %v6827_v8 = vld [vmem:[#allocation2 + $0x388] ss:$16 sps:$4 sm:$0xff]  }
 0x161   : > { %v674_v31 = vadd.f32 %v673_v27, %v7479_v35  ;;  %2091 = vmatpush1.bf16.msra.mxu0 %v6788_v2  ;;  %2477 = vmatpush1.bf16.msra.mxu1 %v6818_v4 }
 0x162   : > { %v983_v41 = vpack.c.bf16 %v672_v26, %v668_v23  ;;  %2092 = vmatprep.subr.bf16.mxu0 %v6799_v10  ;;  %2478 = vmatprep.subr.bf16.mxu1 %v6823_v13  ;;  %v7622_v10 = vadd.f32 %v856_v63, %v7495_v57  ;;  %v6817_v23 = vld [vmem:[#allocation2 + $0x3a4] ss:$16 sps:$4 sm:$0xff]   ;;  %v6832_v26 = vld [vmem:[#allocation2 + $0x3ac] ss:$16 sps:$4 sm:$0xff]  }
 0x163   : > { %v984_v51 = vpack.c.bf16 %v674_v31, %v670_v29  ;;  %v6826_v63 = vld [vmem:[#allocation2 + $0x3c4] ss:$16 sps:$4 sm:$0xff]  }
 0x164   : > { %v1047_v16 = vmax.bf16 %v8895_v0, %v983_v41 }
 0x165   : > { %v677_v2 = vpop.f32.mrb[28].mxu0  ;;  %v1048_v4 = vmax.bf16 %v8895_v0, %v984_v51  ;;  %2093 = vmatpush1.bf16.msra.mxu0 %v6797_v34  ;;  %2479 = vmatpush1.bf16.msra.mxu1 %v6821_v36  ;;  %v860_v51 = vpop.f32.mrb[24].mxu1 }
 0x166   : > { %v679_v13 = vpop.f32.mrb[29].mxu0  ;;  %2094 = vmatprep.subr.bf16.mxu0 %v6808_v42  ;;  %2480 = vmatprep.subr.bf16.mxu1 %v6829_v45  ;;  %v678_v34 = vadd.f32 %v677_v2, %v7476_v33  ;;  %v6815_v45 = vld [vmem:[#allocation2 + $0x3a0] ss:$16 sps:$4 sm:$0xff]   ;;  %v7634_v2 = vadd.f32 %v860_v51, %v7492_v55 }
 0x167   : > { %v681_v29 = vpop.f32.mrb[30].mxu0  ;;  %1969 = vmatprep.mubr.bf16.mxu0 %v1048_v4  ;;  %2355 = vmatprep.mubr.bf16.mxu1 %v1048_v4  ;;  %v680_v41 = vadd.f32 %v679_v13, %v7479_v35  ;;  %v6838_v4 = vld [vmem:[#allocation2 + $0x3cc] ss:$16 sps:$4 sm:$0xff]  }
 0x168   : > { %v682_v36 = vadd.f32 %v681_v29, %v7476_v33  ;;  %v683_v38 = vpop.f32.mrb[31].mxu0  ;;  %1970 = vmatmul.mubr.bf16.gmra.mrb[88].mxu0 %v1047_v16  ;;  %2356 = vmatmul.mubr.bf16.gmra.mrb[88].mxu1 %v1047_v16  ;;  %v862_v29 = vpop.f32.mrb[25].mxu1 }
 0x169   : > { %v684_v42 = vadd.f32 %v683_v38, %v7479_v35  ;;  %2095 = vmatpush1.bf16.msra.mxu0 %v6806_v7  ;;  %2481 = vmatpush1.bf16.msra.mxu1 %v6827_v8  ;;  %v7637_v16 = vadd.f32 %v862_v29, %v7495_v57  ;;  %v864_v13 = vpop.f32.mrb[26].mxu1  ;;  %v6841_v29 = vld [vmem:[#allocation2 + $0x3ec] ss:$16 sps:$4 sm:$0xff]  }
 0x16a   : > { %v987_v58 = vpack.c.bf16 %v682_v36, %v678_v34  ;;  %2096 = vmatprep.subr.bf16.mxu0 %v6817_v23  ;;  %2482 = vmatprep.subr.bf16.mxu1 %v6832_v26  ;;  %v7640_v7 = vadd.f32 %v864_v13, %v7492_v55  ;;  %v866_v8 = vpop.f32.mrb[27].mxu1  ;;  %v6824_v23 = vld [vmem:[#allocation2 + $0x3c0] ss:$16 sps:$4 sm:$0xff]   ;;  %v6836_v26 = vld [vmem:[#allocation2 + $0x3c8] ss:$16 sps:$4 sm:$0xff]  }
 0x16b   : > { %v988_v27 = vpack.c.bf16 %v684_v42, %v680_v41  ;;  %v7644_v36 = vadd.f32 %v866_v8, %v7495_v57  ;;  %v6835_v42 = vld [vmem:[#allocation2 + $0x3e4] ss:$16 sps:$4 sm:$0xff]   ;;  %v6839_v13 = vld [vmem:[#allocation2 + $0x3e8] ss:$16 sps:$4 sm:$0xff]   ;;  %v870_v31 = vpop.f32.mrb[28].mxu1 }
 0x16c   : > { %v1051_v41 = vmax.bf16 %v8895_v0, %v987_v58 }
 0x16d   : > { %v687_v38 = vpop.f32.mrb[32].mxu0  ;;  %v1052_v34 = vmax.bf16 %v8895_v0, %v988_v27  ;;  %2097 = vmatpush1.bf16.msra.mxu0 %v6815_v45  ;;  %2483 = vmatpush1.bf16.msra.mxu1 %v6830_v50  ;;  %v7656_v27 = vadd.f32 %v870_v31, %v7492_v55 }
 0x16e   : > { %v689_v51 = vpop.f32.mrb[33].mxu0  ;;  %2098 = vmatprep.subr.bf16.mxu0 %v6826_v63  ;;  %2484 = vmatprep.subr.bf16.mxu1 %v6838_v4  ;;  %v688_v45 = vadd.f32 %v687_v38, %v7476_v33  ;;  %v6833_v4 = vld [vmem:[#allocation2 + $0x3e0] ss:$16 sps:$4 sm:$0xff]   ;;  %v872_v38 = vpop.f32.mrb[29].mxu1 }
 0x16f   : > { %v691_v15 = vpop.f32.mrb[34].mxu0  ;;  %1979 = vmatprep.mubr.bf16.mxu0 %v1052_v34  ;;  %2365 = vmatprep.mubr.bf16.mxu1 %v1052_v34  ;;  %v690_v58 = vadd.f32 %v689_v51, %v7479_v35  ;;  %v7659_v21 = vadd.f32 %v872_v38, %v7495_v57 }
 0x170   : > { %v692_v50 = vadd.f32 %v691_v15, %v7476_v33  ;;  %v693_v8 = vpop.f32.mrb[35].mxu0  ;;  %1980 = vmatmul.mubr.bf16.gmra.mrb[92].mxu0 %v1051_v41  ;;  %2366 = vmatmul.mubr.bf16.gmra.mrb[92].mxu1 %v1051_v41  ;;  %v874_v41 = vpop.f32.mrb[30].mxu1 }
 0x171   : > { %v694_v63 = vadd.f32 %v693_v8, %v7479_v35  ;;  %2099 = vmatpush1.bf16.msra.mxu0 %v6824_v23  ;;  %2485 = vmatpush1.bf16.msra.mxu1 %v6836_v26  ;;  %v7662_v51 = vadd.f32 %v874_v41, %v7492_v55  ;;  %v876_v23 = vpop.f32.mrb[31].mxu1 }
 0x172   : > { %v991_v34 = vpack.c.bf16 %v692_v50, %v688_v45  ;;  %2100 = vmatprep.subr.bf16.mxu0 %v6835_v42  ;;  %2486 = vmatprep.subr.bf16.mxu1 %v6841_v29  ;;  %v7666_v42 = vadd.f32 %v876_v23, %v7495_v57 }
 0x173   : > { %v992_v15 = vpack.c.bf16 %v694_v63, %v690_v58 }
 0x174   : > { %v1055_v29 = vmax.bf16 %v8895_v0, %v991_v34 }
 0x175   : > { %v697_v8 = vpop.f32.mrb[36].mxu0  ;;  %v1056_v26 = vmax.bf16 %v8895_v0, %v992_v15  ;;  %2101 = vmatpush1.bf16.msra.mxu0 %v6833_v4  ;;  %2487 = vmatpush1.bf16.msra.mxu1 %v6839_v13  ;;  %v880_v15 = vpop.f32.mrb[32].mxu1 }
 0x176   : > { %v699_v31 = vpop.f32.mrb[37].mxu0  ;;  %v698_v63 = vadd.f32 %v697_v8, %v7476_v33  ;;  %v7678_v23 = vadd.f32 %v880_v15, %v7492_v55  ;;  %3567 = vmatprep.subr.bf16.mxu0 %v6844_v44 }
 0x177   : > { %v701_v50 = vpop.f32.mrb[38].mxu0  ;;  %1989 = vmatprep.mubr.bf16.mxu0 %v1056_v26  ;;  %2375 = vmatprep.mubr.bf16.mxu1 %v1056_v26  ;;  %v700_v38 = vadd.f32 %v699_v31, %v7479_v35  ;;  %v882_v26 = vpop.f32.mrb[33].mxu1 }
 0x178   : > { %v702_v4 = vadd.f32 %v701_v50, %v7476_v33  ;;  %v703_v13 = vpop.f32.mrb[39].mxu0  ;;  %1990 = vmatmul.mubr.bf16.gmra.mrb[96].mxu0 %v1055_v29  ;;  %2376 = vmatmul.mubr.bf16.gmra.mrb[96].mxu1 %v1055_v29  ;;  %v7681_v58 = vadd.f32 %v882_v26, %v7495_v57  ;;  %v884_v8 = vpop.f32.mrb[34].mxu1 }
 0x179   : > { %v704_v34 = vadd.f32 %v703_v13, %v7479_v35  ;;  %v7684_v50 = vadd.f32 %v884_v8, %v7492_v55  ;;  %v886_v19 = vpop.f32.mrb[35].mxu1 }
 0x17a   : > { %v995_v41 = vpack.c.bf16 %v702_v4, %v698_v63  ;;  %v7688_v13 = vadd.f32 %v886_v19, %v7495_v57  ;;  %v890_v37 = vpop.f32.mrb[36].mxu1 }
 0x17b   : > { %v996_v45 = vpack.c.bf16 %v704_v34, %v700_v38  ;;  %v7700_v38 = vadd.f32 %v890_v37, %v7492_v55 }
 0x17c   : > { %v1059_v4 = vmax.bf16 %v8895_v0, %v995_v41 }
 0x17d   : > { %v707_v29 = vpop.f32.mrb[40].mxu0  ;;  %v1060_v31 = vmax.bf16 %v8895_v0, %v996_v45  ;;  %8951 = vst [vmem:[#allocation18_spill] sm:$0xff] %v7700_v38 }
 0x17e   : > { %v709_v63 = vpop.f32.mrb[41].mxu0  ;;  %v708_v26 = vadd.f32 %v707_v29, %v7476_v33 }
 0x17f   : > { %v711_v34 = vpop.f32.mrb[42].mxu0  ;;  %1999 = vmatprep.mubr.bf16.mxu0 %v1060_v31  ;;  %2385 = vmatprep.mubr.bf16.mxu1 %v1060_v31  ;;  %v710_v19 = vadd.f32 %v709_v63, %v7479_v35  ;;  %v892_v31 = vpop.f32.mrb[37].mxu1 }
 0x180   : > { %v712_v8 = vadd.f32 %v711_v34, %v7476_v33  ;;  %v713_v45 = vpop.f32.mrb[43].mxu0  ;;  %2000 = vmatmul.mubr.bf16.gmra.mrb[100].mxu0 %v1059_v4  ;;  %2386 = vmatmul.mubr.bf16.gmra.mrb[100].mxu1 %v1059_v4  ;;  %v7703_v15 = vadd.f32 %v892_v31, %v7495_v57  ;;  %v894_v29 = vpop.f32.mrb[38].mxu1 }
 0x181   : > { %v714_v41 = vadd.f32 %v713_v45, %v7479_v35  ;;  %v7706_v34 = vadd.f32 %v894_v29, %v7492_v55  ;;  %v896_v39 = vpop.f32.mrb[39].mxu1 }
 0x182   : > { %v999_v25 = vpack.c.bf16 %v712_v8, %v708_v26  ;;  %v7710_v45 = vadd.f32 %v896_v39, %v7495_v57  ;;  %v900_v22 = vpop.f32.mrb[40].mxu1 }
 0x183   : > { %v1000_v60 = vpack.c.bf16 %v714_v41, %v710_v19  ;;  %v7722_v8 = vadd.f32 %v900_v22, %v7492_v55 }
 0x184   : > { %v1063_v37 = vmax.bf16 %v8895_v0, %v999_v25 }
 0x185   : > { %v717_v4 = vpop.f32.mrb[44].mxu0  ;;  %v1064_v63 = vmax.bf16 %v8895_v0, %v1000_v60  ;;  %8952 = vst [vmem:[#allocation19_spill] sm:$0xff] %v7722_v8  ;;  %v6847_v8 = vld [vmem:[#allocation5 + $0xc] ss:$16 sps:$4 sm:$0xff]  }
 0x186   : > { %v719_v26 = vpop.f32.mrb[45].mxu0  ;;  %v718_v31 = vadd.f32 %v717_v4, %v7476_v33  ;;  %3953 = vmatprep.subr.bf16.mxu1 %v6847_v8 }
 0x187   : > { %v721_v19 = vpop.f32.mrb[46].mxu0  ;;  %2009 = vmatprep.mubr.bf16.mxu0 %v1064_v63  ;;  %2395 = vmatprep.mubr.bf16.mxu1 %v1064_v63  ;;  %v720_v39 = vadd.f32 %v719_v26, %v7479_v35  ;;  %v902_v63 = vpop.f32.mrb[41].mxu1 }
 0x188   : > { %v722_v29 = vadd.f32 %v721_v19, %v7476_v33  ;;  %v723_v60 = vpop.f32.mrb[47].mxu0  ;;  %2010 = vmatmul.mubr.bf16.gmra.mrb[104].mxu0 %v1063_v37  ;;  %2396 = vmatmul.mubr.bf16.gmra.mrb[104].mxu1 %v1063_v37  ;;  %v7725_v41 = vadd.f32 %v902_v63, %v7495_v57  ;;  %v904_v4 = vpop.f32.mrb[42].mxu1 }
 0x189   : > { %v724_v25 = vadd.f32 %v723_v60, %v7479_v35  ;;  %v7728_v19 = vadd.f32 %v904_v4, %v7492_v55  ;;  %v906_v0 = vpop.f32.mrb[43].mxu1 }
 0x18a   : > { %v1003_v62 = vpack.c.bf16 %v722_v29, %v718_v31  ;;  %v7732_v60 = vadd.f32 %v906_v0, %v7495_v57  ;;  %v910_v32 = vpop.f32.mrb[44].mxu1 }
 0x18b   : > { %v1004_v24 = vpack.c.bf16 %v724_v25, %v720_v39  ;;  %8953 = vst [vmem:[#allocation20_spill] sm:$0xff] %v7728_v19  ;;  %v7744_v30 = vadd.f32 %v910_v32, %v7492_v55 }
 0x18c   : > { %v1067_v22 = vmax.bf16 %v8954_v46, %v1003_v62 }
 0x18d   : > { %v727_v37 = vpop.f32.mrb[48].mxu0  ;;  %v1068_v26 = vmax.bf16 %v8954_v46, %v1004_v24  ;;  %8955 = vst [vmem:[#allocation21_spill] sm:$0xff] %v7744_v30 }
 0x18e   : > { %v729_v31 = vpop.f32.mrb[49].mxu0  ;;  %v728_v63 = vadd.f32 %v727_v37, %v7476_v33 }
 0x18f   : > { %v731_v39 = vpop.f32.mrb[50].mxu0  ;;  %2019 = vmatprep.mubr.bf16.mxu0 %v1068_v26  ;;  %2405 = vmatprep.mubr.bf16.mxu1 %v1068_v26  ;;  %v730_v0 = vadd.f32 %v729_v31, %v7479_v35  ;;  %v912_v26 = vpop.f32.mrb[45].mxu1 }
 0x190   : > { %v732_v4 = vadd.f32 %v731_v39, %v7476_v33  ;;  %v733_v24 = vpop.f32.mrb[51].mxu0  ;;  %2020 = vmatmul.mubr.bf16.gmra.mrb[108].mxu0 %v1067_v22  ;;  %2406 = vmatmul.mubr.bf16.gmra.mrb[108].mxu1 %v1067_v22  ;;  %v7747_v37 = vadd.f32 %v912_v26, %v7495_v57  ;;  %v914_v39 = vpop.f32.mrb[46].mxu1 }
 0x191   : > { %v734_v62 = vadd.f32 %v733_v24, %v7479_v35  ;;  %v7750_v22 = vadd.f32 %v914_v39, %v7492_v55  ;;  %v916_v31 = vpop.f32.mrb[47].mxu1 }
 0x192   : > { %v1007_v29 = vpack.c.bf16 %v732_v4, %v728_v63  ;;  %8956 = vst [vmem:[#allocation22_spill] sm:$0xff] %v7747_v37  ;;  %v7754_v63 = vadd.f32 %v916_v31, %v7495_v57  ;;  %v920_v31 = vpop.f32.mrb[48].mxu1 }
 0x193   : > { %v1008_v25 = vpack.c.bf16 %v734_v62, %v730_v0  ;;  %8957 = vst [vmem:[#allocation23_spill] sm:$0xff] %v7750_v22  ;;  %v7766_v0 = vadd.f32 %v920_v31, %v7492_v55 }
 0x194   : > { %8958 = vst [vmem:[#allocation24_spill] sm:$0xff] %v7754_v63  ;;  %v1071_v4 = vmax.bf16 %v8954_v46, %v1007_v29 }
 0x195   : > { %v737_v24 = vpop.f32.mrb[52].mxu0  ;;  %v1072_v19 = vmax.bf16 %v8954_v46, %v1008_v25  ;;  %8959 = vst [vmem:[#allocation25_spill] sm:$0xff] %v7766_v0 }
 0x196   : > { %v739_v32 = vpop.f32.mrb[53].mxu0  ;;  %v738_v8 = vadd.f32 %v737_v24, %v7476_v33 }
 0x197   : > { %v741_v62 = vpop.f32.mrb[54].mxu0  ;;  %2029 = vmatprep.mubr.bf16.mxu0 %v1072_v19  ;;  %2415 = vmatprep.mubr.bf16.mxu1 %v1072_v19  ;;  %v740_v39 = vadd.f32 %v739_v32, %v7479_v35  ;;  %v922_v19 = vpop.f32.mrb[49].mxu1 }
 0x198   : > { %v742_v26 = vadd.f32 %v741_v62, %v7476_v33  ;;  %v743_v25 = vpop.f32.mrb[55].mxu0  ;;  %2030 = vmatmul.mubr.bf16.gmra.mrb[112].mxu0 %v1071_v4  ;;  %2416 = vmatmul.mubr.bf16.gmra.mrb[112].mxu1 %v1071_v4  ;;  %v7769_v44 = vadd.f32 %v922_v19, %v7495_v57  ;;  %v924_v24 = vpop.f32.mrb[50].mxu1 }
 0x199   : > { %v744_v29 = vadd.f32 %v743_v25, %v7479_v35  ;;  %v7772_v62 = vadd.f32 %v924_v24, %v7492_v55  ;;  %v926_v22 = vpop.f32.mrb[51].mxu1 }
 0x19a   : > { %v1011_v38 = vpack.c.bf16 %v742_v26, %v738_v8  ;;  %8960 = vst [vmem:[#allocation26_spill] sm:$0xff] %v7769_v44  ;;  %v7776_v25 = vadd.f32 %v926_v22, %v7495_v57  ;;  %v930_v37 = vpop.f32.mrb[52].mxu1 }
 0x19b   : > { %v1012_v30 = vpack.c.bf16 %v744_v29, %v740_v39  ;;  %8961 = vst [vmem:[#allocation27_spill] sm:$0xff] %v7772_v62  ;;  %v7788_v39 = vadd.f32 %v930_v37, %v7492_v55 }
 0x19c   : > { %8962 = vst [vmem:[#allocation28_spill] sm:$0xff] %v7776_v25  ;;  %v1075_v26 = vmax.bf16 %v8954_v46, %v1011_v38 }
 0x19d   : > { %v747_v4 = vpop.f32.mrb[56].mxu0  ;;  %v1076_v32 = vmax.bf16 %v8954_v46, %v1012_v30  ;;  %8963 = vst [vmem:[#allocation29_spill] sm:$0xff] %v7788_v39 }
 0x19e   : > { %v749_v8 = vpop.f32.mrb[57].mxu0  ;;  %v748_v19 = vadd.f32 %v747_v4, %v7476_v33 }
 0x19f   : > { %v751_v29 = vpop.f32.mrb[58].mxu0  ;;  %2039 = vmatprep.mubr.bf16.mxu0 %v1076_v32  ;;  %2425 = vmatprep.mubr.bf16.mxu1 %v1076_v32  ;;  %v750_v22 = vadd.f32 %v749_v8, %v7479_v35  ;;  %v932_v32 = vpop.f32.mrb[53].mxu1 }
 0x1a0   : > { %v752_v24 = vadd.f32 %v751_v29, %v7476_v33  ;;  %v753_v30 = vpop.f32.mrb[59].mxu0  ;;  %2040 = vmatmul.mubr.bf16.gmra.mrb[116].mxu0 %v1075_v26  ;;  %2426 = vmatmul.mubr.bf16.gmra.mrb[116].mxu1 %v1075_v26  ;;  %v7791_v31 = vadd.f32 %v932_v32, %v7495_v57  ;;  %v934_v4 = vpop.f32.mrb[54].mxu1 }
 0x1a1   : > { %v754_v38 = vadd.f32 %v753_v30, %v7479_v35  ;;  %v7794_v29 = vadd.f32 %v934_v4, %v7492_v55  ;;  %v936_v62 = vpop.f32.mrb[55].mxu1 }
 0x1a2   : > { %v1015_v63 = vpack.c.bf16 %v752_v24, %v748_v19  ;;  %v7798_v30 = vadd.f32 %v936_v62, %v7495_v57  ;;  %v940_v44 = vpop.f32.mrb[56].mxu1 }
 0x1a3   : > { %v1016_v0 = vpack.c.bf16 %v754_v38, %v750_v22  ;;  %v7810_v24 = vadd.f32 %v940_v44, %v7492_v55 }
 0x1a4   : > { %v1079_v37 = vmax.bf16 %v8954_v46, %v1015_v63 }
 0x1a5   : > { %v757_v26 = vpop.f32.mrb[60].mxu0  ;;  %v1080_v8 = vmax.bf16 %v8954_v46, %v1016_v0 }
 0x1a6   : > { %v759_v19 = vpop.f32.mrb[61].mxu0  ;;  %v758_v32 = vadd.f32 %v757_v26, %v7476_v33 }
 0x1a7   : > { %v761_v22 = vpop.f32.mrb[62].mxu0  ;;  %2049 = vmatprep.mubr.bf16.mxu0 %v1080_v8  ;;  %2435 = vmatprep.mubr.bf16.mxu1 %v1080_v8  ;;  %v760_v62 = vadd.f32 %v759_v19, %v7479_v35  ;;  %v942_v8 = vpop.f32.mrb[57].mxu1 }
 0x1a8   : > { %v762_v4 = vadd.f32 %v761_v22, %v7476_v33  ;;  %v763_v0 = vpop.f32.mrb[63].mxu0  ;;  %2050 = vmatmul.mubr.bf16.gmra.mrb[120].mxu0 %v1079_v37  ;;  %2436 = vmatmul.mubr.bf16.gmra.mrb[120].mxu1 %v1079_v37  ;;  %v7813_v38 = vadd.f32 %v942_v8, %v7495_v57  ;;  %v944_v26 = vpop.f32.mrb[58].mxu1 }
 0x1a9   : > { %v764_v63 = vadd.f32 %v763_v0, %v7479_v35  ;;  %v7816_v33 = vadd.f32 %v944_v26, %v7492_v55  ;;  %v946_v22 = vpop.f32.mrb[59].mxu1  ;;  %v8964_v35 = vpack.c.bf16 %v7512_v17, %v7505_v9  ;;  %v8965_v26 = vpack.c.bf16 %v7534_v53, %v7527_v43  ;;  %v6859_v53 = vld [vmem:[#allocation5 + $0x4c] ss:$16 sps:$4 sm:$0xff]  }
 0x1aa   : > { %v1019_v25 = vpack.c.bf16 %v762_v4, %v758_v32  ;;  %v7824_v44 = vadd.f32 %v946_v22, %v7495_v57  ;;  %v950_v9 = vpop.f32.mrb[60].mxu1 }
 0x1ab   : > { %v1020_v39 = vpack.c.bf16 %v764_v63, %v760_v62  ;;  %v1026_v19 = vmax.bf16 %v8954_v46, %v8964_v35  ;;  %v1017_v4 = vpack.c.bf16 %v7816_v33, %v7810_v24  ;;  %v7832_v17 = vadd.f32 %v950_v9, %v7492_v55  ;;  %v6845_v9 = vld [vmem:[#allocation5 + $0x8] ss:$16 sps:$4 sm:$0xff]   ;;  %v9005_v24 = vld [vmem:[#allocation16_spill] sm:$0xff] }
 0x1ac   : > { %v1083_v32 = vmax.bf16 %v8954_v46, %v1019_v25  ;;  %v1018_v0 = vpack.c.bf16 %v7824_v44, %v7813_v38  ;;  %v1030_v22 = vmax.bf16 %v8954_v46, %v8965_v26  ;;  %v8966_v35 = vpack.c.bf16 %v7508_v11, %v7502_v6  ;;  %v6851_v6 = vld [vmem:[#allocation5 + $0x28] ss:$16 sps:$4 sm:$0xff]   ;;  %v6856_v11 = vld [vmem:[#allocation5 + $0x44] ss:$16 sps:$4 sm:$0xff]   ;;  %v1215_v44 = vld [vmem:[%s8883_s4] sm:$0xf] }
 0x1ad   : > { %v1084_v37 = vmax.bf16 %v8954_v46, %v1020_v39  ;;  %v952_v39 = vpop.f32.mrb[61].mxu1  ;;  %v1081_v38 = vmax.bf16 %v8954_v46, %v1017_v4  ;;  %v7978_v33 = vrot.slane %v1215_v44, %v9005_v24 }
 0x1ae   : > { %v7835_v62 = vadd.f32 %v952_v39, %v7495_v57  ;;  %v954_v25 = vpop.f32.mrb[62].mxu1  ;;  %v6850_v39 = vld [vmem:[#allocation5 + $0x24] ss:$16 sps:$4 sm:$0xff]  }
 0x1af   : > { %2059 = vmatprep.mubr.bf16.mxu0 %v1084_v37  ;;  %2445 = vmatprep.mubr.bf16.mxu1 %v1084_v37  ;;  %v7838_v63 = vadd.f32 %v954_v25, %v7492_v55  ;;  %v956_v8 = vpop.f32.mrb[63].mxu1  ;;  %v6853_v25 = vld [vmem:[#allocation5 + $0x2c] ss:$16 sps:$4 sm:$0xff]  }
 0x1b0   : > { %2060 = vmatmul.mubr.bf16.gmra.mrb[124].mxu0 %v1083_v32  ;;  %2446 = vmatmul.mubr.bf16.gmra.mrb[124].mxu1 %v1083_v32  ;;  %v7845_v37 = vadd.f32 %v956_v8, %v7495_v57  ;;  %v6842_v32 = vld [vmem:[#allocation5] ss:$16 sps:$4 sm:$0xff]   ;;  %v8967_v8 = vpack.c.bf16 %v7556_v28, %v7549_v18  ;;  %v6863_v28 = vld [vmem:[#allocation5 + $0x68] ss:$16 sps:$4 sm:$0xff]  }
 0x1b1   : > { %2102 = vmatprep.mubr.bf16.mxu0 %v1026_v19  ;;  %2488 = vmatprep.mubr.bf16.mxu1 %v1026_v19  ;;  %v1025_v19 = vmax.bf16 %v8954_v46, %v8966_v35  ;;  %v1021_v55 = vpack.c.bf16 %v7838_v63, %v7832_v17  ;;  %v6848_v57 = vld [vmem:[#allocation5 + $0x20] ss:$16 sps:$4 sm:$0xff]   ;;  %v8968_v35 = vpack.c.bf16 %v7530_v47, %v7524_v40  ;;  %v6868_v40 = vld [vmem:[#allocation5 + $0x84] ss:$16 sps:$4 sm:$0xff]   ;;  %v6871_v47 = vld [vmem:[#allocation5 + $0x8c] ss:$16 sps:$4 sm:$0xff]  }
 0x1b2   : > { %v1022_v43 = vpack.c.bf16 %v7845_v37, %v7835_v62  ;;  %v1034_v26 = vmax.bf16 %v8954_v46, %v8967_v8  ;;  %v6860_v18 = vld [vmem:[#allocation5 + $0x60] ss:$16 sps:$4 sm:$0xff]   ;;  %v6869_v8 = vld [vmem:[#allocation5 + $0x88] ss:$16 sps:$4 sm:$0xff]  }
 0x1b3   : > { %v9007_v17 = vld [vmem:[#allocation17_spill] sm:$0xff] }
 0x1b4   : > { %v7984_v63 = vrot.slane %v1215_v44, %v9007_v17 }
 0x1b8   : > { %2103 = vmatmul.mubr.bf16.vlgmr.msra.gmra.mrb[64].mxu0 %v1025_v19  ;;  %2489 = vmatmul.mubr.bf16.vlgmr.msra.gmra.mrb[64].mxu1 %v1025_v19  ;;  %v1029_v19 = vmax.bf16 %v8954_v46, %v8968_v35  ;;  %v6877_v35 = vld [vmem:[#allocation5 + $0xac] ss:$16 sps:$4 sm:$0xff]  }
 0x1b9   : > { %2112 = vmatprep.mubr.bf16.mxu0 %v1030_v22  ;;  %2498 = vmatprep.mubr.bf16.mxu1 %v1030_v22  ;;  %v6854_v22 = vld [vmem:[#allocation5 + $0x40] ss:$16 sps:$4 sm:$0xff]  }
 0x1ba   : > { %3568 = vmatpush1.bf16.msra.mxu0 %v6842_v32  ;;  %3954 = vmatpush1.bf16.msra.mxu1 %v6845_v9  ;;  %v6857_v32 = vld [vmem:[#allocation5 + $0x48] ss:$16 sps:$4 sm:$0xff]   ;;  %v6862_v9 = vld [vmem:[#allocation5 + $0x64] ss:$16 sps:$4 sm:$0xff]  }
 0x1bb   : > { %3569 = vmatprep.subr.bf16.mxu0 %v6850_v39  ;;  %3955 = vmatprep.subr.bf16.mxu1 %v6853_v25  ;;  %v6865_v39 = vld [vmem:[#allocation5 + $0x6c] ss:$16 sps:$4 sm:$0xff]   ;;  %v8969_v25 = vpack.c.bf16 %v7578_v12, %v7571_v1  ;;  %v6872_v1 = vld [vmem:[#allocation5 + $0xa0] ss:$16 sps:$4 sm:$0xff]   ;;  %v6875_v12 = vld [vmem:[#allocation5 + $0xa8] ss:$16 sps:$4 sm:$0xff]  }
 0x1be   : > { %3570 = vmatpush1.bf16.msra.mxu0 %v6848_v57  ;;  %3956 = vmatpush1.bf16.msra.mxu1 %v6851_v6  ;;  %v1038_v57 = vmax.bf16 %v8954_v46, %v8969_v25  ;;  %v8970_v6 = vpack.c.bf16 %v7552_v20, %v7546_v14  ;;  %v6880_v14 = vld [vmem:[#allocation5 + $0xc4] ss:$16 sps:$4 sm:$0xff]   ;;  %v6883_v20 = vld [vmem:[#allocation5 + $0xcc] ss:$16 sps:$4 sm:$0xff]  }
 0x1bf   : > { %3571 = vmatprep.subr.bf16.mxu0 %v6856_v11  ;;  %3957 = vmatprep.subr.bf16.mxu1 %v6859_v53  ;;  %v6866_v53 = vld [vmem:[#allocation5 + $0x80] ss:$16 sps:$4 sm:$0xff]  }
 0x1c0   : > { %2113 = vmatmul.mubr.bf16.gmra.mrb[68].mxu0 %v1029_v19  ;;  %2499 = vmatmul.mubr.bf16.gmra.mrb[68].mxu1 %v1029_v19  ;;  %v1033_v11 = vmax.bf16 %v8954_v46, %v8970_v6  ;;  %v8971_v19 = vpack.c.bf16 %v7600_v5, %v7593_v52  ;;  %v6884_v52 = vld [vmem:[#allocation5 + $0xe0] ss:$16 sps:$4 sm:$0xff]   ;;  %v6887_v5 = vld [vmem:[#allocation5 + $0xe8] ss:$16 sps:$4 sm:$0xff]  }
 0x1c1   : > { %2122 = vmatprep.mubr.bf16.mxu0 %v1034_v26  ;;  %2508 = vmatprep.mubr.bf16.mxu1 %v1034_v26  ;;  %v6874_v26 = vld [vmem:[#allocation5 + $0xa4] ss:$16 sps:$4 sm:$0xff]  }
 0x1c2   : > { %3572 = vmatpush1.bf16.msra.mxu0 %v6854_v22  ;;  %3958 = vmatpush1.bf16.msra.mxu1 %v6857_v32  ;;  %v1042_v22 = vmax.bf16 %v8954_v46, %v8971_v19  ;;  %v8972_v32 = vpack.c.bf16 %v7574_v3, %v7568_v59  ;;  %v6892_v59 = vld [vmem:[#allocation5 + $0x104] ss:$16 sps:$4 sm:$0xff]   ;;  %v6895_v3 = vld [vmem:[#allocation5 + $0x10c] ss:$16 sps:$4 sm:$0xff]   ;;  %v6905_v19 = vld [vmem:[#allocation5 + $0x148] ss:$16 sps:$4 sm:$0xff]  }
 0x1c3   : > { %3573 = vmatprep.subr.bf16.mxu0 %v6862_v9  ;;  %3959 = vmatprep.subr.bf16.mxu1 %v6865_v39  ;;  %v6878_v39 = vld [vmem:[#allocation5 + $0xc0] ss:$16 sps:$4 sm:$0xff]  }
 0x1c4   : > { %v1037_v9 = vmax.bf16 %v8954_v46, %v8972_v32  ;;  %v6913_v32 = vld [vmem:[#allocation5 + $0x16c] ss:$16 sps:$4 sm:$0xff]  }
 0x1c6   : > { %3574 = vmatpush1.bf16.msra.mxu0 %v6860_v18  ;;  %3960 = vmatpush1.bf16.msra.mxu1 %v6863_v28  ;;  %v6881_v18 = vld [vmem:[#allocation5 + $0xc8] ss:$16 sps:$4 sm:$0xff]   ;;  %v6886_v28 = vld [vmem:[#allocation5 + $0xe4] ss:$16 sps:$4 sm:$0xff]  }
 0x1c7   : > { %3575 = vmatprep.subr.bf16.mxu0 %v6868_v40  ;;  %3961 = vmatprep.subr.bf16.mxu1 %v6871_v47  ;;  %v6889_v40 = vld [vmem:[#allocation5 + $0xec] ss:$16 sps:$4 sm:$0xff]   ;;  %v8973_v47 = vpack.c.bf16 %v7622_v10, %v7615_v54  ;;  %v6896_v54 = vld [vmem:[#allocation5 + $0x120] ss:$16 sps:$4 sm:$0xff]   ;;  %v6899_v10 = vld [vmem:[#allocation5 + $0x128] ss:$16 sps:$4 sm:$0xff]  }
 0x1c8   : > { %2123 = vmatmul.mubr.bf16.gmra.mrb[72].mxu0 %v1033_v11  ;;  %2509 = vmatmul.mubr.bf16.gmra.mrb[72].mxu1 %v1033_v11  ;;  %v6890_v11 = vld [vmem:[#allocation5 + $0x100] ss:$16 sps:$4 sm:$0xff]  }
 0x1c9   : > { %2132 = vmatprep.mubr.bf16.mxu0 %v1038_v57  ;;  %2518 = vmatprep.mubr.bf16.mxu1 %v1038_v57  ;;  %v1046_v25 = vmax.bf16 %v8954_v46, %v8973_v47  ;;  %v8974_v57 = vpack.c.bf16 %v7596_v56, %v7590_v49  ;;  %v6904_v49 = vld [vmem:[#allocation5 + $0x144] ss:$16 sps:$4 sm:$0xff]   ;;  %v6907_v56 = vld [vmem:[#allocation5 + $0x14c] ss:$16 sps:$4 sm:$0xff]  }
 0x1ca   : > { %3576 = vmatpush1.bf16.msra.mxu0 %v6866_v53  ;;  %3962 = vmatpush1.bf16.msra.mxu1 %v6869_v8  ;;  %v6893_v53 = vld [vmem:[#allocation5 + $0x108] ss:$16 sps:$4 sm:$0xff]   ;;  %v6898_v8 = vld [vmem:[#allocation5 + $0x124] ss:$16 sps:$4 sm:$0xff]  }
 0x1cb   : > { %3577 = vmatprep.subr.bf16.mxu0 %v6874_v26  ;;  %3963 = vmatprep.subr.bf16.mxu1 %v6877_v35  ;;  %v1041_v6 = vmax.bf16 %v8954_v46, %v8974_v57  ;;  %v6901_v26 = vld [vmem:[#allocation5 + $0x12c] ss:$16 sps:$4 sm:$0xff]   ;;  %v8975_v35 = vpack.c.bf16 %v7644_v36, %v7637_v16  ;;  %v6908_v16 = vld [vmem:[#allocation5 + $0x160] ss:$16 sps:$4 sm:$0xff]   ;;  %v6911_v36 = vld [vmem:[#allocation5 + $0x168] ss:$16 sps:$4 sm:$0xff]  }
 0x1ce   : > { %3578 = vmatpush1.bf16.msra.mxu0 %v6872_v1  ;;  %3964 = vmatpush1.bf16.msra.mxu1 %v6875_v12  ;;  %v1050_v1 = vmax.bf16 %v8954_v46, %v8975_v35  ;;  %v8976_v12 = vpack.c.bf16 %v7618_v61, %v7612_v48  ;;  %v6916_v48 = vld [vmem:[#allocation5 + $0x184] ss:$16 sps:$4 sm:$0xff]   ;;  %v6919_v61 = vld [vmem:[#allocation5 + $0x18c] ss:$16 sps:$4 sm:$0xff]  }
 0x1cf   : > { %3579 = vmatprep.subr.bf16.mxu0 %v6880_v14  ;;  %3965 = vmatprep.subr.bf16.mxu1 %v6883_v20  ;;  %v6902_v20 = vld [vmem:[#allocation5 + $0x140] ss:$16 sps:$4 sm:$0xff]  }
 0x1d0   : > { %2133 = vmatmul.mubr.bf16.gmra.mrb[76].mxu0 %v1037_v9  ;;  %2519 = vmatmul.mubr.bf16.gmra.mrb[76].mxu1 %v1037_v9  ;;  %v1045_v14 = vmax.bf16 %v8954_v46, %v8976_v12  ;;  %v8977_v9 = vpack.c.bf16 %v7666_v42, %v7659_v21  ;;  %v6920_v21 = vld [vmem:[#allocation5 + $0x1a0] ss:$16 sps:$4 sm:$0xff]   ;;  %v6923_v42 = vld [vmem:[#allocation5 + $0x1a8] ss:$16 sps:$4 sm:$0xff]  }
 0x1d1   : > { %2142 = vmatprep.mubr.bf16.mxu0 %v1042_v22  ;;  %2528 = vmatprep.mubr.bf16.mxu1 %v1042_v22  ;;  %v6910_v22 = vld [vmem:[#allocation5 + $0x164] ss:$16 sps:$4 sm:$0xff]  }
 0x1d2   : > { %3580 = vmatpush1.bf16.msra.mxu0 %v6878_v39  ;;  %3966 = vmatpush1.bf16.msra.mxu1 %v6881_v18  ;;  %v1054_v39 = vmax.bf16 %v8954_v46, %v8977_v9  ;;  %v8978_v18 = vpack.c.bf16 %v7640_v7, %v7634_v2  ;;  %v6928_v2 = vld [vmem:[#allocation5 + $0x1c4] ss:$16 sps:$4 sm:$0xff]   ;;  %v6931_v7 = vld [vmem:[#allocation5 + $0x1cc] ss:$16 sps:$4 sm:$0xff]  }
 0x1d3   : > { %3581 = vmatprep.subr.bf16.mxu0 %v6886_v28  ;;  %3967 = vmatprep.subr.bf16.mxu1 %v6889_v40  ;;  %v6914_v40 = vld [vmem:[#allocation5 + $0x180] ss:$16 sps:$4 sm:$0xff]  }
 0x1d4   : > { %v1049_v28 = vmax.bf16 %v8954_v46, %v8978_v18  ;;  %v9000_v18 = vld [vmem:[#allocation25_spill] sm:$0xff] }
 0x1d6   : > { %3582 = vmatpush1.bf16.msra.mxu0 %v6884_v52  ;;  %3968 = vmatpush1.bf16.msra.mxu1 %v6887_v5  ;;  %v6917_v52 = vld [vmem:[#allocation5 + $0x188] ss:$16 sps:$4 sm:$0xff]   ;;  %v6922_v5 = vld [vmem:[#allocation5 + $0x1a4] ss:$16 sps:$4 sm:$0xff]  }
 0x1d7   : > { %3583 = vmatprep.subr.bf16.mxu0 %v6892_v59  ;;  %3969 = vmatprep.subr.bf16.mxu1 %v6895_v3  ;;  %v6925_v59 = vld [vmem:[#allocation5 + $0x1ac] ss:$16 sps:$4 sm:$0xff]   ;;  %v8979_v3 = vpack.c.bf16 %v7688_v13, %v7681_v58  ;;  %v8981_v58 = vpack.c.bf16 %v7710_v45, %v7703_v15 }
 0x1d8   : > { %2143 = vmatmul.mubr.bf16.gmra.mrb[80].mxu0 %v1041_v6  ;;  %2529 = vmatmul.mubr.bf16.gmra.mrb[80].mxu1 %v1041_v6  ;;  %v6926_v6 = vld [vmem:[#allocation5 + $0x1c0] ss:$16 sps:$4 sm:$0xff]  }
 0x1d9   : > { %2152 = vmatprep.mubr.bf16.mxu0 %v1046_v25  ;;  %2538 = vmatprep.mubr.bf16.mxu1 %v1046_v25  ;;  %v1058_v47 = vmax.bf16 %v8954_v46, %v8979_v3  ;;  %v8980_v25 = vpack.c.bf16 %v7662_v51, %v7656_v27  ;;  %v1062_v13 = vmax.bf16 %v8954_v46, %v8981_v58 }
 0x1da   : > { %3584 = vmatpush1.bf16.msra.mxu0 %v6890_v11  ;;  %3970 = vmatpush1.bf16.msra.mxu1 %v6893_v53  ;;  %v6929_v11 = vld [vmem:[#allocation5 + $0x1c8] ss:$16 sps:$4 sm:$0xff]   ;;  %v8982_v27 = vpack.c.bf16 %v7684_v50, %v7678_v23  ;;  %v8983_v53 = vpack.c.bf16 %v7732_v60, %v7725_v41  ;;  %v8986_v23 = vld [vmem:[#allocation24_spill] sm:$0xff]  ;;  %v8987_v50 = vld [vmem:[#allocation22_spill] sm:$0xff] }
 0x1db   : > { %3585 = vmatprep.subr.bf16.mxu0 %v6898_v8  ;;  %3971 = vmatprep.subr.bf16.mxu1 %v6901_v26  ;;  %v1053_v57 = vmax.bf16 %v8954_v46, %v8980_v25  ;;  %v8984_v26 = vld [vmem:[#allocation18_spill] sm:$0xff]  ;;  %v8988_v45 = vpack.c.bf16 %v8986_v23, %v8987_v50 }
 0x1dc   : > { %v1057_v51 = vmax.bf16 %v8954_v46, %v8982_v27  ;;  %v1066_v8 = vmax.bf16 %v8954_v46, %v8983_v53  ;;  %v8993_v60 = vld [vmem:[#allocation26_spill] sm:$0xff] }
 0x1de   : > { %3586 = vmatpush1.bf16.msra.mxu0 %v6896_v54  ;;  %3972 = vmatpush1.bf16.msra.mxu1 %v6899_v10  ;;  %v8985_v54 = vpack.c.bf16 %v7706_v34, %v8984_v26  ;;  %v1070_v10 = vmax.bf16 %v8954_v46, %v8988_v45  ;;  %v8992_v34 = vld [vmem:[#allocation28_spill] sm:$0xff] }
 0x1df   : > { %3587 = vmatprep.subr.bf16.mxu0 %v6904_v49  ;;  %3973 = vmatprep.subr.bf16.mxu1 %v6907_v56  ;;  %v8989_v49 = vld [vmem:[#allocation20_spill] sm:$0xff]  ;;  %v8990_v56 = vld [vmem:[#allocation19_spill] sm:$0xff] }
 0x1e0   : > { %2153 = vmatmul.mubr.bf16.gmra.mrb[84].mxu0 %v1045_v14  ;;  %2539 = vmatmul.mubr.bf16.gmra.mrb[84].mxu1 %v1045_v14  ;;  %v1061_v15 = vmax.bf16 %v8954_v46, %v8985_v54  ;;  %v8991_v35 = vpack.c.bf16 %v8989_v49, %v8990_v56  ;;  %v8995_v14 = vld [vmem:[#allocation23_spill] sm:$0xff]  ;;  %v6938_v49 = vld [vmem:[#allocation5 + $0x200] ss:$16 sps:$4 sm:$0xff]  }
 0x1e1   : > { %2162 = vmatprep.mubr.bf16.mxu0 %v1050_v1  ;;  %2548 = vmatprep.mubr.bf16.mxu1 %v1050_v1  ;;  %v8994_v1 = vpack.c.bf16 %v8992_v34, %v8993_v60  ;;  %v6941_v56 = vld [vmem:[#allocation5 + $0x208] ss:$16 sps:$4 sm:$0xff]   ;;  %v6946_v60 = vld [vmem:[#allocation5 + $0x224] ss:$16 sps:$4 sm:$0xff]  }
 0x1e2   : > { %3588 = vmatpush1.bf16.msra.mxu0 %v6902_v20  ;;  %3974 = vmatpush1.bf16.msra.mxu1 %v6905_v19  ;;  %v1065_v41 = vmax.bf16 %v8954_v46, %v8991_v35  ;;  %v8996_v20 = vld [vmem:[#allocation21_spill] sm:$0xff] }
 0x1e3   : > { %3589 = vmatprep.subr.bf16.mxu0 %v6910_v22  ;;  %3975 = vmatprep.subr.bf16.mxu1 %v6913_v32  ;;  %v1074_v12 = vmax.bf16 %v8954_v46, %v8994_v1  ;;  %v8997_v19 = vpack.c.bf16 %v8995_v14, %v8996_v20  ;;  %v6934_v32 = vld [vmem:[#allocation5 + $0x1e4] ss:$16 sps:$4 sm:$0xff]   ;;  %v6949_v1 = vld [vmem:[#allocation5 + $0x22c] ss:$16 sps:$4 sm:$0xff]  }
 0x1e5   : > { %v1069_v22 = vmax.bf16 %v8954_v46, %v8997_v19 }
 0x1e6   : > { %3590 = vmatpush1.bf16.msra.mxu0 %v6908_v16  ;;  %3976 = vmatpush1.bf16.msra.mxu1 %v6911_v36  ;;  %v6937_v16 = vld [vmem:[#allocation5 + $0x1ec] ss:$16 sps:$4 sm:$0xff]   ;;  %v6932_v36 = vld [vmem:[#allocation5 + $0x1e0] ss:$16 sps:$4 sm:$0xff]  }
 0x1e7   : > { %3591 = vmatprep.subr.bf16.mxu0 %v6916_v48  ;;  %3977 = vmatprep.subr.bf16.mxu1 %v6919_v61  ;;  %v6935_v48 = vld [vmem:[#allocation5 + $0x1e8] ss:$16 sps:$4 sm:$0xff]   ;;  %v8998_v61 = vpack.c.bf16 %v7798_v30, %v7791_v31  ;;  %v1082_v31 = vmax.bf16 %v8954_v46, %v1018_v0  ;;  %v9004_v0 = vld [vmem:[#allocation14_spill] sm:$0xff] }
 0x1e8   : > { %2163 = vmatmul.mubr.bf16.gmra.mrb[88].mxu0 %v1049_v28  ;;  %2549 = vmatmul.mubr.bf16.gmra.mrb[88].mxu1 %v1049_v28  ;;  %v9002_v30 = vld [vmem:[#allocation29_spill] sm:$0xff]  ;;  %v7975_v62 = vrot.slane %v1215_v44, %v9004_v0 }
 0x1e9   : > { %2172 = vmatprep.mubr.bf16.mxu0 %v1054_v39  ;;  %2558 = vmatprep.mubr.bf16.mxu1 %v1054_v39  ;;  %v1078_v9 = vmax.bf16 %v8954_v46, %v8998_v61  ;;  %v8999_v39 = vld [vmem:[#allocation27_spill] sm:$0xff] }
 0x1ea   : > { %3592 = vmatpush1.bf16.msra.mxu0 %v6914_v40  ;;  %3978 = vmatpush1.bf16.msra.mxu1 %v6917_v52  ;;  %v9001_v28 = vpack.c.bf16 %v8999_v39, %v9000_v18  ;;  %v6940_v52 = vld [vmem:[#allocation5 + $0x204] ss:$16 sps:$4 sm:$0xff]   ;;  %v6944_v18 = vld [vmem:[#allocation5 + $0x220] ss:$16 sps:$4 sm:$0xff]  }
 0x1eb   : > { %3593 = vmatprep.subr.bf16.mxu0 %v6922_v5  ;;  %3979 = vmatprep.subr.bf16.mxu1 %v6925_v59  ;;  %v6943_v5 = vld [vmem:[#allocation5 + $0x20c] ss:$16 sps:$4 sm:$0xff]   ;;  %v9003_v59 = vpack.c.bf16 %v7794_v29, %v9002_v30  ;;  %v1085_v29 = vmax.bf16 %v8954_v46, %v1021_v55 }
 0x1ec   : > { %v1073_v40 = vmax.bf16 %v8954_v46, %v9001_v28  ;;  %v6947_v28 = vld [vmem:[#allocation5 + $0x228] ss:$16 sps:$4 sm:$0xff]  }
 0x1ee   : > { %3594 = vmatpush1.bf16.msra.mxu0 %v6920_v21  ;;  %3980 = vmatpush1.bf16.msra.mxu1 %v6923_v42  ;;  %v1077_v21 = vmax.bf16 %v8954_v46, %v9003_v59  ;;  %v1086_v42 = vmax.bf16 %v8954_v46, %v1022_v43  ;;  %v9006_v43 = vld [vmem:[#allocation15_spill] sm:$0xff] }
 0x1ef   : > { %3595 = vmatprep.subr.bf16.mxu0 %v6928_v2  ;;  %3981 = vmatprep.subr.bf16.mxu1 %v6931_v7  ;;  %v7981_v2 = vrot.slane %v1215_v44, %v9006_v43  ;;  %v6953_v44 = vld [vmem:[#allocation5 + $0x248] ss:$16 sps:$4 sm:$0xff]  }
 0x1f0   : > { %2173 = vmatmul.mubr.bf16.gmra.mrb[92].mxu0 %v1053_v57  ;;  %2559 = vmatmul.mubr.bf16.gmra.mrb[92].mxu1 %v1053_v57 }
 0x1f1   : > { %2182 = vmatprep.mubr.bf16.mxu0 %v1058_v47  ;;  %2568 = vmatprep.mubr.bf16.mxu1 %v1058_v47 }
 0x1f2   : > { %3596 = vmatpush1.bf16.msra.mxu0 %v6926_v6  ;;  %3982 = vmatpush1.bf16.msra.mxu1 %v6929_v11 }
 0x1f3   : > { %3597 = vmatprep.subr.bf16.mxu0 %v6934_v32  ;;  %3983 = vmatprep.subr.bf16.mxu1 %v6937_v16 }
 0x1f6   : > { %3598 = vmatpush1.bf16.msra.mxu0 %v6932_v36  ;;  %3984 = vmatpush1.bf16.msra.mxu1 %v6935_v48 }
 0x1f7   : > { %3760 = vmatprep.subr.bf16.mxu0 %v6940_v52  ;;  %4146 = vmatprep.subr.bf16.mxu1 %v6943_v5  ;;  %v6952_v5 = vld [vmem:[#allocation5 + $0x244] ss:$16 sps:$4 sm:$0xff]  }
 0x1f8   : > { %2183 = vmatmul.mubr.bf16.gmra.mrb[96].mxu0 %v1057_v51  ;;  %2569 = vmatmul.mubr.bf16.gmra.mrb[96].mxu1 %v1057_v51 }
 0x1f9   : > { %2192 = vmatprep.mubr.bf16.mxu0 %v1062_v13  ;;  %2578 = vmatprep.mubr.bf16.mxu1 %v1062_v13 }
 0x200   : > { %2193 = vmatmul.mubr.bf16.gmra.mrb[100].mxu0 %v1061_v15  ;;  %2579 = vmatmul.mubr.bf16.gmra.mrb[100].mxu1 %v1061_v15 }
 0x201   : > { %2202 = vmatprep.mubr.bf16.mxu0 %v1066_v8  ;;  %2588 = vmatprep.mubr.bf16.mxu1 %v1066_v8 }
 0x208   : > { %2203 = vmatmul.mubr.bf16.gmra.mrb[104].mxu0 %v1065_v41  ;;  %2589 = vmatmul.mubr.bf16.gmra.mrb[104].mxu1 %v1065_v41 }
 0x209   : > { %2212 = vmatprep.mubr.bf16.mxu0 %v1070_v10  ;;  %2598 = vmatprep.mubr.bf16.mxu1 %v1070_v10 }
 0x210   : > { %2213 = vmatmul.mubr.bf16.gmra.mrb[108].mxu0 %v1069_v22  ;;  %2599 = vmatmul.mubr.bf16.gmra.mrb[108].mxu1 %v1069_v22 }
 0x211   : > { %2222 = vmatprep.mubr.bf16.mxu0 %v1074_v12  ;;  %2608 = vmatprep.mubr.bf16.mxu1 %v1074_v12 }
 0x218   : > { %2223 = vmatmul.mubr.bf16.gmra.mrb[112].mxu0 %v1073_v40  ;;  %2609 = vmatmul.mubr.bf16.gmra.mrb[112].mxu1 %v1073_v40 }
 0x219   : > { %2232 = vmatprep.mubr.bf16.mxu0 %v1078_v9  ;;  %2618 = vmatprep.mubr.bf16.mxu1 %v1078_v9 }
 0x220   : > { %2233 = vmatmul.mubr.bf16.gmra.mrb[116].mxu0 %v1077_v21  ;;  %2619 = vmatmul.mubr.bf16.gmra.mrb[116].mxu1 %v1077_v21 }
 0x221   : > { %2242 = vmatprep.mubr.bf16.mxu0 %v1082_v31  ;;  %2628 = vmatprep.mubr.bf16.mxu1 %v1082_v31  ;;  %v6955_v31 = vld [vmem:[#allocation5 + $0x24c] ss:$16 sps:$4 sm:$0xff]  }
 0x228   : > { %2243 = vmatmul.mubr.bf16.gmra.mrb[120].mxu0 %v1081_v38  ;;  %2629 = vmatmul.mubr.bf16.gmra.mrb[120].mxu1 %v1081_v38 }
 0x229   : > { %2252 = vmatprep.mubr.bf16.mxu0 %v1086_v42  ;;  %2638 = vmatprep.mubr.bf16.mxu1 %v1086_v42 }
 0x230   : > { %2253 = vmatmul.mubr.bf16.gmra.mrb[124].mxu0 %v1085_v29  ;;  %2639 = vmatmul.mubr.bf16.gmra.mrb[124].mxu1 %v1085_v29  ;;  %v6950_v29 = vld [vmem:[#allocation5 + $0x240] ss:$16 sps:$4 sm:$0xff]  }
 0x28b   : > { %v2104_v4 = vpop.f32.mrb[64].mxu0  ;;  %v2490_v37 = vpop.f32.mrb[64].mxu1 }
 0x28c   : > { %v2106_v55 = vpop.f32.mrb[65].mxu0  ;;  %v2492_v7 = vpop.f32.mrb[65].mxu1  ;;  %v6053_v25 = vadd.f32 %v2104_v4, %v7975_v62  ;;  %v7988_v57 = vadd.f32 %v2490_v37, %v7978_v33 }
 0x28d   : > { %v2108_v3 = vpop.f32.mrb[66].mxu0  ;;  %v2494_v47 = vpop.f32.mrb[66].mxu1  ;;  %v6054_v27 = vadd.f32 %v2106_v55, %v7981_v2  ;;  %v7996_v51 = vadd.f32 %v2492_v7, %v7984_v63  ;;  %v6958_v7 = vld [vmem:[#allocation5 + $0x264] ss:$16 sps:$4 sm:$0xff]  }
 0x28e   : > { %v6055_v6 = vadd.f32 %v2108_v3, %v7975_v62  ;;  %v7992_v11 = vadd.f32 %v2494_v47, %v7978_v33  ;;  %v2110_v58 = vpop.f32.mrb[67].mxu0  ;;  %v2496_v13 = vpop.f32.mrb[67].mxu1  ;;  %v6961_v3 = vld [vmem:[#allocation5 + $0x26c] ss:$16 sps:$4 sm:$0xff]  }
 0x28f   : > { %v6056_v53 = vadd.f32 %v2110_v58, %v7981_v2  ;;  %v8000_v8 = vadd.f32 %v2496_v13, %v7984_v63 }
 0x290   : > { %v2649_v26 = vpack.c.bf16 %v6055_v6, %v6053_v25 }
 0x291   : > { %v2650_v15 = vpack.c.bf16 %v6056_v53, %v6054_v27 }
 0x292   : > { %v2713_v35 = vmax.bf16 %v8954_v46, %v2649_v26 }
 0x293   : > { %v2114_v50 = vpop.f32.mrb[68].mxu0  ;;  %v2500_v45 = vpop.f32.mrb[68].mxu1  ;;  %v2714_v10 = vmax.bf16 %v8954_v46, %v2650_v15 }
 0x294   : > { %v2116_v41 = vpop.f32.mrb[69].mxu0  ;;  %v2502_v34 = vpop.f32.mrb[69].mxu1  ;;  %v6057_v12 = vadd.f32 %v2114_v50, %v7975_v62  ;;  %v8010_v14 = vadd.f32 %v2500_v45, %v7978_v33 }
 0x295   : > { %v2118_v20 = vpop.f32.mrb[70].mxu0  ;;  %v2504_v19 = vpop.f32.mrb[70].mxu1  ;;  %3599 = vmatprep.mubr.bf16.mxu0 %v2714_v10  ;;  %3985 = vmatprep.mubr.bf16.mxu1 %v2714_v10  ;;  %v6058_v22 = vadd.f32 %v2116_v41, %v7981_v2  ;;  %v8018_v61 = vadd.f32 %v2502_v34, %v7984_v63  ;;  %v6964_v34 = vld [vmem:[#allocation5 + $0x284] ss:$16 sps:$4 sm:$0xff]  }
 0x296   : > { %v6059_v32 = vadd.f32 %v2118_v20, %v7975_v62  ;;  %v8015_v16 = vadd.f32 %v2504_v19, %v7978_v33  ;;  %v2120_v36 = vpop.f32.mrb[71].mxu0  ;;  %v2506_v48 = vpop.f32.mrb[71].mxu1  ;;  %3600 = vmatmul.mubr.bf16.vlgmr.msra.gmra.mrb[128].mxu0 %v2713_v35  ;;  %3986 = vmatmul.mubr.bf16.vlgmr.msra.gmra.mrb[128].mxu1 %v2713_v35 }
 0x297   : > { %v6060_v9 = vadd.f32 %v2120_v36, %v7981_v2  ;;  %v8022_v39 = vadd.f32 %v2506_v48, %v7984_v63  ;;  %3761 = vmatpush1.bf16.msra.mxu0 %v6938_v49  ;;  %4147 = vmatpush1.bf16.msra.mxu1 %v6941_v56  ;;  %v6956_v49 = vld [vmem:[#allocation5 + $0x260] ss:$16 sps:$4 sm:$0xff]   ;;  %v6959_v56 = vld [vmem:[#allocation5 + $0x268] ss:$16 sps:$4 sm:$0xff]  }
 0x298   : > { %v2653_v40 = vpack.c.bf16 %v6059_v32, %v6057_v12  ;;  %3762 = vmatprep.subr.bf16.mxu0 %v6946_v60  ;;  %4148 = vmatprep.subr.bf16.mxu1 %v6949_v1  ;;  %v6967_v60 = vld [vmem:[#allocation5 + $0x28c] ss:$16 sps:$4 sm:$0xff]   ;;  %v6962_v32 = vld [vmem:[#allocation5 + $0x280] ss:$16 sps:$4 sm:$0xff]   ;;  %v6965_v36 = vld [vmem:[#allocation5 + $0x288] ss:$16 sps:$4 sm:$0xff]  }
 0x299   : > { %v2654_v30 = vpack.c.bf16 %v6060_v9, %v6058_v22 }
 0x29a   : > { %v2717_v55 = vmax.bf16 %v8954_v46, %v2653_v40  ;;  %v6973_v40 = vld [vmem:[#allocation5 + $0x2ac] ss:$16 sps:$4 sm:$0xff]  }
 0x29b   : > { %v2124_v21 = vpop.f32.mrb[72].mxu0  ;;  %v2510_v42 = vpop.f32.mrb[72].mxu1  ;;  %v2718_v38 = vmax.bf16 %v8954_v46, %v2654_v30  ;;  %3763 = vmatpush1.bf16.msra.mxu0 %v6944_v18  ;;  %4149 = vmatpush1.bf16.msra.mxu1 %v6947_v28  ;;  %v6970_v28 = vld [vmem:[#allocation5 + $0x2a4] ss:$16 sps:$4 sm:$0xff]  }
 0x29c   : > { %v2126_v4 = vpop.f32.mrb[73].mxu0  ;;  %v2512_v37 = vpop.f32.mrb[73].mxu1  ;;  %3764 = vmatprep.subr.bf16.mxu0 %v6952_v5  ;;  %4150 = vmatprep.subr.bf16.mxu1 %v6955_v31  ;;  %v6061_v47 = vadd.f32 %v2124_v21, %v7975_v62  ;;  %v8032_v25 = vadd.f32 %v2510_v42, %v7978_v33 }
 0x29d   : > { %v2128_v6 = vpop.f32.mrb[74].mxu0  ;;  %v2514_v58 = vpop.f32.mrb[74].mxu1  ;;  %3609 = vmatprep.mubr.bf16.mxu0 %v2718_v38  ;;  %3995 = vmatprep.mubr.bf16.mxu1 %v2718_v38  ;;  %v6062_v13 = vadd.f32 %v2126_v4, %v7981_v2  ;;  %v8040_v50 = vadd.f32 %v2512_v37, %v7984_v63 }
 0x29e   : > { %v6063_v27 = vadd.f32 %v2128_v6, %v7975_v62  ;;  %v8037_v53 = vadd.f32 %v2514_v58, %v7978_v33  ;;  %v2130_v26 = vpop.f32.mrb[75].mxu0  ;;  %v2516_v15 = vpop.f32.mrb[75].mxu1  ;;  %3610 = vmatmul.mubr.bf16.gmra.mrb[132].mxu0 %v2717_v55  ;;  %3996 = vmatmul.mubr.bf16.gmra.mrb[132].mxu1 %v2717_v55 }
 0x29f   : > { %v6064_v45 = vadd.f32 %v2130_v26, %v7981_v2  ;;  %v8044_v10 = vadd.f32 %v2516_v15, %v7984_v63  ;;  %3765 = vmatpush1.bf16.msra.mxu0 %v6950_v29  ;;  %4151 = vmatpush1.bf16.msra.mxu1 %v6953_v44  ;;  %v7024_v15 = vld [vmem:[#allocation5 + $0x3c4] ss:$16 sps:$4 sm:$0xff]  }
 0x2a0   : > { %v2657_v35 = vpack.c.bf16 %v6063_v27, %v6061_v47  ;;  %3766 = vmatprep.subr.bf16.mxu0 %v6958_v7  ;;  %4152 = vmatprep.subr.bf16.mxu1 %v6961_v3  ;;  %v6968_v3 = vld [vmem:[#allocation5 + $0x2a0] ss:$16 sps:$4 sm:$0xff]   ;;  %v6971_v47 = vld [vmem:[#allocation5 + $0x2a8] ss:$16 sps:$4 sm:$0xff]   ;;  %v6979_v27 = vld [vmem:[#allocation5 + $0x2cc] ss:$16 sps:$4 sm:$0xff]  }
 0x2a1   : > { %v2658_v1 = vpack.c.bf16 %v6064_v45, %v6062_v13  ;;  %v6976_v13 = vld [vmem:[#allocation5 + $0x2c4] ss:$16 sps:$4 sm:$0xff]  }
 0x2a2   : > { %v2721_v18 = vmax.bf16 %v8954_v46, %v2657_v35  ;;  %v6974_v35 = vld [vmem:[#allocation5 + $0x2c0] ss:$16 sps:$4 sm:$0xff]  }
 0x2a3   : > { %v2134_v20 = vpop.f32.mrb[76].mxu0  ;;  %v2520_v19 = vpop.f32.mrb[76].mxu1  ;;  %v2722_v22 = vmax.bf16 %v8954_v46, %v2658_v1  ;;  %3767 = vmatpush1.bf16.msra.mxu0 %v6956_v49  ;;  %4153 = vmatpush1.bf16.msra.mxu1 %v6959_v56 }
 0x2a4   : > { %v2136_v48 = vpop.f32.mrb[77].mxu0  ;;  %v2522_v9 = vpop.f32.mrb[77].mxu1  ;;  %3768 = vmatprep.subr.bf16.mxu0 %v6964_v34  ;;  %4154 = vmatprep.subr.bf16.mxu1 %v6967_v60  ;;  %v6065_v5 = vadd.f32 %v2134_v20, %v7975_v62  ;;  %v8054_v31 = vadd.f32 %v2520_v19, %v7978_v33  ;;  %v6977_v34 = vld [vmem:[#allocation5 + $0x2c8] ss:$16 sps:$4 sm:$0xff]   ;;  %v6982_v19 = vld [vmem:[#allocation5 + $0x2e4] ss:$16 sps:$4 sm:$0xff]  }
 0x2a5   : > { %v2138_v30 = vpop.f32.mrb[78].mxu0  ;;  %v2524_v21 = vpop.f32.mrb[78].mxu1  ;;  %3619 = vmatprep.mubr.bf16.mxu0 %v2722_v22  ;;  %4005 = vmatprep.mubr.bf16.mxu1 %v2722_v22  ;;  %v6066_v42 = vadd.f32 %v2136_v48, %v7981_v2  ;;  %v8062_v37 = vadd.f32 %v2522_v9, %v7984_v63  ;;  %v6985_v22 = vld [vmem:[#allocation5 + $0x2ec] ss:$16 sps:$4 sm:$0xff]  }
 0x2a6   : > { %v6067_v38 = vadd.f32 %v2138_v30, %v7975_v62  ;;  %v8059_v29 = vadd.f32 %v2524_v21, %v7978_v33  ;;  %v2140_v44 = vpop.f32.mrb[79].mxu0  ;;  %v2526_v4 = vpop.f32.mrb[79].mxu1  ;;  %3620 = vmatmul.mubr.bf16.gmra.mrb[136].mxu0 %v2721_v18  ;;  %4006 = vmatmul.mubr.bf16.gmra.mrb[136].mxu1 %v2721_v18 }
 0x2a7   : > { %v6068_v55 = vadd.f32 %v2140_v44, %v7981_v2  ;;  %v8066_v7 = vadd.f32 %v2526_v4, %v7984_v63  ;;  %3769 = vmatpush1.bf16.msra.mxu0 %v6962_v32  ;;  %4155 = vmatpush1.bf16.msra.mxu1 %v6965_v36  ;;  %v6980_v44 = vld [vmem:[#allocation5 + $0x2e0] ss:$16 sps:$4 sm:$0xff]   ;;  %v6983_v4 = vld [vmem:[#allocation5 + $0x2e8] ss:$16 sps:$4 sm:$0xff]  }
 0x2a8   : > { %v2661_v6 = vpack.c.bf16 %v6067_v38, %v6065_v5  ;;  %3770 = vmatprep.subr.bf16.mxu0 %v6970_v28  ;;  %4156 = vmatprep.subr.bf16.mxu1 %v6973_v40 }
 0x2a9   : > { %v2662_v26 = vpack.c.bf16 %v6068_v55, %v6066_v42 }
 0x2aa   : > { %v2725_v20 = vmax.bf16 %v8954_v46, %v2661_v6  ;;  %v6991_v6 = vld [vmem:[#allocation5 + $0x30c] ss:$16 sps:$4 sm:$0xff]  }
 0x2ab   : > { %v2144_v45 = vpop.f32.mrb[80].mxu0  ;;  %v2530_v49 = vpop.f32.mrb[80].mxu1  ;;  %v2726_v56 = vmax.bf16 %v8954_v46, %v2662_v26  ;;  %3771 = vmatpush1.bf16.msra.mxu0 %v6968_v3  ;;  %4157 = vmatpush1.bf16.msra.mxu1 %v6971_v47  ;;  %v6988_v47 = vld [vmem:[#allocation5 + $0x304] ss:$16 sps:$4 sm:$0xff]  }
 0x2ac   : > { %v2146_v60 = vpop.f32.mrb[81].mxu0  ;;  %v2532_v1 = vpop.f32.mrb[81].mxu1  ;;  %3772 = vmatprep.subr.bf16.mxu0 %v6976_v13  ;;  %4158 = vmatprep.subr.bf16.mxu1 %v6979_v27  ;;  %v6069_v32 = vadd.f32 %v2144_v45, %v7975_v62  ;;  %v8076_v36 = vadd.f32 %v2530_v49, %v7978_v33 }
 0x2ad   : > { %v2148_v48 = vpop.f32.mrb[82].mxu0  ;;  %v2534_v9 = vpop.f32.mrb[82].mxu1  ;;  %3629 = vmatprep.mubr.bf16.mxu0 %v2726_v56  ;;  %4015 = vmatprep.mubr.bf16.mxu1 %v2726_v56  ;;  %v6070_v18 = vadd.f32 %v2146_v60, %v7981_v2  ;;  %v8084_v21 = vadd.f32 %v2532_v1, %v7984_v63  ;;  %v6986_v56 = vld [vmem:[#allocation5 + $0x300] ss:$16 sps:$4 sm:$0xff]  }
 0x2ae   : > { %v6071_v28 = vadd.f32 %v2148_v48, %v7975_v62  ;;  %v8081_v40 = vadd.f32 %v2534_v9, %v7978_v33  ;;  %v2150_v5 = vpop.f32.mrb[83].mxu0  ;;  %v2536_v30 = vpop.f32.mrb[83].mxu1  ;;  %3630 = vmatmul.mubr.bf16.gmra.mrb[140].mxu0 %v2725_v20  ;;  %4016 = vmatmul.mubr.bf16.gmra.mrb[140].mxu1 %v2725_v20  ;;  %v6994_v20 = vld [vmem:[#allocation5 + $0x324] ss:$16 sps:$4 sm:$0xff]  }
 0x2af   : > { %v6072_v42 = vadd.f32 %v2150_v5, %v7981_v2  ;;  %v8088_v38 = vadd.f32 %v2536_v30, %v7984_v63  ;;  %3773 = vmatpush1.bf16.msra.mxu0 %v6974_v35  ;;  %4159 = vmatpush1.bf16.msra.mxu1 %v6977_v34  ;;  %v6989_v35 = vld [vmem:[#allocation5 + $0x308] ss:$16 sps:$4 sm:$0xff]  }
 0x2b0   : > { %v2665_v55 = vpack.c.bf16 %v6071_v28, %v6069_v32  ;;  %3774 = vmatprep.subr.bf16.mxu0 %v6982_v19  ;;  %4160 = vmatprep.subr.bf16.mxu1 %v6985_v22  ;;  %v6997_v19 = vld [vmem:[#allocation5 + $0x32c] ss:$16 sps:$4 sm:$0xff]  }
 0x2b1   : > { %v2666_v13 = vpack.c.bf16 %v6072_v42, %v6070_v18 }
 0x2b2   : > { %v2729_v1 = vmax.bf16 %v8954_v46, %v2665_v55 }
 0x2b3   : > { %v2154_v26 = vpop.f32.mrb[84].mxu0  ;;  %v2540_v45 = vpop.f32.mrb[84].mxu1  ;;  %v2730_v49 = vmax.bf16 %v8954_v46, %v2666_v13  ;;  %3775 = vmatpush1.bf16.msra.mxu0 %v6980_v44  ;;  %4161 = vmatpush1.bf16.msra.mxu1 %v6983_v4 }
 0x2b4   : > { %v2156_v34 = vpop.f32.mrb[85].mxu0  ;;  %v2542_v60 = vpop.f32.mrb[85].mxu1  ;;  %3776 = vmatprep.subr.bf16.mxu0 %v6988_v47  ;;  %4162 = vmatprep.subr.bf16.mxu1 %v6991_v6  ;;  %v6073_v22 = vadd.f32 %v2154_v26, %v7975_v62  ;;  %v8098_v32 = vadd.f32 %v2540_v45, %v7978_v33  ;;  %v6992_v47 = vld [vmem:[#allocation5 + $0x320] ss:$16 sps:$4 sm:$0xff]   ;;  %v6995_v6 = vld [vmem:[#allocation5 + $0x328] ss:$16 sps:$4 sm:$0xff]  }
 0x2b5   : > { %v2158_v48 = vpop.f32.mrb[86].mxu0  ;;  %v2544_v9 = vpop.f32.mrb[86].mxu1  ;;  %3639 = vmatprep.mubr.bf16.mxu0 %v2730_v49  ;;  %4025 = vmatprep.mubr.bf16.mxu1 %v2730_v49  ;;  %v6074_v18 = vadd.f32 %v2156_v34, %v7981_v2  ;;  %v8106_v44 = vadd.f32 %v2542_v60, %v7984_v63  ;;  %v7000_v45 = vld [vmem:[#allocation5 + $0x344] ss:$16 sps:$4 sm:$0xff]   ;;  %v7003_v49 = vld [vmem:[#allocation5 + $0x34c] ss:$16 sps:$4 sm:$0xff]  }
 0x2b6   : > { %v6075_v28 = vadd.f32 %v2158_v48, %v7975_v62  ;;  %v8103_v5 = vadd.f32 %v2544_v9, %v7978_v33  ;;  %v2160_v30 = vpop.f32.mrb[87].mxu0  ;;  %v2546_v42 = vpop.f32.mrb[87].mxu1  ;;  %3640 = vmatmul.mubr.bf16.gmra.mrb[144].mxu0 %v2729_v1  ;;  %4026 = vmatmul.mubr.bf16.gmra.mrb[144].mxu1 %v2729_v1  ;;  %v7012_v60 = vld [vmem:[#allocation5 + $0x384] ss:$16 sps:$4 sm:$0xff]  }
 0x2b7   : > { %v6076_v4 = vadd.f32 %v2160_v30, %v7981_v2  ;;  %v8110_v55 = vadd.f32 %v2546_v42, %v7984_v63  ;;  %3777 = vmatpush1.bf16.msra.mxu0 %v6986_v56  ;;  %4163 = vmatpush1.bf16.msra.mxu1 %v6989_v35  ;;  %v6998_v56 = vld [vmem:[#allocation5 + $0x340] ss:$16 sps:$4 sm:$0xff]   ;;  %v7001_v35 = vld [vmem:[#allocation5 + $0x348] ss:$16 sps:$4 sm:$0xff]  }
 0x2b8   : > { %v2669_v13 = vpack.c.bf16 %v6075_v28, %v6073_v22  ;;  %3778 = vmatprep.subr.bf16.mxu0 %v6994_v20  ;;  %4164 = vmatprep.subr.bf16.mxu1 %v6997_v19  ;;  %v7006_v20 = vld [vmem:[#allocation5 + $0x364] ss:$16 sps:$4 sm:$0xff]   ;;  %v7009_v19 = vld [vmem:[#allocation5 + $0x36c] ss:$16 sps:$4 sm:$0xff]  }
 0x2b9   : > { %v2670_v34 = vpack.c.bf16 %v6076_v4, %v6074_v18 }
 0x2ba   : > { %v2733_v30 = vmax.bf16 %v8954_v46, %v2669_v13 }
 0x2bb   : > { %v2164_v1 = vpop.f32.mrb[88].mxu0  ;;  %v2550_v48 = vpop.f32.mrb[88].mxu1  ;;  %v2734_v9 = vmax.bf16 %v8954_v46, %v2670_v34  ;;  %3779 = vmatpush1.bf16.msra.mxu0 %v6992_v47  ;;  %4165 = vmatpush1.bf16.msra.mxu1 %v6995_v6 }
 0x2bc   : > { %v2166_v22 = vpop.f32.mrb[89].mxu0  ;;  %v2552_v28 = vpop.f32.mrb[89].mxu1  ;;  %3780 = vmatprep.subr.bf16.mxu0 %v7000_v45  ;;  %4166 = vmatprep.subr.bf16.mxu1 %v7003_v49  ;;  %v6077_v18 = vadd.f32 %v2164_v1, %v7975_v62  ;;  %v8120_v42 = vadd.f32 %v2550_v48, %v7978_v33 }
 0x2bd   : > { %v2168_v4 = vpop.f32.mrb[90].mxu0  ;;  %v2554_v26 = vpop.f32.mrb[90].mxu1  ;;  %3649 = vmatprep.mubr.bf16.mxu0 %v2734_v9  ;;  %4035 = vmatprep.mubr.bf16.mxu1 %v2734_v9  ;;  %v6078_v47 = vadd.f32 %v2166_v22, %v7981_v2  ;;  %v8128_v49 = vadd.f32 %v2552_v28, %v7984_v63  ;;  %v7004_v9 = vld [vmem:[#allocation5 + $0x360] ss:$16 sps:$4 sm:$0xff]   ;;  %v7007_v22 = vld [vmem:[#allocation5 + $0x368] ss:$16 sps:$4 sm:$0xff]  }
 0x2be   : > { %v6079_v6 = vadd.f32 %v2168_v4, %v7975_v62  ;;  %v8125_v34 = vadd.f32 %v2554_v26, %v7978_v33  ;;  %v2170_v13 = vpop.f32.mrb[91].mxu0  ;;  %v2556_v45 = vpop.f32.mrb[91].mxu1  ;;  %3650 = vmatmul.mubr.bf16.gmra.mrb[148].mxu0 %v2733_v30  ;;  %4036 = vmatmul.mubr.bf16.gmra.mrb[148].mxu1 %v2733_v30  ;;  %v7015_v30 = vld [vmem:[#allocation5 + $0x38c] ss:$16 sps:$4 sm:$0xff]  }
 0x2bf   : > { %v6080_v1 = vadd.f32 %v2170_v13, %v7981_v2  ;;  %v8132_v48 = vadd.f32 %v2556_v45, %v7984_v63  ;;  %3781 = vmatpush1.bf16.msra.mxu0 %v6998_v56  ;;  %4167 = vmatpush1.bf16.msra.mxu1 %v7001_v35  ;;  %v7010_v56 = vld [vmem:[#allocation5 + $0x380] ss:$16 sps:$4 sm:$0xff]   ;;  %v7013_v35 = vld [vmem:[#allocation5 + $0x388] ss:$16 sps:$4 sm:$0xff]  }
 0x2c0   : > { %v2673_v4 = vpack.c.bf16 %v6079_v6, %v6077_v18  ;;  %3782 = vmatprep.subr.bf16.mxu0 %v7006_v20  ;;  %4168 = vmatprep.subr.bf16.mxu1 %v7009_v19  ;;  %v7018_v20 = vld [vmem:[#allocation5 + $0x3a4] ss:$16 sps:$4 sm:$0xff]   ;;  %v7021_v19 = vld [vmem:[#allocation5 + $0x3ac] ss:$16 sps:$4 sm:$0xff]  }
 0x2c1   : > { %v2674_v3 = vpack.c.bf16 %v6080_v1, %v6078_v47 }
 0x2c2   : > { %v2737_v26 = vmax.bf16 %v8954_v46, %v2673_v4 }
 0x2c3   : > { %v2174_v13 = vpop.f32.mrb[92].mxu0  ;;  %v2560_v27 = vpop.f32.mrb[92].mxu1  ;;  %v2738_v45 = vmax.bf16 %v8954_v46, %v2674_v3  ;;  %3783 = vmatpush1.bf16.msra.mxu0 %v7004_v9  ;;  %4169 = vmatpush1.bf16.msra.mxu1 %v7007_v22 }
 0x2c4   : > { %v2176_v18 = vpop.f32.mrb[93].mxu0  ;;  %v2562_v6 = vpop.f32.mrb[93].mxu1  ;;  %3784 = vmatprep.subr.bf16.mxu0 %v7012_v60  ;;  %4170 = vmatprep.subr.bf16.mxu1 %v7015_v30  ;;  %v6081_v47 = vadd.f32 %v2174_v13, %v7975_v62  ;;  %v8142_v1 = vadd.f32 %v2560_v27, %v7978_v33 }
 0x2c5   : > { %v2178_v28 = vpop.f32.mrb[94].mxu0  ;;  %v2564_v58 = vpop.f32.mrb[94].mxu1  ;;  %3659 = vmatprep.mubr.bf16.mxu0 %v2738_v45  ;;  %4045 = vmatprep.mubr.bf16.mxu1 %v2738_v45  ;;  %v6082_v3 = vadd.f32 %v2176_v18, %v7981_v2  ;;  %v8150_v30 = vadd.f32 %v2562_v6, %v7984_v63  ;;  %v7016_v45 = vld [vmem:[#allocation5 + $0x3a0] ss:$16 sps:$4 sm:$0xff]   ;;  %v7019_v18 = vld [vmem:[#allocation5 + $0x3a8] ss:$16 sps:$4 sm:$0xff]  }
 0x2c6   : > { %v6083_v9 = vadd.f32 %v2178_v28, %v7975_v62  ;;  %v8147_v22 = vadd.f32 %v2564_v58, %v7978_v33  ;;  %v2180_v60 = vpop.f32.mrb[95].mxu0  ;;  %v2566_v4 = vpop.f32.mrb[95].mxu1  ;;  %3660 = vmatmul.mubr.bf16.gmra.mrb[152].mxu0 %v2737_v26  ;;  %4046 = vmatmul.mubr.bf16.gmra.mrb[152].mxu1 %v2737_v26  ;;  %v7027_v26 = vld [vmem:[#allocation5 + $0x3cc] ss:$16 sps:$4 sm:$0xff]  }
 0x2c7   : > { %v6084_v27 = vadd.f32 %v2180_v60, %v7981_v2  ;;  %v8154_v13 = vadd.f32 %v2566_v4, %v7984_v63  ;;  %3785 = vmatpush1.bf16.msra.mxu0 %v7010_v56  ;;  %4171 = vmatpush1.bf16.msra.mxu1 %v7013_v35  ;;  %v7022_v56 = vld [vmem:[#allocation5 + $0x3c0] ss:$16 sps:$4 sm:$0xff]   ;;  %v7025_v35 = vld [vmem:[#allocation5 + $0x3c8] ss:$16 sps:$4 sm:$0xff]  }
 0x2c8   : > { %v2677_v28 = vpack.c.bf16 %v6083_v9, %v6081_v47  ;;  %3786 = vmatprep.subr.bf16.mxu0 %v7018_v20  ;;  %4172 = vmatprep.subr.bf16.mxu1 %v7021_v19  ;;  %v7030_v20 = vld [vmem:[#allocation5 + $0x3e4] ss:$16 sps:$4 sm:$0xff]   ;;  %v7033_v19 = vld [vmem:[#allocation5 + $0x3ec] ss:$16 sps:$4 sm:$0xff]  }
 0x2c9   : > { %v2678_v41 = vpack.c.bf16 %v6084_v27, %v6082_v3 }
 0x2ca   : > { %v2741_v58 = vmax.bf16 %v8954_v46, %v2677_v28 }
 0x2cb   : > { %v2184_v60 = vpop.f32.mrb[96].mxu0  ;;  %v2570_v12 = vpop.f32.mrb[96].mxu1  ;;  %v2742_v4 = vmax.bf16 %v8954_v46, %v2678_v41  ;;  %3787 = vmatpush1.bf16.msra.mxu0 %v7016_v45  ;;  %4173 = vmatpush1.bf16.msra.mxu1 %v7019_v18 }
 0x2cc   : > { %v2186_v47 = vpop.f32.mrb[97].mxu0  ;;  %v2572_v9 = vpop.f32.mrb[97].mxu1  ;;  %3788 = vmatprep.subr.bf16.mxu0 %v7024_v15  ;;  %4174 = vmatprep.subr.bf16.mxu1 %v7027_v26  ;;  %v6085_v3 = vadd.f32 %v2184_v60, %v7975_v62  ;;  %v8164_v27 = vadd.f32 %v2570_v12, %v7978_v33 }
 0x2cd   : > { %v2188_v6 = vpop.f32.mrb[98].mxu0  ;;  %v2574_v52 = vpop.f32.mrb[98].mxu1  ;;  %3669 = vmatprep.mubr.bf16.mxu0 %v2742_v4  ;;  %4055 = vmatprep.mubr.bf16.mxu1 %v2742_v4  ;;  %v6086_v41 = vadd.f32 %v2186_v47, %v7981_v2  ;;  %v8172_v26 = vadd.f32 %v2572_v9, %v7984_v63  ;;  %v7028_v4 = vld [vmem:[#allocation5 + $0x3e0] ss:$16 sps:$4 sm:$0xff]   ;;  %v7031_v47 = vld [vmem:[#allocation5 + $0x3e8] ss:$16 sps:$4 sm:$0xff]  }
 0x2ce   : > { %v6087_v45 = vadd.f32 %v2188_v6, %v7975_v62  ;;  %v8169_v18 = vadd.f32 %v2574_v52, %v7978_v33  ;;  %v2190_v15 = vpop.f32.mrb[99].mxu0  ;;  %v2576_v28 = vpop.f32.mrb[99].mxu1  ;;  %3670 = vmatmul.mubr.bf16.gmra.mrb[156].mxu0 %v2741_v58  ;;  %4056 = vmatmul.mubr.bf16.gmra.mrb[156].mxu1 %v2741_v58 }
 0x2cf   : > { %v6088_v12 = vadd.f32 %v2190_v15, %v7981_v2  ;;  %v8176_v60 = vadd.f32 %v2576_v28, %v7984_v63  ;;  %3789 = vmatpush1.bf16.msra.mxu0 %v7022_v56  ;;  %4175 = vmatpush1.bf16.msra.mxu1 %v7025_v35 }
 0x2d0   : > { %v2681_v6 = vpack.c.bf16 %v6087_v45, %v6085_v3  ;;  %3790 = vmatprep.subr.bf16.mxu0 %v7030_v20  ;;  %4176 = vmatprep.subr.bf16.mxu1 %v7033_v19 }
 0x2d1   : > { %v2682_v59 = vpack.c.bf16 %v6088_v12, %v6086_v41 }
 0x2d2   : > { %v2745_v28 = vmax.bf16 %v8954_v46, %v2681_v6 }
 0x2d3   : > { %v2194_v9 = vpop.f32.mrb[100].mxu0  ;;  %v2580_v54 = vpop.f32.mrb[100].mxu1  ;;  %v2746_v15 = vmax.bf16 %v8954_v46, %v2682_v59  ;;  %3791 = vmatpush1.bf16.msra.mxu0 %v7028_v4  ;;  %4177 = vmatpush1.bf16.msra.mxu1 %v7031_v47 }
 0x2d4   : > { %v2196_v56 = vpop.f32.mrb[101].mxu0  ;;  %v2582_v35 = vpop.f32.mrb[101].mxu1  ;;  %v6089_v3 = vadd.f32 %v2194_v9, %v7975_v62  ;;  %v8186_v20 = vadd.f32 %v2580_v54, %v7978_v33 }
 0x2d5   : > { %v2198_v45 = vpop.f32.mrb[102].mxu0  ;;  %v2584_v52 = vpop.f32.mrb[102].mxu1  ;;  %3679 = vmatprep.mubr.bf16.mxu0 %v2746_v15  ;;  %4065 = vmatprep.mubr.bf16.mxu1 %v2746_v15  ;;  %v6090_v4 = vadd.f32 %v2196_v56, %v7981_v2  ;;  %v8194_v47 = vadd.f32 %v2582_v35, %v7984_v63 }
 0x2d6   : > { %9008 = vst [vmem:[#allocation18_spill] sm:$0xff] %v8186_v20  ;;  %v6091_v19 = vadd.f32 %v2198_v45, %v7975_v62  ;;  %v8190_v41 = vadd.f32 %v2584_v52, %v7978_v33  ;;  %v2200_v59 = vpop.f32.mrb[103].mxu0  ;;  %v2586_v12 = vpop.f32.mrb[103].mxu1  ;;  %3680 = vmatmul.mubr.bf16.gmra.mrb[160].mxu0 %v2745_v28  ;;  %4066 = vmatmul.mubr.bf16.gmra.mrb[160].mxu1 %v2745_v28 }
 0x2d7   : > { %v6092_v6 = vadd.f32 %v2200_v59, %v7981_v2  ;;  %v8198_v9 = vadd.f32 %v2586_v12, %v7984_v63 }
 0x2d8   : > { %9009 = vst [vmem:[#allocation24_spill] sm:$0xff] %v8190_v41  ;;  %v2685_v54 = vpack.c.bf16 %v6091_v19, %v6089_v3 }
 0x2d9   : > { %v2686_v52 = vpack.c.bf16 %v6092_v6, %v6090_v4 }
 0x2da   : > { %v2749_v17 = vmax.bf16 %v8954_v46, %v2685_v54 }
 0x2db   : > { %v2204_v58 = vpop.f32.mrb[104].mxu0  ;;  %v2590_v28 = vpop.f32.mrb[104].mxu1  ;;  %v2750_v56 = vmax.bf16 %v8954_v46, %v2686_v52 }
 0x2dc   : > { %v2206_v23 = vpop.f32.mrb[105].mxu0  ;;  %v2592_v35 = vpop.f32.mrb[105].mxu1  ;;  %v6093_v59 = vadd.f32 %v2204_v58, %v7975_v62  ;;  %v8208_v3 = vadd.f32 %v2590_v28, %v7978_v33 }
 0x2dd   : > { %v2208_v12 = vpop.f32.mrb[106].mxu0  ;;  %v2594_v43 = vpop.f32.mrb[106].mxu1  ;;  %3689 = vmatprep.mubr.bf16.mxu0 %v2750_v56  ;;  %4075 = vmatprep.mubr.bf16.mxu1 %v2750_v56  ;;  %v6094_v54 = vadd.f32 %v2206_v23, %v7981_v2  ;;  %v8216_v58 = vadd.f32 %v2592_v35, %v7984_v63 }
 0x2de   : > { %9010 = vst [vmem:[#allocation22_spill] sm:$0xff] %v8208_v3  ;;  %v6095_v19 = vadd.f32 %v2208_v12, %v7975_v62  ;;  %v8212_v4 = vadd.f32 %v2594_v43, %v7978_v33  ;;  %v2210_v6 = vpop.f32.mrb[107].mxu0  ;;  %v2596_v52 = vpop.f32.mrb[107].mxu1  ;;  %3690 = vmatmul.mubr.bf16.gmra.mrb[164].mxu0 %v2749_v17  ;;  %4076 = vmatmul.mubr.bf16.gmra.mrb[164].mxu1 %v2749_v17 }
 0x2df   : > { %9012 = vst [vmem:[#allocation19_spill] sm:$0xff] %v8216_v58  ;;  %v6096_v15 = vadd.f32 %v2210_v6, %v7981_v2  ;;  %v8220_v56 = vadd.f32 %v2596_v52, %v7984_v63 }
 0x2e0   : > { %9011 = vst [vmem:[#allocation20_spill] sm:$0xff] %v8212_v4  ;;  %v2689_v28 = vpack.c.bf16 %v6095_v19, %v6093_v59 }
 0x2e1   : > { %9013 = vst [vmem:[#allocation28_spill] sm:$0xff] %v8220_v56  ;;  %v2690_v43 = vpack.c.bf16 %v6096_v15, %v6094_v54 }
 0x2e2   : > { %v2753_v20 = vmax.bf16 %v8954_v46, %v2689_v28 }
 0x2e3   : > { %v2214_v24 = vpop.f32.mrb[108].mxu0  ;;  %v2600_v17 = vpop.f32.mrb[108].mxu1  ;;  %v2754_v23 = vmax.bf16 %v8954_v46, %v2690_v43 }
 0x2e4   : > { %v2216_v0 = vpop.f32.mrb[109].mxu0  ;;  %v2602_v35 = vpop.f32.mrb[109].mxu1  ;;  %v6097_v6 = vadd.f32 %v2214_v24, %v7975_v62  ;;  %v8230_v59 = vadd.f32 %v2600_v17, %v7978_v33 }
 0x2e5   : > { %v2218_v52 = vpop.f32.mrb[110].mxu0  ;;  %v2604_v41 = vpop.f32.mrb[110].mxu1  ;;  %3699 = vmatprep.mubr.bf16.mxu0 %v2754_v23  ;;  %4085 = vmatprep.mubr.bf16.mxu1 %v2754_v23  ;;  %v6098_v28 = vadd.f32 %v2216_v0, %v7981_v2  ;;  %v8238_v24 = vadd.f32 %v2602_v35, %v7984_v63 }
 0x2e6   : > { %9014 = vst [vmem:[#allocation26_spill] sm:$0xff] %v8230_v59  ;;  %v6099_v15 = vadd.f32 %v2218_v52, %v7975_v62  ;;  %v8234_v19 = vadd.f32 %v2604_v41, %v7978_v33  ;;  %v2220_v54 = vpop.f32.mrb[111].mxu0  ;;  %v2606_v43 = vpop.f32.mrb[111].mxu1  ;;  %3700 = vmatmul.mubr.bf16.gmra.mrb[168].mxu0 %v2753_v20  ;;  %4086 = vmatmul.mubr.bf16.gmra.mrb[168].mxu1 %v2753_v20 }
 0x2e7   : > { %9016 = vst [vmem:[#allocation21_spill] sm:$0xff] %v8238_v24  ;;  %v6100_v12 = vadd.f32 %v2220_v54, %v7981_v2  ;;  %v8242_v23 = vadd.f32 %v2606_v43, %v7984_v63 }
 0x2e8   : > { %9015 = vst [vmem:[#allocation23_spill] sm:$0xff] %v8234_v19  ;;  %v2693_v17 = vpack.c.bf16 %v6099_v15, %v6097_v6 }
 0x2e9   : > { %9017 = vst [vmem:[#allocation27_spill] sm:$0xff] %v8242_v23  ;;  %v2694_v41 = vpack.c.bf16 %v6100_v12, %v6098_v28 }
 0x2ea   : > { %v2757_v58 = vmax.bf16 %v8954_v46, %v2693_v17 }
 0x2eb   : > { %v2224_v3 = vpop.f32.mrb[112].mxu0  ;;  %v2610_v20 = vpop.f32.mrb[112].mxu1  ;;  %v2758_v0 = vmax.bf16 %v8954_v46, %v2694_v41 }
 0x2ec   : > { %v2226_v4 = vpop.f32.mrb[113].mxu0  ;;  %v2612_v35 = vpop.f32.mrb[113].mxu1  ;;  %v6101_v54 = vadd.f32 %v2224_v3, %v7975_v62  ;;  %v8252_v6 = vadd.f32 %v2610_v20, %v7978_v33  ;;  %v7034_v20 = vld [vmem:[%s8886_s7 + $0x40] sm:$0xff]  }
 0x2ed   : > { %v2228_v43 = vpop.f32.mrb[114].mxu0  ;;  %v2614_v56 = vpop.f32.mrb[114].mxu1  ;;  %3709 = vmatprep.mubr.bf16.mxu0 %v2758_v0  ;;  %4095 = vmatprep.mubr.bf16.mxu1 %v2758_v0  ;;  %v6102_v17 = vadd.f32 %v2226_v4, %v7981_v2  ;;  %v8260_v3 = vadd.f32 %v2612_v35, %v7984_v63 }
 0x2ee   : > { %9018 = vst [vmem:[#allocation25_spill] sm:$0xff] %v8252_v6  ;;  %v6103_v12 = vadd.f32 %v2228_v43, %v7975_v62  ;;  %v8256_v15 = vadd.f32 %v2614_v56, %v7978_v33  ;;  %v2230_v28 = vpop.f32.mrb[115].mxu0  ;;  %v2616_v41 = vpop.f32.mrb[115].mxu1  ;;  %3710 = vmatmul.mubr.bf16.gmra.mrb[172].mxu0 %v2757_v58  ;;  %4096 = vmatmul.mubr.bf16.gmra.mrb[172].mxu1 %v2757_v58  ;;  %v7036_v56 = vld [vmem:[%s8886_s7 + $0xc0] sm:$0xff]  }
 0x2ef   : > { %9020 = vst [vmem:[#allocation30_spill] sm:$0xff] %v8260_v3  ;;  %v6104_v52 = vadd.f32 %v2230_v28, %v7981_v2  ;;  %v8264_v0 = vadd.f32 %v2616_v41, %v7984_v63  ;;  %5829 = vmatprep.subr.bf16.mxu0 %v7034_v20  ;;  %5941 = vmatprep.subr.bf16.mxu1 %v7036_v56 }
 0x2f0   : > { %9019 = vst [vmem:[#allocation29_spill] sm:$0xff] %v8256_v15  ;;  %v2697_v43 = vpack.c.bf16 %v6103_v12, %v6101_v54 }
 0x2f1   : > { %9021 = vst [vmem:[#allocation31_spill] sm:$0xff] %v8264_v0  ;;  %v2698_v58 = vpack.c.bf16 %v6104_v52, %v6102_v17 }
 0x2f2   : > { %v2761_v24 = vmax.bf16 %v8954_v46, %v2697_v43 }
 0x2f3   : > { %v2234_v28 = vpop.f32.mrb[116].mxu0  ;;  %v2620_v41 = vpop.f32.mrb[116].mxu1  ;;  %v2762_v45 = vmax.bf16 %v8954_v46, %v2698_v58 }
 0x2f4   : > { %v2236_v59 = vpop.f32.mrb[117].mxu0  ;;  %v2622_v19 = vpop.f32.mrb[117].mxu1  ;;  %v6105_v23 = vadd.f32 %v2234_v28, %v7975_v62  ;;  %v8280_v52 = vadd.f32 %v2620_v41, %v7978_v33 }
 0x2f5   : > { %v2238_v54 = vpop.f32.mrb[118].mxu0  ;;  %v2624_v12 = vpop.f32.mrb[118].mxu1  ;;  %3719 = vmatprep.mubr.bf16.mxu0 %v2762_v45  ;;  %4105 = vmatprep.mubr.bf16.mxu1 %v2762_v45  ;;  %v6106_v43 = vadd.f32 %v2236_v59, %v7981_v2  ;;  %v8288_v28 = vadd.f32 %v2622_v19, %v7984_v63 }
 0x2f6   : > { %9022 = vst [vmem:[#allocation32_spill] sm:$0xff] %v8280_v52  ;;  %v6107_v17 = vadd.f32 %v2238_v54, %v7975_v62  ;;  %v8284_v20 = vadd.f32 %v2624_v12, %v7978_v33  ;;  %v2240_v56 = vpop.f32.mrb[119].mxu0  ;;  %v2626_v58 = vpop.f32.mrb[119].mxu1  ;;  %3720 = vmatmul.mubr.bf16.gmra.mrb[176].mxu0 %v2761_v24  ;;  %4106 = vmatmul.mubr.bf16.gmra.mrb[176].mxu1 %v2761_v24 }
 0x2f7   : > { %9024 = vst [vmem:[#allocation34_spill] sm:$0xff] %v8288_v28  ;;  %v6108_v4 = vadd.f32 %v2240_v56, %v7981_v2  ;;  %v8292_v45 = vadd.f32 %v2626_v58, %v7984_v63 }
 0x2f8   : > { %9023 = vst [vmem:[#allocation33_spill] sm:$0xff] %v8284_v20  ;;  %v2701_v41 = vpack.c.bf16 %v6107_v17, %v6105_v23 }
 0x2f9   : > { %9025 = vst [vmem:[#allocation35_spill] sm:$0xff] %v8292_v45  ;;  %v2702_v12 = vpack.c.bf16 %v6108_v4, %v6106_v43 }
 0x2fa   : > { %v2765_v3 = vmax.bf16 %v8954_v46, %v2701_v41 }
 0x2fb   : > { %v2244_v6 = vpop.f32.mrb[120].mxu0  ;;  %v2630_v24 = vpop.f32.mrb[120].mxu1  ;;  %v2766_v59 = vmax.bf16 %v8954_v46, %v2702_v12 }
 0x2fc   : > { %v2246_v15 = vpop.f32.mrb[121].mxu0  ;;  %v2632_v19 = vpop.f32.mrb[121].mxu1  ;;  %v6109_v56 = vadd.f32 %v2244_v6, %v7975_v62  ;;  %v8302_v23 = vadd.f32 %v2630_v24, %v7978_v33 }
 0x2fd   : > { %v2248_v58 = vpop.f32.mrb[122].mxu0  ;;  %v2634_v0 = vpop.f32.mrb[122].mxu1  ;;  %3729 = vmatprep.mubr.bf16.mxu0 %v2766_v59  ;;  %4115 = vmatprep.mubr.bf16.mxu1 %v2766_v59  ;;  %v6110_v41 = vadd.f32 %v2246_v15, %v7981_v2  ;;  %v8310_v6 = vadd.f32 %v2632_v19, %v7984_v63 }
 0x2fe   : > { %v6111_v4 = vadd.f32 %v2248_v58, %v7975_v62  ;;  %v8306_v17 = vadd.f32 %v2634_v0, %v7978_v33  ;;  %v2250_v43 = vpop.f32.mrb[123].mxu0  ;;  %v2636_v12 = vpop.f32.mrb[123].mxu1  ;;  %3730 = vmatmul.mubr.bf16.gmra.mrb[180].mxu0 %v2765_v3  ;;  %4116 = vmatmul.mubr.bf16.gmra.mrb[180].mxu1 %v2765_v3 }
 0x2ff   : > { %v6112_v54 = vadd.f32 %v2250_v43, %v7981_v2  ;;  %v8314_v59 = vadd.f32 %v2636_v12, %v7984_v63 }
 0x300   : > { %v2705_v24 = vpack.c.bf16 %v6111_v4, %v6109_v56 }
 0x301   : > { %v2706_v0 = vpack.c.bf16 %v6112_v54, %v6110_v41  ;;  %v2708_v35 = vpack.c.bf16 %v8314_v59, %v8310_v6  ;;  %v9074_v59 = vld [vmem:[#allocation16_spill] sm:$0xff] }
 0x302   : > { %v2769_v28 = vmax.bf16 %v8954_v46, %v2705_v24 }
 0x303   : > { %v2254_v52 = vpop.f32.mrb[124].mxu0  ;;  %v2640_v3 = vpop.f32.mrb[124].mxu1  ;;  %v2770_v15 = vmax.bf16 %v8954_v46, %v2706_v0 }
 0x304   : > { %v2256_v20 = vpop.f32.mrb[125].mxu0  ;;  %v2642_v19 = vpop.f32.mrb[125].mxu1  ;;  %v6113_v43 = vadd.f32 %v2254_v52, %v7975_v62  ;;  %v8324_v56 = vadd.f32 %v2640_v3, %v7978_v33 }
 0x305   : > { %v2258_v12 = vpop.f32.mrb[126].mxu0  ;;  %v2644_v45 = vpop.f32.mrb[126].mxu1  ;;  %3739 = vmatprep.mubr.bf16.mxu0 %v2770_v15  ;;  %4125 = vmatprep.mubr.bf16.mxu1 %v2770_v15  ;;  %v6114_v24 = vadd.f32 %v2256_v20, %v7981_v2  ;;  %v8332_v52 = vadd.f32 %v2642_v19, %v7984_v63 }
 0x306   : > { %v6115_v54 = vadd.f32 %v2258_v12, %v7975_v62  ;;  %v8328_v4 = vadd.f32 %v2644_v45, %v7978_v33  ;;  %v2260_v41 = vpop.f32.mrb[127].mxu0  ;;  %v2646_v0 = vpop.f32.mrb[127].mxu1  ;;  %3740 = vmatmul.mubr.bf16.gmra.mrb[184].mxu0 %v2769_v28  ;;  %4126 = vmatmul.mubr.bf16.gmra.mrb[184].mxu1 %v2769_v28  ;;  %v7037_v12 = vld [vmem:[%s8886_s7 + $0x80] sm:$0xff]  }
 0x307   : > { %v6116_v58 = vadd.f32 %v2260_v41, %v7981_v2  ;;  %v8336_v15 = vadd.f32 %v2646_v0, %v7984_v63  ;;  %v9026_v2 = vpack.c.bf16 %v8000_v8, %v7996_v51  ;;  %v9028_v51 = vpack.c.bf16 %v8022_v39, %v8018_v61  ;;  %v7041_v61 = vld [vmem:[%s8886_s7 + $0x88] sm:$0xff]   ;;  %v7042_v39 = vld [vmem:[%s8886_s7 + $0x50] sm:$0xff]  }
 0x308   : > { %v2709_v3 = vpack.c.bf16 %v6115_v54, %v6113_v43  ;;  %v2711_v62 = vpack.c.bf16 %v8328_v4, %v8324_v56  ;;  %v7035_v43 = vld [vmem:[%s8886_s7] sm:$0xff]   ;;  %v7038_v54 = vld [vmem:[%s8886_s7 + $0x48] sm:$0xff]   ;;  %v7044_v41 = vld [vmem:[%s8886_s7 + $0xd0] sm:$0xff]   ;;  %v9029_v0 = vpack.c.bf16 %v8015_v16, %v8010_v14 }
 0x309   : > { %v2710_v33 = vpack.c.bf16 %v6116_v58, %v6114_v24  ;;  %v2712_v45 = vpack.c.bf16 %v8336_v15, %v8332_v52  ;;  %v2716_v63 = vmax.bf16 %v8954_v46, %v9026_v2  ;;  %v9027_v58 = vpack.c.bf16 %v7992_v11, %v7988_v57  ;;  %v7040_v57 = vld [vmem:[%s8886_s7 + $0xc8] sm:$0xff]   ;;  %v7046_v14 = vld [vmem:[%s8886_s7 + $0x58] sm:$0xff]   ;;  %v7050_v2 = vld [vmem:[%s8886_s7 + $0x60] sm:$0xff]  }
 0x30a   : > { %v2773_v20 = vmax.bf16 %v8954_v46, %v2709_v3  ;;  %v2720_v8 = vmax.bf16 %v8954_v46, %v9028_v51  ;;  %v7039_v11 = vld [vmem:[%s8886_s7 + $0x8] sm:$0xff]   ;;  %v2719_v24 = vmax.bf16 %v8954_v46, %v9029_v0  ;;  %v7043_v3 = vld [vmem:[%s8886_s7 + $0x10] sm:$0xff]   ;;  %v7048_v16 = vld [vmem:[%s8886_s7 + $0xd8] sm:$0xff]   ;;  %v9032_v51 = vpack.c.bf16 %v8066_v7, %v8062_v37 }
 0x30b   : > { %v2774_v28 = vmax.bf16 %v8954_v46, %v2710_v33  ;;  %v2715_v19 = vmax.bf16 %v8954_v46, %v9027_v58  ;;  %v7045_v33 = vld [vmem:[%s8886_s7 + $0x90] sm:$0xff]   ;;  %v9031_v58 = vpack.c.bf16 %v8037_v53, %v8032_v25  ;;  %v7054_v25 = vld [vmem:[%s8886_s7 + $0x68] sm:$0xff]   ;;  %v9034_v0 = vpack.c.bf16 %v8088_v38, %v8084_v21  ;;  %v7063_v21 = vld [vmem:[%s8886_s7 + $0x38] sm:$0xff]  }
 0x30c   : > { %v7056_v53 = vld [vmem:[%s8886_s7 + $0xe8] sm:$0xff]   ;;  %v7065_v38 = vld [vmem:[%s8886_s7 + $0xb8] sm:$0xff]  }
 0x30d   : > { %3749 = vmatprep.mubr.bf16.mxu0 %v2774_v28  ;;  %4135 = vmatprep.mubr.bf16.mxu1 %v2774_v28  ;;  %v9030_v28 = vpack.c.bf16 %v8044_v10, %v8040_v50  ;;  %v7047_v50 = vld [vmem:[%s8886_s7 + $0x18] sm:$0xff]   ;;  %v7055_v37 = vld [vmem:[%s8886_s7 + $0x28] sm:$0xff]  }
 0x30e   : > { %3750 = vmatmul.mubr.bf16.gmra.mrb[188].mxu0 %v2773_v20  ;;  %4136 = vmatmul.mubr.bf16.gmra.mrb[188].mxu1 %v2773_v20  ;;  %v7049_v10 = vld [vmem:[%s8886_s7 + $0x98] sm:$0xff]   ;;  %v7057_v7 = vld [vmem:[%s8886_s7 + $0xa8] sm:$0xff]  }
 0x30f   : > { %3792 = vmatprep.mubr.bf16.mxu0 %v2716_v63  ;;  %4178 = vmatprep.mubr.bf16.mxu1 %v2716_v63  ;;  %v2724_v20 = vmax.bf16 %v8954_v46, %v9030_v28  ;;  %v7052_v63 = vld [vmem:[%s8886_s7 + $0xe0] sm:$0xff]   ;;  %v9036_v28 = vpack.c.bf16 %v8110_v55, %v8106_v44  ;;  %v9039_v44 = vpack.c.bf16 %v8125_v34, %v8120_v42  ;;  %v9076_v56 = vld [vmem:[#allocation17_spill] sm:$0xff] }
 0x310   : > { %v9043_v34 = vpack.c.bf16 %v8169_v18, %v8164_v27  ;;  %v9051_v18 = vld [vmem:[#allocation20_spill] sm:$0xff] }
 0x311   : > { %v2739_v55 = vmax.bf16 %v8954_v46, %v9039_v44  ;;  %v9075_v44 = vld [vmem:[#allocation15_spill] sm:$0xff] }
 0x316   : > { %3793 = vmatmul.mubr.bf16.vlgmr.msra.gmra.mrb[128].mxu0 %v2715_v19  ;;  %4179 = vmatmul.mubr.bf16.vlgmr.msra.gmra.mrb[128].mxu1 %v2715_v19  ;;  %v2723_v19 = vmax.bf16 %v8954_v46, %v9031_v58 }
 0x317   : > { %3802 = vmatprep.mubr.bf16.mxu0 %v2720_v8  ;;  %4188 = vmatprep.mubr.bf16.mxu1 %v2720_v8  ;;  %v2728_v8 = vmax.bf16 %v8954_v46, %v9032_v51 }
 0x318   : > { %5830 = vmatpush3.bf16.msra.mxu0 %v7035_v43  ;;  %5942 = vmatpush3.bf16.msra.mxu1 %v7037_v12  ;;  %v7051_v43 = vld [vmem:[%s8886_s7 + $0x20] sm:$0xff]  }
 0x319   : > { %5831 = vmatprep.subr.bf16.mxu0 %v7038_v54  ;;  %5943 = vmatprep.subr.bf16.mxu1 %v7040_v57  ;;  %v7053_v12 = vld [vmem:[%s8886_s7 + $0xa0] sm:$0xff]   ;;  %v7058_v54 = vld [vmem:[%s8886_s7 + $0x70] sm:$0xff]  }
 0x31a   : > { %v7060_v57 = vld [vmem:[%s8886_s7 + $0xf0] sm:$0xff]  }
 0x31c   : > { %5832 = vmatpush3.bf16.msra.mxu0 %v7039_v11  ;;  %5944 = vmatpush3.bf16.msra.mxu1 %v7041_v61  ;;  %v9033_v11 = vpack.c.bf16 %v8059_v29, %v8054_v31  ;;  %v7062_v31 = vld [vmem:[%s8886_s7 + $0x78] sm:$0xff]  }
 0x31d   : > { %5833 = vmatprep.subr.bf16.mxu0 %v7042_v39  ;;  %5945 = vmatprep.subr.bf16.mxu1 %v7044_v41  ;;  %v7059_v39 = vld [vmem:[%s8886_s7 + $0x30] sm:$0xff]   ;;  %v7064_v29 = vld [vmem:[%s8886_s7 + $0xf8] sm:$0xff]  }
 0x31e   : > { %3803 = vmatmul.mubr.bf16.gmra.mrb[132].mxu0 %v2719_v24  ;;  %4189 = vmatmul.mubr.bf16.gmra.mrb[132].mxu1 %v2719_v24  ;;  %v2727_v61 = vmax.bf16 %v8954_v46, %v9033_v11  ;;  %v7061_v41 = vld [vmem:[%s8886_s7 + $0xb0] sm:$0xff]   ;;  %v2732_v24 = vmax.bf16 %v8954_v46, %v9034_v0 }
 0x31f   : > { %3812 = vmatprep.mubr.bf16.mxu0 %v2724_v20  ;;  %4198 = vmatprep.mubr.bf16.mxu1 %v2724_v20  ;;  %v2736_v20 = vmax.bf16 %v8954_v46, %v9036_v28 }
 0x320   : > { %5834 = vmatpush3.bf16.msra.mxu0 %v7043_v3  ;;  %5946 = vmatpush3.bf16.msra.mxu1 %v7045_v33  ;;  %v9035_v3 = vpack.c.bf16 %v8081_v40, %v8076_v36  ;;  %v9038_v36 = vpack.c.bf16 %v8132_v48, %v8128_v49  ;;  %v9042_v48 = vpack.c.bf16 %v8176_v60, %v8172_v26  ;;  %v9046_v26 = vld [vmem:[#allocation18_spill] sm:$0xff] }
 0x321   : > { %5835 = vmatprep.subr.bf16.mxu0 %v7046_v14  ;;  %5947 = vmatprep.subr.bf16.mxu1 %v7048_v16  ;;  %v9037_v14 = vpack.c.bf16 %v8103_v5, %v8098_v32  ;;  %v9041_v5 = vpack.c.bf16 %v8147_v22, %v8142_v1  ;;  %v9045_v22 = vld [vmem:[#allocation24_spill] sm:$0xff] }
 0x322   : > { %v2731_v33 = vmax.bf16 %v8954_v46, %v9035_v3  ;;  %v2740_v40 = vmax.bf16 %v8954_v46, %v9038_v36  ;;  %v2748_v42 = vmax.bf16 %v8954_v46, %v9042_v48  ;;  %v9047_v60 = vpack.c.bf16 %v9045_v22, %v9046_v26  ;;  %v9069_v3 = vld [vmem:[#allocation33_spill] sm:$0xff] }
 0x323   : > { %v2735_v16 = vmax.bf16 %v8954_v46, %v9037_v14  ;;  %v2743_v49 = vmax.bf16 %v8954_v46, %v9041_v5  ;;  %v2772_v14 = vmax.bf16 %v8954_v46, %v2708_v35  ;;  %v2775_v35 = vmax.bf16 %v8954_v46, %v2711_v62 }
 0x324   : > { %5836 = vmatpush3.bf16.msra.mxu0 %v7047_v50  ;;  %5948 = vmatpush3.bf16.msra.mxu1 %v7049_v10  ;;  %v9040_v50 = vpack.c.bf16 %v8154_v13, %v8150_v30  ;;  %v2747_v30 = vmax.bf16 %v8954_v46, %v9043_v34  ;;  %v9044_v13 = vpack.c.bf16 %v8198_v9, %v8194_v47  ;;  %v9052_v47 = vld [vmem:[#allocation22_spill] sm:$0xff] }
 0x325   : > { %5837 = vmatprep.subr.bf16.mxu0 %v7050_v2  ;;  %5949 = vmatprep.subr.bf16.mxu1 %v7052_v63  ;;  %v2751_v10 = vmax.bf16 %v8954_v46, %v9047_v60  ;;  %v9048_v2 = vld [vmem:[#allocation28_spill] sm:$0xff]  ;;  %v9049_v63 = vld [vmem:[#allocation19_spill] sm:$0xff]  ;;  %v9053_v9 = vpack.c.bf16 %v9051_v18, %v9052_v47 }
 0x326   : > { %3813 = vmatmul.mubr.bf16.gmra.mrb[136].mxu0 %v2723_v19  ;;  %4199 = vmatmul.mubr.bf16.gmra.mrb[136].mxu1 %v2723_v19  ;;  %v2744_v32 = vmax.bf16 %v8954_v46, %v9040_v50  ;;  %v2752_v1 = vmax.bf16 %v8954_v46, %v9044_v13  ;;  %v9050_v58 = vpack.c.bf16 %v9048_v2, %v9049_v63 }
 0x327   : > { %3822 = vmatprep.mubr.bf16.mxu0 %v2728_v8  ;;  %4208 = vmatprep.mubr.bf16.mxu1 %v2728_v8  ;;  %v2755_v19 = vmax.bf16 %v8954_v46, %v9053_v9 }
 0x328   : > { %5838 = vmatpush3.bf16.msra.mxu0 %v7051_v43  ;;  %5950 = vmatpush3.bf16.msra.mxu1 %v7053_v12  ;;  %v2756_v27 = vmax.bf16 %v8954_v46, %v9050_v58  ;;  %v9054_v43 = vld [vmem:[#allocation27_spill] sm:$0xff]  ;;  %v9055_v12 = vld [vmem:[#allocation21_spill] sm:$0xff] }
 0x329   : > { %5839 = vmatprep.subr.bf16.mxu0 %v7054_v25  ;;  %5951 = vmatprep.subr.bf16.mxu1 %v7056_v53  ;;  %v9056_v51 = vpack.c.bf16 %v9054_v43, %v9055_v12  ;;  %v9057_v25 = vld [vmem:[#allocation23_spill] sm:$0xff]  ;;  %v9058_v53 = vld [vmem:[#allocation26_spill] sm:$0xff] }
 0x32b   : > { %v2760_v8 = vmax.bf16 %v8954_v46, %v9056_v51 }
 0x32c   : > { %5840 = vmatpush3.bf16.msra.mxu0 %v7055_v37  ;;  %5952 = vmatpush3.bf16.msra.mxu1 %v7057_v7  ;;  %v9059_v37 = vpack.c.bf16 %v9057_v25, %v9058_v53 }
 0x32d   : > { %5841 = vmatprep.subr.bf16.mxu0 %v7058_v54  ;;  %5953 = vmatprep.subr.bf16.mxu1 %v7060_v57  ;;  %v9060_v54 = vld [vmem:[#allocation31_spill] sm:$0xff]  ;;  %v9061_v57 = vld [vmem:[#allocation30_spill] sm:$0xff] }
 0x32e   : > { %3823 = vmatmul.mubr.bf16.gmra.mrb[140].mxu0 %v2727_v61  ;;  %4209 = vmatmul.mubr.bf16.gmra.mrb[140].mxu1 %v2727_v61  ;;  %v2759_v7 = vmax.bf16 %v8954_v46, %v9059_v37  ;;  %v9062_v11 = vpack.c.bf16 %v9060_v54, %v9061_v57 }
 0x32f   : > { %3832 = vmatprep.mubr.bf16.mxu0 %v2732_v24  ;;  %4218 = vmatprep.mubr.bf16.mxu1 %v2732_v24 }
 0x330   : > { %5842 = vmatpush3.bf16.msra.mxu0 %v7059_v39  ;;  %5954 = vmatpush3.bf16.msra.mxu1 %v7061_v41  ;;  %v2764_v61 = vmax.bf16 %v8954_v46, %v9062_v11  ;;  %v9063_v39 = vld [vmem:[#allocation29_spill] sm:$0xff] }
 0x331   : > { %5843 = vmatprep.subr.bf16.mxu0 %v7062_v31  ;;  %5955 = vmatprep.subr.bf16.mxu1 %v7064_v29  ;;  %v9064_v41 = vld [vmem:[#allocation25_spill] sm:$0xff]  ;;  %v9066_v31 = vld [vmem:[#allocation35_spill] sm:$0xff]  ;;  %v9067_v29 = vld [vmem:[#allocation34_spill] sm:$0xff] }
 0x332   : > { %v9065_v0 = vpack.c.bf16 %v9063_v39, %v9064_v41 }
 0x334   : > { %5844 = vmatpush3.bf16.msra.mxu0 %v7063_v21  ;;  %5956 = vmatpush3.bf16.msra.mxu1 %v7065_v38  ;;  %v2763_v24 = vmax.bf16 %v8954_v46, %v9065_v0  ;;  %v9068_v21 = vpack.c.bf16 %v9066_v31, %v9067_v29 }
 0x336   : > { %3833 = vmatmul.mubr.bf16.gmra.mrb[144].mxu0 %v2731_v33  ;;  %4219 = vmatmul.mubr.bf16.gmra.mrb[144].mxu1 %v2731_v33  ;;  %v2768_v38 = vmax.bf16 %v8954_v46, %v9068_v21  ;;  %v9070_v33 = vld [vmem:[#allocation32_spill] sm:$0xff] }
 0x337   : > { %3842 = vmatprep.mubr.bf16.mxu0 %v2736_v20  ;;  %4228 = vmatprep.mubr.bf16.mxu1 %v2736_v20  ;;  %v9071_v28 = vpack.c.bf16 %v9069_v3, %v9070_v33 }
 0x339   : > { %v2767_v20 = vmax.bf16 %v8954_v46, %v9071_v28 }
 0x33e   : > { %3843 = vmatmul.mubr.bf16.gmra.mrb[148].mxu0 %v2735_v16  ;;  %4229 = vmatmul.mubr.bf16.gmra.mrb[148].mxu1 %v2735_v16  ;;  %v9072_v16 = vpack.c.bf16 %v8306_v17, %v8302_v23  ;;  %v2905_v23 = vld [vmem:[%s8885_s6] sm:$0xf]  ;;  %v9073_v17 = vld [vmem:[#allocation14_spill] sm:$0xff] }
 0x33f   : > { %3852 = vmatprep.mubr.bf16.mxu0 %v2740_v40  ;;  %4238 = vmatprep.mubr.bf16.mxu1 %v2740_v40  ;;  %v2776_v40 = vmax.bf16 %v8954_v46, %v2712_v45  ;;  %v8566_v6 = vrot.slane %v2905_v23, %v9073_v17  ;;  %v8569_v52 = vrot.slane %v2905_v23, %v9074_v59 }
 0x340   : > { %v2771_v36 = vmax.bf16 %v8954_v46, %v9072_v16  ;;  %v8575_v4 = vrot.slane %v2905_v23, %v9076_v56 }
 0x346   : > { %3853 = vmatmul.mubr.bf16.gmra.mrb[152].mxu0 %v2739_v55  ;;  %4239 = vmatmul.mubr.bf16.gmra.mrb[152].mxu1 %v2739_v55  ;;  %v8572_v55 = vrot.slane %v2905_v23, %v9075_v44 }
 0x347   : > { %3862 = vmatprep.mubr.bf16.mxu0 %v2744_v32  ;;  %4248 = vmatprep.mubr.bf16.mxu1 %v2744_v32 }
 0x34e   : > { %3863 = vmatmul.mubr.bf16.gmra.mrb[156].mxu0 %v2743_v49  ;;  %4249 = vmatmul.mubr.bf16.gmra.mrb[156].mxu1 %v2743_v49 }
 0x34f   : > { %3872 = vmatprep.mubr.bf16.mxu0 %v2748_v42  ;;  %4258 = vmatprep.mubr.bf16.mxu1 %v2748_v42 }
 0x356   : > { %3873 = vmatmul.mubr.bf16.gmra.mrb[160].mxu0 %v2747_v30  ;;  %4259 = vmatmul.mubr.bf16.gmra.mrb[160].mxu1 %v2747_v30 }
 0x357   : > { %3882 = vmatprep.mubr.bf16.mxu0 %v2752_v1  ;;  %4268 = vmatprep.mubr.bf16.mxu1 %v2752_v1 }
 0x35e   : > { %3883 = vmatmul.mubr.bf16.gmra.mrb[164].mxu0 %v2751_v10  ;;  %4269 = vmatmul.mubr.bf16.gmra.mrb[164].mxu1 %v2751_v10 }
 0x35f   : > { %3892 = vmatprep.mubr.bf16.mxu0 %v2756_v27  ;;  %4278 = vmatprep.mubr.bf16.mxu1 %v2756_v27 }
 0x366   : > { %3893 = vmatmul.mubr.bf16.gmra.mrb[168].mxu0 %v2755_v19  ;;  %4279 = vmatmul.mubr.bf16.gmra.mrb[168].mxu1 %v2755_v19 }
 0x367   : > { %3902 = vmatprep.mubr.bf16.mxu0 %v2760_v8  ;;  %4288 = vmatprep.mubr.bf16.mxu1 %v2760_v8 }
 0x36e   : > { %3903 = vmatmul.mubr.bf16.gmra.mrb[172].mxu0 %v2759_v7  ;;  %4289 = vmatmul.mubr.bf16.gmra.mrb[172].mxu1 %v2759_v7 }
 0x36f   : > { %3912 = vmatprep.mubr.bf16.mxu0 %v2764_v61  ;;  %4298 = vmatprep.mubr.bf16.mxu1 %v2764_v61 }
 0x376   : > { %3913 = vmatmul.mubr.bf16.gmra.mrb[176].mxu0 %v2763_v24  ;;  %4299 = vmatmul.mubr.bf16.gmra.mrb[176].mxu1 %v2763_v24 }
 0x377   : > { %3922 = vmatprep.mubr.bf16.mxu0 %v2768_v38  ;;  %4308 = vmatprep.mubr.bf16.mxu1 %v2768_v38 }
 0x37e   : > { %3923 = vmatmul.mubr.bf16.gmra.mrb[180].mxu0 %v2767_v20  ;;  %4309 = vmatmul.mubr.bf16.gmra.mrb[180].mxu1 %v2767_v20 }
 0x37f   : > { %3932 = vmatprep.mubr.bf16.mxu0 %v2772_v14  ;;  %4318 = vmatprep.mubr.bf16.mxu1 %v2772_v14 }
 0x386   : > { %3933 = vmatmul.mubr.bf16.gmra.mrb[184].mxu0 %v2771_v36  ;;  %4319 = vmatmul.mubr.bf16.gmra.mrb[184].mxu1 %v2771_v36 }
 0x387   : > { %3942 = vmatprep.mubr.bf16.mxu0 %v2776_v40  ;;  %4328 = vmatprep.mubr.bf16.mxu1 %v2776_v40 }
 0x38e   : > { %3943 = vmatmul.mubr.bf16.gmra.mrb[188].mxu0 %v2775_v35  ;;  %4329 = vmatmul.mubr.bf16.gmra.mrb[188].mxu1 %v2775_v35 }
 0x3e9   : > { %v3794_v15 = vpop.f32.mrb[128].mxu0  ;;  %v4180_v45 = vpop.f32.mrb[128].mxu1 }
 0x3ea   : > { %v3796_v62 = vpop.f32.mrb[129].mxu0  ;;  %v4182_v50 = vpop.f32.mrb[129].mxu1  ;;  %v6181_v49 = vadd.f32 %v3794_v15, %v8566_v6  ;;  %v6245_v48 = vadd.f32 %v4180_v45, %v8569_v52 }
 0x3eb   : > { %v3798_v32 = vpop.f32.mrb[130].mxu0  ;;  %v4184_v5 = vpop.f32.mrb[130].mxu1  ;;  %v6182_v1 = vadd.f32 %v3796_v62, %v8572_v55  ;;  %v6246_v22 = vadd.f32 %v4182_v50, %v8575_v4 }
 0x3ec   : > { %v6183_v42 = vadd.f32 %v3798_v32, %v8566_v6  ;;  %v6247_v34 = vadd.f32 %v4184_v5, %v8569_v52  ;;  %v3800_v30 = vpop.f32.mrb[131].mxu0  ;;  %v4186_v13 = vpop.f32.mrb[131].mxu1 }
 0x3ed   : > { %v6184_v26 = vadd.f32 %v3800_v30, %v8572_v55  ;;  %v6248_v60 = vadd.f32 %v4186_v13, %v8575_v4 }
 0x3ee   : > { %v4339_v10 = vpack.c.bf16 %v6183_v42, %v6181_v49  ;;  %v4341_v2 = vpack.c.bf16 %v6247_v34, %v6245_v48 }
 0x3ef   : > { %v4340_v63 = vpack.c.bf16 %v6184_v26, %v6182_v1  ;;  %v4342_v58 = vpack.c.bf16 %v6248_v60, %v6246_v22 }
 0x3f0   : > { %v4403_v19 = vmax.bf16 %v8954_v46, %v4339_v10  ;;  %v4405_v43 = vmax.bf16 %v8954_v46, %v4341_v2 }
 0x3f1   : > { %v3804_v27 = vpop.f32.mrb[132].mxu0  ;;  %v4190_v18 = vpop.f32.mrb[132].mxu1  ;;  %v4404_v47 = vmax.bf16 %v8954_v46, %v4340_v63  ;;  %v4406_v9 = vmax.bf16 %v8954_v46, %v4342_v58 }
 0x3f2   : > { %v3806_v12 = vpop.f32.mrb[133].mxu0  ;;  %v4192_v51 = vpop.f32.mrb[133].mxu1  ;;  %v6185_v8 = vadd.f32 %v3804_v27, %v8566_v6  ;;  %v6249_v37 = vadd.f32 %v4190_v18, %v8569_v52 }
 0x3f3   : > { %v3808_v25 = vpop.f32.mrb[134].mxu0  ;;  %v4194_v53 = vpop.f32.mrb[134].mxu1  ;;  %4762 = vmatprep.mubr.bf16.mxu0 %v4404_v47  ;;  %4923 = vmatprep.mubr.bf16.mxu1 %v4406_v9  ;;  %v6186_v61 = vadd.f32 %v3806_v12, %v8572_v55  ;;  %v6250_v39 = vadd.f32 %v4192_v51, %v8575_v4 }
 0x3f4   : > { %v6187_v7 = vadd.f32 %v3808_v25, %v8566_v6  ;;  %v6251_v54 = vadd.f32 %v4194_v53, %v8569_v52  ;;  %v3810_v57 = vpop.f32.mrb[135].mxu0  ;;  %v4196_v11 = vpop.f32.mrb[135].mxu1  ;;  %4763 = vmatmul.mubr.bf16.vlgmr.msra.gmra.mrb[192].mxu0 %v4403_v19  ;;  %4924 = vmatmul.mubr.bf16.vlgmr.msra.gmra.mrb[192].mxu1 %v4405_v43 }
 0x3f5   : > { %v6188_v41 = vadd.f32 %v3810_v57, %v8572_v55  ;;  %v6252_v0 = vadd.f32 %v4196_v11, %v8575_v4 }
 0x3f6   : > { %v4343_v24 = vpack.c.bf16 %v6187_v7, %v6185_v8  ;;  %v4345_v31 = vpack.c.bf16 %v6251_v54, %v6249_v37 }
 0x3f7   : > { %v4344_v29 = vpack.c.bf16 %v6188_v41, %v6186_v61  ;;  %v4346_v21 = vpack.c.bf16 %v6252_v0, %v6250_v39 }
 0x3f8   : > { %v4407_v16 = vmax.bf16 %v8954_v46, %v4343_v24  ;;  %v4409_v36 = vmax.bf16 %v8954_v46, %v4345_v31 }
 0x3f9   : > { %v3814_v38 = vpop.f32.mrb[136].mxu0  ;;  %v4200_v3 = vpop.f32.mrb[136].mxu1  ;;  %v4408_v33 = vmax.bf16 %v8954_v46, %v4344_v29  ;;  %v4410_v28 = vmax.bf16 %v8954_v46, %v4346_v21 }
 0x3fa   : > { %v3816_v20 = vpop.f32.mrb[137].mxu0  ;;  %v4202_v14 = vpop.f32.mrb[137].mxu1  ;;  %v6189_v40 = vadd.f32 %v3814_v38, %v8566_v6  ;;  %v6253_v17 = vadd.f32 %v4200_v3, %v8569_v52 }
 0x3fb   : > { %v3818_v35 = vpop.f32.mrb[138].mxu0  ;;  %v4204_v23 = vpop.f32.mrb[138].mxu1  ;;  %4770 = vmatprep.mubr.bf16.mxu0 %v4408_v33  ;;  %4931 = vmatprep.mubr.bf16.mxu1 %v4410_v28  ;;  %v6190_v56 = vadd.f32 %v3816_v20, %v8572_v55  ;;  %v6254_v62 = vadd.f32 %v4202_v14, %v8575_v4 }
 0x3fc   : > { %v6191_v59 = vadd.f32 %v3818_v35, %v8566_v6  ;;  %v6255_v15 = vadd.f32 %v4204_v23, %v8569_v52  ;;  %v3820_v45 = vpop.f32.mrb[139].mxu0  ;;  %v4206_v44 = vpop.f32.mrb[139].mxu1  ;;  %4771 = vmatmul.mubr.bf16.gmra.mrb[196].mxu0 %v4407_v16  ;;  %4932 = vmatmul.mubr.bf16.gmra.mrb[196].mxu1 %v4409_v36 }
 0x3fd   : > { %v6192_v50 = vadd.f32 %v3820_v45, %v8572_v55  ;;  %v6256_v32 = vadd.f32 %v4206_v44, %v8575_v4 }
 0x3fe   : > { %v4347_v5 = vpack.c.bf16 %v6191_v59, %v6189_v40  ;;  %v4349_v49 = vpack.c.bf16 %v6255_v15, %v6253_v17 }
 0x3ff   : > { %v4348_v48 = vpack.c.bf16 %v6192_v50, %v6190_v56  ;;  %v4350_v42 = vpack.c.bf16 %v6256_v32, %v6254_v62 }
 0x400   : > { %v4411_v60 = vmax.bf16 %v8954_v46, %v4347_v5  ;;  %v4413_v10 = vmax.bf16 %v8954_v46, %v4349_v49 }
 0x401   : > { %v3824_v34 = vpop.f32.mrb[140].mxu0  ;;  %v4210_v30 = vpop.f32.mrb[140].mxu1  ;;  %v4412_v13 = vmax.bf16 %v8954_v46, %v4348_v48  ;;  %v4414_v1 = vmax.bf16 %v8954_v46, %v4350_v42 }
 0x402   : > { %v3826_v22 = vpop.f32.mrb[141].mxu0  ;;  %v4212_v26 = vpop.f32.mrb[141].mxu1  ;;  %v6193_v2 = vadd.f32 %v3824_v34, %v8566_v6  ;;  %v6257_v27 = vadd.f32 %v4210_v30, %v8569_v52 }
 0x403   : > { %v3828_v63 = vpop.f32.mrb[142].mxu0  ;;  %v4214_v58 = vpop.f32.mrb[142].mxu1  ;;  %4778 = vmatprep.mubr.bf16.mxu0 %v4412_v13  ;;  %4939 = vmatprep.mubr.bf16.mxu1 %v4414_v1  ;;  %v6194_v43 = vadd.f32 %v3826_v22, %v8572_v55  ;;  %v6258_v12 = vadd.f32 %v4212_v26, %v8575_v4 }
 0x404   : > { %v6195_v18 = vadd.f32 %v3828_v63, %v8566_v6  ;;  %v6259_v47 = vadd.f32 %v4214_v58, %v8569_v52  ;;  %v3830_v9 = vpop.f32.mrb[143].mxu0  ;;  %v4216_v19 = vpop.f32.mrb[143].mxu1  ;;  %4779 = vmatmul.mubr.bf16.gmra.mrb[200].mxu0 %v4411_v60  ;;  %4940 = vmatmul.mubr.bf16.gmra.mrb[200].mxu1 %v4413_v10 }
 0x405   : > { %v6196_v51 = vadd.f32 %v3830_v9, %v8572_v55  ;;  %v6260_v8 = vadd.f32 %v4216_v19, %v8575_v4 }
 0x406   : > { %v4351_v25 = vpack.c.bf16 %v6195_v18, %v6193_v2  ;;  %v4353_v53 = vpack.c.bf16 %v6259_v47, %v6257_v27 }
 0x407   : > { %v4352_v37 = vpack.c.bf16 %v6196_v51, %v6194_v43  ;;  %v4354_v7 = vpack.c.bf16 %v6260_v8, %v6258_v12 }
 0x408   : > { %v4415_v0 = vmax.bf16 %v8954_v46, %v4351_v25  ;;  %v4417_v24 = vmax.bf16 %v8954_v46, %v4353_v53 }
 0x409   : > { %v3834_v54 = vpop.f32.mrb[144].mxu0  ;;  %v4220_v57 = vpop.f32.mrb[144].mxu1  ;;  %v4416_v11 = vmax.bf16 %v8954_v46, %v4352_v37  ;;  %v4418_v61 = vmax.bf16 %v8954_v46, %v4354_v7 }
 0x40a   : > { %v3836_v39 = vpop.f32.mrb[145].mxu0  ;;  %v4222_v41 = vpop.f32.mrb[145].mxu1  ;;  %v6197_v31 = vadd.f32 %v3834_v54, %v8566_v6  ;;  %v6261_v38 = vadd.f32 %v4220_v57, %v8569_v52 }
 0x40b   : > { %v3838_v29 = vpop.f32.mrb[146].mxu0  ;;  %v4224_v21 = vpop.f32.mrb[146].mxu1  ;;  %4786 = vmatprep.mubr.bf16.mxu0 %v4416_v11  ;;  %4947 = vmatprep.mubr.bf16.mxu1 %v4418_v61  ;;  %v6198_v14 = vadd.f32 %v3836_v39, %v8572_v55  ;;  %v6262_v16 = vadd.f32 %v4222_v41, %v8575_v4 }
 0x40c   : > { %v6199_v3 = vadd.f32 %v3838_v29, %v8566_v6  ;;  %v6263_v33 = vadd.f32 %v4224_v21, %v8569_v52  ;;  %v3840_v28 = vpop.f32.mrb[147].mxu0  ;;  %v4226_v20 = vpop.f32.mrb[147].mxu1  ;;  %4787 = vmatmul.mubr.bf16.gmra.mrb[204].mxu0 %v4415_v0  ;;  %4948 = vmatmul.mubr.bf16.gmra.mrb[204].mxu1 %v4417_v24 }
 0x40d   : > { %v6200_v36 = vadd.f32 %v3840_v28, %v8572_v55  ;;  %v6264_v40 = vadd.f32 %v4226_v20, %v8575_v4 }
 0x40e   : > { %v4355_v35 = vpack.c.bf16 %v6199_v3, %v6197_v31  ;;  %v4357_v23 = vpack.c.bf16 %v6263_v33, %v6261_v38 }
 0x40f   : > { %v4356_v17 = vpack.c.bf16 %v6200_v36, %v6198_v14  ;;  %v4358_v59 = vpack.c.bf16 %v6264_v40, %v6262_v16 }
 0x410   : > { %v4419_v32 = vmax.bf16 %v8954_v46, %v4355_v35  ;;  %v4421_v5 = vmax.bf16 %v8954_v46, %v4357_v23 }
 0x411   : > { %v3844_v15 = vpop.f32.mrb[148].mxu0  ;;  %v4230_v45 = vpop.f32.mrb[148].mxu1  ;;  %v4420_v44 = vmax.bf16 %v8954_v46, %v4356_v17  ;;  %v4422_v56 = vmax.bf16 %v8954_v46, %v4358_v59 }
 0x412   : > { %v3846_v62 = vpop.f32.mrb[149].mxu0  ;;  %v4232_v50 = vpop.f32.mrb[149].mxu1  ;;  %v6201_v49 = vadd.f32 %v3844_v15, %v8566_v6  ;;  %v6265_v34 = vadd.f32 %v4230_v45, %v8569_v52 }
 0x413   : > { %v3848_v48 = vpop.f32.mrb[150].mxu0  ;;  %v4234_v42 = vpop.f32.mrb[150].mxu1  ;;  %4794 = vmatprep.mubr.bf16.mxu0 %v4420_v44  ;;  %4955 = vmatprep.mubr.bf16.mxu1 %v4422_v56  ;;  %v6202_v26 = vadd.f32 %v3846_v62, %v8572_v55  ;;  %v6266_v60 = vadd.f32 %v4232_v50, %v8575_v4 }
 0x414   : > { %v6203_v30 = vadd.f32 %v3848_v48, %v8566_v6  ;;  %v6267_v13 = vadd.f32 %v4234_v42, %v8569_v52  ;;  %v3850_v1 = vpop.f32.mrb[151].mxu0  ;;  %v4236_v22 = vpop.f32.mrb[151].mxu1  ;;  %4795 = vmatmul.mubr.bf16.gmra.mrb[208].mxu0 %v4419_v32  ;;  %4956 = vmatmul.mubr.bf16.gmra.mrb[208].mxu1 %v4421_v5 }
 0x415   : > { %v6204_v10 = vadd.f32 %v3850_v1, %v8572_v55  ;;  %v6268_v2 = vadd.f32 %v4236_v22, %v8575_v4 }
 0x416   : > { %v4359_v63 = vpack.c.bf16 %v6203_v30, %v6201_v49  ;;  %v4361_v58 = vpack.c.bf16 %v6267_v13, %v6265_v34 }
 0x417   : > { %v4360_v27 = vpack.c.bf16 %v6204_v10, %v6202_v26  ;;  %v4362_v18 = vpack.c.bf16 %v6268_v2, %v6266_v60 }
 0x418   : > { %v4423_v8 = vmax.bf16 %v8954_v46, %v4359_v63  ;;  %v4425_v25 = vmax.bf16 %v8954_v46, %v4361_v58 }
 0x419   : > { %v3854_v47 = vpop.f32.mrb[152].mxu0  ;;  %v4240_v9 = vpop.f32.mrb[152].mxu1  ;;  %v4424_v19 = vmax.bf16 %v8954_v46, %v4360_v27  ;;  %v4426_v43 = vmax.bf16 %v8954_v46, %v4362_v18 }
 0x41a   : > { %v3856_v12 = vpop.f32.mrb[153].mxu0  ;;  %v4242_v51 = vpop.f32.mrb[153].mxu1  ;;  %v6205_v53 = vadd.f32 %v3854_v47, %v8566_v6  ;;  %v6269_v54 = vadd.f32 %v4240_v9, %v8569_v52 }
 0x41b   : > { %v3858_v37 = vpop.f32.mrb[154].mxu0  ;;  %v4244_v7 = vpop.f32.mrb[154].mxu1  ;;  %4802 = vmatprep.mubr.bf16.mxu0 %v4424_v19  ;;  %4963 = vmatprep.mubr.bf16.mxu1 %v4426_v43  ;;  %v6206_v41 = vadd.f32 %v3856_v12, %v8572_v55  ;;  %v6270_v0 = vadd.f32 %v4242_v51, %v8575_v4 }
 0x41c   : > { %v6207_v57 = vadd.f32 %v3858_v37, %v8566_v6  ;;  %v6271_v11 = vadd.f32 %v4244_v7, %v8569_v52  ;;  %v3860_v61 = vpop.f32.mrb[155].mxu0  ;;  %v4246_v39 = vpop.f32.mrb[155].mxu1  ;;  %4803 = vmatmul.mubr.bf16.gmra.mrb[212].mxu0 %v4423_v8  ;;  %4964 = vmatmul.mubr.bf16.gmra.mrb[212].mxu1 %v4425_v25 }
 0x41d   : > { %v6208_v24 = vadd.f32 %v3860_v61, %v8572_v55  ;;  %v6272_v31 = vadd.f32 %v4246_v39, %v8575_v4 }
 0x41e   : > { %v4363_v29 = vpack.c.bf16 %v6207_v57, %v6205_v53  ;;  %v4365_v21 = vpack.c.bf16 %v6271_v11, %v6269_v54 }
 0x41f   : > { %v4364_v38 = vpack.c.bf16 %v6208_v24, %v6206_v41  ;;  %v4366_v3 = vpack.c.bf16 %v6272_v31, %v6270_v0 }
 0x420   : > { %v4427_v40 = vmax.bf16 %v8954_v46, %v4363_v29  ;;  %v4429_v35 = vmax.bf16 %v8954_v46, %v4365_v21 }
 0x421   : > { %v3864_v33 = vpop.f32.mrb[156].mxu0  ;;  %v4250_v28 = vpop.f32.mrb[156].mxu1  ;;  %v4428_v20 = vmax.bf16 %v8954_v46, %v4364_v38  ;;  %v4430_v14 = vmax.bf16 %v8954_v46, %v4366_v3 }
 0x422   : > { %v3866_v16 = vpop.f32.mrb[157].mxu0  ;;  %v4252_v36 = vpop.f32.mrb[157].mxu1  ;;  %v6209_v23 = vadd.f32 %v3864_v33, %v8566_v6  ;;  %v6273_v15 = vadd.f32 %v4250_v28, %v8569_v52 }
 0x423   : > { %v3868_v17 = vpop.f32.mrb[158].mxu0  ;;  %v4254_v59 = vpop.f32.mrb[158].mxu1  ;;  %4810 = vmatprep.mubr.bf16.mxu0 %v4428_v20  ;;  %4971 = vmatprep.mubr.bf16.mxu1 %v4430_v14  ;;  %v6210_v50 = vadd.f32 %v3866_v16, %v8572_v55  ;;  %v6274_v32 = vadd.f32 %v4252_v36, %v8575_v4 }
 0x424   : > { %v6211_v45 = vadd.f32 %v3868_v17, %v8566_v6  ;;  %v6275_v44 = vadd.f32 %v4254_v59, %v8569_v52  ;;  %v3870_v56 = vpop.f32.mrb[159].mxu0  ;;  %v4256_v62 = vpop.f32.mrb[159].mxu1  ;;  %4811 = vmatmul.mubr.bf16.gmra.mrb[216].mxu0 %v4427_v40  ;;  %4972 = vmatmul.mubr.bf16.gmra.mrb[216].mxu1 %v4429_v35 }
 0x425   : > { %v6212_v5 = vadd.f32 %v3870_v56, %v8572_v55  ;;  %v6276_v49 = vadd.f32 %v4256_v62, %v8575_v4 }
 0x426   : > { %v4367_v48 = vpack.c.bf16 %v6211_v45, %v6209_v23  ;;  %v4369_v42 = vpack.c.bf16 %v6275_v44, %v6273_v15 }
 0x427   : > { %v4368_v34 = vpack.c.bf16 %v6212_v5, %v6210_v50  ;;  %v4370_v30 = vpack.c.bf16 %v6276_v49, %v6274_v32 }
 0x428   : > { %v4431_v2 = vmax.bf16 %v8954_v46, %v4367_v48  ;;  %v4433_v63 = vmax.bf16 %v8954_v46, %v4369_v42 }
 0x429   : > { %v3874_v13 = vpop.f32.mrb[160].mxu0  ;;  %v4260_v1 = vpop.f32.mrb[160].mxu1  ;;  %v4432_v22 = vmax.bf16 %v8954_v46, %v4368_v34  ;;  %v4434_v26 = vmax.bf16 %v8954_v46, %v4370_v30 }
 0x42a   : > { %v3876_v60 = vpop.f32.mrb[161].mxu0  ;;  %v4262_v10 = vpop.f32.mrb[161].mxu1  ;;  %v6213_v58 = vadd.f32 %v3874_v13, %v8566_v6  ;;  %v6277_v47 = vadd.f32 %v4260_v1, %v8569_v52 }
 0x42b   : > { %v3878_v27 = vpop.f32.mrb[162].mxu0  ;;  %v4264_v18 = vpop.f32.mrb[162].mxu1  ;;  %4818 = vmatprep.mubr.bf16.mxu0 %v4432_v22  ;;  %4979 = vmatprep.mubr.bf16.mxu1 %v4434_v26  ;;  %v6214_v51 = vadd.f32 %v3876_v60, %v8572_v55  ;;  %v6278_v8 = vadd.f32 %v4262_v10, %v8575_v4 }
 0x42c   : > { %v6215_v9 = vadd.f32 %v3878_v27, %v8566_v6  ;;  %v6279_v19 = vadd.f32 %v4264_v18, %v8569_v52  ;;  %v3880_v43 = vpop.f32.mrb[163].mxu0  ;;  %v4266_v12 = vpop.f32.mrb[163].mxu1  ;;  %4819 = vmatmul.mubr.bf16.gmra.mrb[220].mxu0 %v4431_v2  ;;  %4980 = vmatmul.mubr.bf16.gmra.mrb[220].mxu1 %v4433_v63 }
 0x42d   : > { %v6216_v25 = vadd.f32 %v3880_v43, %v8572_v55  ;;  %v6280_v53 = vadd.f32 %v4266_v12, %v8575_v4 }
 0x42e   : > { %v4371_v37 = vpack.c.bf16 %v6215_v9, %v6213_v58  ;;  %v4373_v7 = vpack.c.bf16 %v6279_v19, %v6277_v47 }
 0x42f   : > { %v4372_v54 = vpack.c.bf16 %v6216_v25, %v6214_v51  ;;  %v4374_v57 = vpack.c.bf16 %v6280_v53, %v6278_v8 }
 0x430   : > { %v4435_v31 = vmax.bf16 %v8954_v46, %v4371_v37  ;;  %v4437_v29 = vmax.bf16 %v8954_v46, %v4373_v7 }
 0x431   : > { %v3884_v11 = vpop.f32.mrb[164].mxu0  ;;  %v4270_v61 = vpop.f32.mrb[164].mxu1  ;;  %v4436_v39 = vmax.bf16 %v8954_v46, %v4372_v54  ;;  %v4438_v41 = vmax.bf16 %v8954_v46, %v4374_v57 }
 0x432   : > { %v3886_v0 = vpop.f32.mrb[165].mxu0  ;;  %v4272_v24 = vpop.f32.mrb[165].mxu1  ;;  %v6217_v21 = vadd.f32 %v3884_v11, %v8566_v6  ;;  %v6281_v33 = vadd.f32 %v4270_v61, %v8569_v52 }
 0x433   : > { %v3888_v38 = vpop.f32.mrb[166].mxu0  ;;  %v4274_v3 = vpop.f32.mrb[166].mxu1  ;;  %4826 = vmatprep.mubr.bf16.mxu0 %v4436_v39  ;;  %4987 = vmatprep.mubr.bf16.mxu1 %v4438_v41  ;;  %v6218_v36 = vadd.f32 %v3886_v0, %v8572_v55  ;;  %v6282_v40 = vadd.f32 %v4272_v24, %v8575_v4 }
 0x434   : > { %v6219_v28 = vadd.f32 %v3888_v38, %v8566_v6  ;;  %v6283_v20 = vadd.f32 %v4274_v3, %v8569_v52  ;;  %v3890_v14 = vpop.f32.mrb[167].mxu0  ;;  %v4276_v16 = vpop.f32.mrb[167].mxu1  ;;  %4827 = vmatmul.mubr.bf16.gmra.mrb[224].mxu0 %v4435_v31  ;;  %4988 = vmatmul.mubr.bf16.gmra.mrb[224].mxu1 %v4437_v29 }
 0x435   : > { %v6220_v35 = vadd.f32 %v3890_v14, %v8572_v55  ;;  %v6284_v23 = vadd.f32 %v4276_v16, %v8575_v4 }
 0x436   : > { %v4375_v17 = vpack.c.bf16 %v6219_v28, %v6217_v21  ;;  %v4377_v59 = vpack.c.bf16 %v6283_v20, %v6281_v33 }
 0x437   : > { %v4376_v15 = vpack.c.bf16 %v6220_v35, %v6218_v36  ;;  %v4378_v45 = vpack.c.bf16 %v6284_v23, %v6282_v40 }
 0x438   : > { %v4439_v49 = vmax.bf16 %v8954_v46, %v4375_v17  ;;  %v4441_v48 = vmax.bf16 %v8954_v46, %v4377_v59 }
 0x439   : > { %v3894_v44 = vpop.f32.mrb[168].mxu0  ;;  %v4280_v56 = vpop.f32.mrb[168].mxu1  ;;  %v4440_v62 = vmax.bf16 %v8954_v46, %v4376_v15  ;;  %v4442_v50 = vmax.bf16 %v8954_v46, %v4378_v45 }
 0x43a   : > { %v3896_v32 = vpop.f32.mrb[169].mxu0  ;;  %v4282_v5 = vpop.f32.mrb[169].mxu1  ;;  %v6221_v42 = vadd.f32 %v3894_v44, %v8566_v6  ;;  %v6285_v13 = vadd.f32 %v4280_v56, %v8569_v52 }
 0x43b   : > { %v3898_v34 = vpop.f32.mrb[170].mxu0  ;;  %v4284_v30 = vpop.f32.mrb[170].mxu1  ;;  %4834 = vmatprep.mubr.bf16.mxu0 %v4440_v62  ;;  %4995 = vmatprep.mubr.bf16.mxu1 %v4442_v50  ;;  %v6222_v10 = vadd.f32 %v3896_v32, %v8572_v55  ;;  %v6286_v2 = vadd.f32 %v4282_v5, %v8575_v4 }
 0x43c   : > { %v6223_v1 = vadd.f32 %v3898_v34, %v8566_v6  ;;  %v6287_v22 = vadd.f32 %v4284_v30, %v8569_v52  ;;  %v3900_v26 = vpop.f32.mrb[171].mxu0  ;;  %v4286_v60 = vpop.f32.mrb[171].mxu1  ;;  %4835 = vmatmul.mubr.bf16.gmra.mrb[228].mxu0 %v4439_v49  ;;  %4996 = vmatmul.mubr.bf16.gmra.mrb[228].mxu1 %v4441_v48 }
 0x43d   : > { %v6224_v63 = vadd.f32 %v3900_v26, %v8572_v55  ;;  %v6288_v58 = vadd.f32 %v4286_v60, %v8575_v4 }
 0x43e   : > { %v4379_v27 = vpack.c.bf16 %v6223_v1, %v6221_v42  ;;  %v4381_v18 = vpack.c.bf16 %v6287_v22, %v6285_v13 }
 0x43f   : > { %v4380_v47 = vpack.c.bf16 %v6224_v63, %v6222_v10  ;;  %v4382_v9 = vpack.c.bf16 %v6288_v58, %v6286_v2 }
 0x440   : > { %v4443_v53 = vmax.bf16 %v8954_v46, %v4379_v27  ;;  %v4445_v37 = vmax.bf16 %v8954_v46, %v4381_v18 }
 0x441   : > { %v3904_v19 = vpop.f32.mrb[172].mxu0  ;;  %v4290_v43 = vpop.f32.mrb[172].mxu1  ;;  %v4444_v12 = vmax.bf16 %v8954_v46, %v4380_v47  ;;  %v4446_v51 = vmax.bf16 %v8954_v46, %v4382_v9 }
 0x442   : > { %v3906_v8 = vpop.f32.mrb[173].mxu0  ;;  %v4292_v25 = vpop.f32.mrb[173].mxu1  ;;  %v6225_v7 = vadd.f32 %v3904_v19, %v8566_v6  ;;  %v6289_v11 = vadd.f32 %v4290_v43, %v8569_v52 }
 0x443   : > { %v3908_v54 = vpop.f32.mrb[174].mxu0  ;;  %v4294_v57 = vpop.f32.mrb[174].mxu1  ;;  %4842 = vmatprep.mubr.bf16.mxu0 %v4444_v12  ;;  %5003 = vmatprep.mubr.bf16.mxu1 %v4446_v51  ;;  %v6226_v24 = vadd.f32 %v3906_v8, %v8572_v55  ;;  %v6290_v31 = vadd.f32 %v4292_v25, %v8575_v4 }
 0x444   : > { %v6227_v61 = vadd.f32 %v3908_v54, %v8566_v6  ;;  %v6291_v39 = vadd.f32 %v4294_v57, %v8569_v52  ;;  %v3910_v41 = vpop.f32.mrb[175].mxu0  ;;  %v4296_v0 = vpop.f32.mrb[175].mxu1  ;;  %4843 = vmatmul.mubr.bf16.gmra.mrb[232].mxu0 %v4443_v53  ;;  %5004 = vmatmul.mubr.bf16.gmra.mrb[232].mxu1 %v4445_v37 }
 0x445   : > { %v6228_v29 = vadd.f32 %v3910_v41, %v8572_v55  ;;  %v6292_v21 = vadd.f32 %v4296_v0, %v8575_v4 }
 0x446   : > { %v4383_v38 = vpack.c.bf16 %v6227_v61, %v6225_v7  ;;  %v4385_v3 = vpack.c.bf16 %v6291_v39, %v6289_v11 }
 0x447   : > { %v4384_v33 = vpack.c.bf16 %v6228_v29, %v6226_v24  ;;  %v4386_v28 = vpack.c.bf16 %v6292_v21, %v6290_v31 }
 0x448   : > { %v4447_v23 = vmax.bf16 %v8954_v46, %v4383_v38  ;;  %v4449_v17 = vmax.bf16 %v8954_v46, %v4385_v3 }
 0x449   : > { %v3914_v20 = vpop.f32.mrb[176].mxu0  ;;  %v4300_v14 = vpop.f32.mrb[176].mxu1  ;;  %v4448_v16 = vmax.bf16 %v8954_v46, %v4384_v33  ;;  %v4450_v36 = vmax.bf16 %v8954_v46, %v4386_v28 }
 0x44a   : > { %v3916_v40 = vpop.f32.mrb[177].mxu0  ;;  %v4302_v35 = vpop.f32.mrb[177].mxu1  ;;  %v6229_v59 = vadd.f32 %v3914_v20, %v8566_v6  ;;  %v6293_v44 = vadd.f32 %v4300_v14, %v8569_v52 }
 0x44b   : > { %v3918_v15 = vpop.f32.mrb[178].mxu0  ;;  %v4304_v45 = vpop.f32.mrb[178].mxu1  ;;  %4850 = vmatprep.mubr.bf16.mxu0 %v4448_v16  ;;  %5011 = vmatprep.mubr.bf16.mxu1 %v4450_v36  ;;  %v6230_v5 = vadd.f32 %v3916_v40, %v8572_v55  ;;  %v6294_v49 = vadd.f32 %v4302_v35, %v8575_v4 }
 0x44c   : > { %v6231_v56 = vadd.f32 %v3918_v15, %v8566_v6  ;;  %v6295_v62 = vadd.f32 %v4304_v45, %v8569_v52  ;;  %v3920_v50 = vpop.f32.mrb[179].mxu0  ;;  %v4306_v32 = vpop.f32.mrb[179].mxu1  ;;  %4851 = vmatmul.mubr.bf16.gmra.mrb[236].mxu0 %v4447_v23  ;;  %5012 = vmatmul.mubr.bf16.gmra.mrb[236].mxu1 %v4449_v17 }
 0x44d   : > { %v6232_v48 = vadd.f32 %v3920_v50, %v8572_v55  ;;  %v6296_v42 = vadd.f32 %v4306_v32, %v8575_v4 }
 0x44e   : > { %v4387_v34 = vpack.c.bf16 %v6231_v56, %v6229_v59  ;;  %v4389_v30 = vpack.c.bf16 %v6295_v62, %v6293_v44 }
 0x44f   : > { %v4388_v13 = vpack.c.bf16 %v6232_v48, %v6230_v5  ;;  %v4390_v1 = vpack.c.bf16 %v6296_v42, %v6294_v49 }
 0x450   : > { %v4451_v58 = vmax.bf16 %v8954_v46, %v4387_v34  ;;  %v4453_v27 = vmax.bf16 %v8954_v46, %v4389_v30 }
 0x451   : > { %v3924_v22 = vpop.f32.mrb[180].mxu0  ;;  %v4310_v26 = vpop.f32.mrb[180].mxu1  ;;  %v4452_v60 = vmax.bf16 %v8954_v46, %v4388_v13  ;;  %v4454_v10 = vmax.bf16 %v8954_v46, %v4390_v1 }
 0x452   : > { %v3926_v2 = vpop.f32.mrb[181].mxu0  ;;  %v4312_v63 = vpop.f32.mrb[181].mxu1  ;;  %v6233_v18 = vadd.f32 %v3924_v22, %v8566_v6  ;;  %v6297_v19 = vadd.f32 %v4310_v26, %v8569_v52 }
 0x453   : > { %v3928_v47 = vpop.f32.mrb[182].mxu0  ;;  %v4314_v9 = vpop.f32.mrb[182].mxu1  ;;  %4858 = vmatprep.mubr.bf16.mxu0 %v4452_v60  ;;  %5019 = vmatprep.mubr.bf16.mxu1 %v4454_v10  ;;  %v6234_v25 = vadd.f32 %v3926_v2, %v8572_v55  ;;  %v6298_v53 = vadd.f32 %v4312_v63, %v8575_v4 }
 0x454   : > { %v6235_v43 = vadd.f32 %v3928_v47, %v8566_v6  ;;  %v6299_v12 = vadd.f32 %v4314_v9, %v8569_v52  ;;  %v3930_v51 = vpop.f32.mrb[183].mxu0  ;;  %v4316_v8 = vpop.f32.mrb[183].mxu1  ;;  %4859 = vmatmul.mubr.bf16.gmra.mrb[240].mxu0 %v4451_v58  ;;  %5020 = vmatmul.mubr.bf16.gmra.mrb[240].mxu1 %v4453_v27 }
 0x455   : > { %v6236_v37 = vadd.f32 %v3930_v51, %v8572_v55  ;;  %v6300_v7 = vadd.f32 %v4316_v8, %v8575_v4 }
 0x456   : > { %v4391_v54 = vpack.c.bf16 %v6235_v43, %v6233_v18  ;;  %v4393_v57 = vpack.c.bf16 %v6299_v12, %v6297_v19 }
 0x457   : > { %v4392_v11 = vpack.c.bf16 %v6236_v37, %v6234_v25  ;;  %v4394_v61 = vpack.c.bf16 %v6300_v7, %v6298_v53 }
 0x458   : > { %v4455_v21 = vmax.bf16 %v8954_v46, %v4391_v54  ;;  %v4457_v38 = vmax.bf16 %v8954_v46, %v4393_v57 }
 0x459   : > { %v3934_v39 = vpop.f32.mrb[184].mxu0  ;;  %v4320_v41 = vpop.f32.mrb[184].mxu1  ;;  %v4456_v0 = vmax.bf16 %v8954_v46, %v4392_v11  ;;  %v4458_v24 = vmax.bf16 %v8954_v46, %v4394_v61 }
 0x45a   : > { %v3936_v31 = vpop.f32.mrb[185].mxu0  ;;  %v4322_v29 = vpop.f32.mrb[185].mxu1  ;;  %v6237_v3 = vadd.f32 %v3934_v39, %v8566_v6  ;;  %v6301_v20 = vadd.f32 %v4320_v41, %v8569_v52 }
 0x45b   : > { %v3938_v33 = vpop.f32.mrb[186].mxu0  ;;  %v4324_v28 = vpop.f32.mrb[186].mxu1  ;;  %4866 = vmatprep.mubr.bf16.mxu0 %v4456_v0  ;;  %5027 = vmatprep.mubr.bf16.mxu1 %v4458_v24  ;;  %v6238_v35 = vadd.f32 %v3936_v31, %v8572_v55  ;;  %v6302_v23 = vadd.f32 %v4322_v29, %v8575_v4 }
 0x45c   : > { %v6239_v14 = vadd.f32 %v3938_v33, %v8566_v6  ;;  %v6303_v16 = vadd.f32 %v4324_v28, %v8569_v52  ;;  %v3940_v36 = vpop.f32.mrb[187].mxu0  ;;  %v4326_v40 = vpop.f32.mrb[187].mxu1  ;;  %4867 = vmatmul.mubr.bf16.gmra.mrb[244].mxu0 %v4455_v21  ;;  %5028 = vmatmul.mubr.bf16.gmra.mrb[244].mxu1 %v4457_v38 }
 0x45d   : > { %v6240_v17 = vadd.f32 %v3940_v36, %v8572_v55  ;;  %v6304_v59 = vadd.f32 %v4326_v40, %v8575_v4 }
 0x45e   : > { %v4395_v15 = vpack.c.bf16 %v6239_v14, %v6237_v3  ;;  %v4397_v45 = vpack.c.bf16 %v6303_v16, %v6301_v20 }
 0x45f   : > { %v4396_v44 = vpack.c.bf16 %v6240_v17, %v6238_v35  ;;  %v4398_v56 = vpack.c.bf16 %v6304_v59, %v6302_v23 }
 0x460   : > { %v4459_v42 = vmax.bf16 %v8954_v46, %v4395_v15  ;;  %v4461_v34 = vmax.bf16 %v8954_v46, %v4397_v45 }
 0x461   : > { %v3944_v62 = vpop.f32.mrb[188].mxu0  ;;  %v4330_v50 = vpop.f32.mrb[188].mxu1  ;;  %v4460_v32 = vmax.bf16 %v8954_v46, %v4396_v44  ;;  %v4462_v5 = vmax.bf16 %v8954_v46, %v4398_v56 }
 0x462   : > { %v3946_v49 = vpop.f32.mrb[189].mxu0  ;;  %v4332_v48 = vpop.f32.mrb[189].mxu1  ;;  %v6241_v30 = vadd.f32 %v3944_v62, %v8566_v6  ;;  %v6305_v22 = vadd.f32 %v4330_v50, %v8569_v52 }
 0x463   : > { %v3948_v13 = vpop.f32.mrb[190].mxu0  ;;  %v4334_v1 = vpop.f32.mrb[190].mxu1  ;;  %4874 = vmatprep.mubr.bf16.mxu0 %v4460_v32  ;;  %5035 = vmatprep.mubr.bf16.mxu1 %v4462_v5  ;;  %v6242_v63 = vadd.f32 %v3946_v49, %v8572_v55  ;;  %v6306_v58 = vadd.f32 %v4332_v48, %v8575_v4 }
 0x464   : > { %v6243_v26 = vadd.f32 %v3948_v13, %v8566_v6  ;;  %v6307_v60 = vadd.f32 %v4334_v1, %v8569_v52  ;;  %v3950_v10 = vpop.f32.mrb[191].mxu0  ;;  %v4336_v2 = vpop.f32.mrb[191].mxu1  ;;  %4875 = vmatmul.mubr.bf16.gmra.mrb[248].mxu0 %v4459_v42  ;;  %5036 = vmatmul.mubr.bf16.gmra.mrb[248].mxu1 %v4461_v34 }
 0x465   : > { %v6244_v27 = vadd.f32 %v3950_v10, %v8572_v55  ;;  %v6308_v18 = vadd.f32 %v4336_v2, %v8575_v4  ;;  %v8772_v4 = vld [vmem:[%s8887_s8] ss:$0 sm:$0xff] }
 0x466   : > { %v4399_v47 = vpack.c.bf16 %v6243_v26, %v6241_v30  ;;  %v4401_v9 = vpack.c.bf16 %v6307_v60, %v6305_v22 }
 0x467   : > { %v4400_v19 = vpack.c.bf16 %v6244_v27, %v6242_v63  ;;  %v4402_v43 = vpack.c.bf16 %v6308_v18, %v6306_v58 }
 0x468   : > { %v4463_v12 = vmax.bf16 %v8954_v46, %v4399_v47  ;;  %v4465_v51 = vmax.bf16 %v8954_v46, %v4401_v9 }
 0x469   : > { %v4464_v6 = vmax.bf16 %v8954_v46, %v4400_v19  ;;  %v4466_v52 = vmax.bf16 %v8954_v46, %v4402_v43 }
 0x46b   : > { %4882 = vmatprep.mubr.bf16.mxu0 %v4464_v6  ;;  %5043 = vmatprep.mubr.bf16.mxu1 %v4466_v52 }
 0x46c   : > { %4883 = vmatmul.mubr.bf16.gmra.mrb[252].mxu0 %v4463_v12  ;;  %5044 = vmatmul.mubr.bf16.gmra.mrb[252].mxu1 %v4465_v51 }
 0x4c7   : > { %v5845_v55 = vpop.f32.mrb[192].mxu0  ;;  %v5957_v8 = vpop.f32.mrb[192].mxu1 }
 0x4c8   : > { %v5846_v25 = vpop.f32.mrb[193].mxu0  ;;  %v5958_v53 = vpop.f32.mrb[193].mxu1 }
 0x4c9   : > { %v5847_v37 = vadd.f32 %v5846_v25, %v5845_v55  ;;  %v5959_v7 = vadd.f32 %v5958_v53, %v5957_v8  ;;  %v5848_v54 = vpop.f32.mrb[194].mxu0  ;;  %v5960_v57 = vpop.f32.mrb[194].mxu1 }
 0x4ca   : > { %v5849_v11 = vpop.f32.mrb[195].mxu0  ;;  %v5961_v46 = vpop.f32.mrb[195].mxu1 }
 0x4cb   : > { %v4765_v61 = vadd.f32 %v5847_v37, %v8772_v4  ;;  %v5850_v39 = vadd.f32 %v5849_v11, %v5848_v54  ;;  %v5962_v41 = vadd.f32 %v5961_v46, %v5960_v57 }
 0x4cd   : > { %v4926_v0 = vadd.f32 %v5959_v7, %v4765_v61  ;;  %v4768_v24 = vadd.f32 %v5850_v39, %v8772_v4 }
 0x4cf   : > { %v4929_v31 = vadd.f32 %v5962_v41, %v4768_v24  ;;  %v5851_v29 = vpop.f32.mrb[196].mxu0  ;;  %v5963_v21 = vpop.f32.mrb[196].mxu1 }
 0x4d0   : > { %v5852_v38 = vpop.f32.mrb[197].mxu0  ;;  %v5964_v3 = vpop.f32.mrb[197].mxu1 }
 0x4d1   : > { %v5737_v33 = vpack.c.bf16 %v4929_v31, %v4926_v0  ;;  %v5853_v28 = vadd.f32 %v5852_v38, %v5851_v29  ;;  %v5965_v20 = vadd.f32 %v5964_v3, %v5963_v21  ;;  %v5854_v14 = vpop.f32.mrb[198].mxu0  ;;  %v5966_v16 = vpop.f32.mrb[198].mxu1 }
 0x4d2   : > { %v5855_v36 = vpop.f32.mrb[199].mxu0  ;;  %v5967_v40 = vpop.f32.mrb[199].mxu1 }
 0x4d3   : > { %5738 = vst [vmem:[%s8779_s16] sm:$0xff] %v5737_v33   ;;  %v4773_v35 = vadd.f32 %v5853_v28, %v8772_v4  ;;  %v5856_v23 = vadd.f32 %v5855_v36, %v5854_v14  ;;  %v5968_v17 = vadd.f32 %v5967_v40, %v5966_v16 }
 0x4d5   : > { %v4934_v59 = vadd.f32 %v5965_v20, %v4773_v35  ;;  %v4776_v15 = vadd.f32 %v5856_v23, %v8772_v4 }
 0x4d7   : > { %v4937_v45 = vadd.f32 %v5968_v17, %v4776_v15  ;;  %v5857_v44 = vpop.f32.mrb[200].mxu0  ;;  %v5969_v56 = vpop.f32.mrb[200].mxu1 }
 0x4d8   : > { %v5858_v62 = vpop.f32.mrb[201].mxu0  ;;  %v5970_v50 = vpop.f32.mrb[201].mxu1 }
 0x4d9   : > { %v5742_v32 = vpack.c.bf16 %v4937_v45, %v4934_v59  ;;  %v5859_v5 = vadd.f32 %v5858_v62, %v5857_v44  ;;  %v5971_v49 = vadd.f32 %v5970_v50, %v5969_v56  ;;  %v5860_v48 = vpop.f32.mrb[202].mxu0  ;;  %v5972_v42 = vpop.f32.mrb[202].mxu1 }
 0x4da   : > { %v5861_v34 = vpop.f32.mrb[203].mxu0  ;;  %v5973_v30 = vpop.f32.mrb[203].mxu1 }
 0x4db   : > { %5814 = vst [vmem:[%s8779_s16 + $0x8] sm:$0xff] %v5742_v32   ;;  %v4781_v13 = vadd.f32 %v5859_v5, %v8772_v4  ;;  %v5862_v1 = vadd.f32 %v5861_v34, %v5860_v48  ;;  %v5974_v22 = vadd.f32 %v5973_v30, %v5972_v42 }
 0x4dd   : > { %v4942_v26 = vadd.f32 %v5971_v49, %v4781_v13  ;;  %v4784_v60 = vadd.f32 %v5862_v1, %v8772_v4 }
 0x4df   : > { %v4945_v10 = vadd.f32 %v5974_v22, %v4784_v60  ;;  %v5863_v2 = vpop.f32.mrb[204].mxu0  ;;  %v5975_v63 = vpop.f32.mrb[204].mxu1 }
 0x4e0   : > { %v5864_v58 = vpop.f32.mrb[205].mxu0  ;;  %v5976_v27 = vpop.f32.mrb[205].mxu1 }
 0x4e1   : > { %v5747_v18 = vpack.c.bf16 %v4945_v10, %v4942_v26  ;;  %v5865_v47 = vadd.f32 %v5864_v58, %v5863_v2  ;;  %v5977_v9 = vadd.f32 %v5976_v27, %v5975_v63  ;;  %v5866_v19 = vpop.f32.mrb[206].mxu0  ;;  %v5978_v43 = vpop.f32.mrb[206].mxu1 }
 0x4e2   : > { %v5867_v6 = vpop.f32.mrb[207].mxu0  ;;  %v5979_v52 = vpop.f32.mrb[207].mxu1 }
 0x4e3   : > { %5815 = vst [vmem:[%s8779_s16 + $0x10] sm:$0xff] %v5747_v18   ;;  %v4789_v12 = vadd.f32 %v5865_v47, %v8772_v4  ;;  %v5868_v51 = vadd.f32 %v5867_v6, %v5866_v19  ;;  %v5980_v55 = vadd.f32 %v5979_v52, %v5978_v43 }
 0x4e5   : > { %v4950_v8 = vadd.f32 %v5977_v9, %v4789_v12  ;;  %v4792_v25 = vadd.f32 %v5868_v51, %v8772_v4 }
 0x4e7   : > { %v4953_v53 = vadd.f32 %v5980_v55, %v4792_v25  ;;  %v5869_v37 = vpop.f32.mrb[208].mxu0  ;;  %v5981_v7 = vpop.f32.mrb[208].mxu1 }
 0x4e8   : > { %v5870_v54 = vpop.f32.mrb[209].mxu0  ;;  %v5982_v57 = vpop.f32.mrb[209].mxu1 }
 0x4e9   : > { %v5752_v11 = vpack.c.bf16 %v4953_v53, %v4950_v8  ;;  %v5871_v46 = vadd.f32 %v5870_v54, %v5869_v37  ;;  %v5983_v61 = vadd.f32 %v5982_v57, %v5981_v7  ;;  %v5872_v39 = vpop.f32.mrb[210].mxu0  ;;  %v5984_v41 = vpop.f32.mrb[210].mxu1 }
 0x4ea   : > { %v5873_v0 = vpop.f32.mrb[211].mxu0  ;;  %v5985_v24 = vpop.f32.mrb[211].mxu1 }
 0x4eb   : > { %5816 = vst [vmem:[%s8779_s16 + $0x18] sm:$0xff] %v5752_v11   ;;  %v4797_v31 = vadd.f32 %v5871_v46, %v8772_v4  ;;  %v5874_v29 = vadd.f32 %v5873_v0, %v5872_v39  ;;  %v5986_v21 = vadd.f32 %v5985_v24, %v5984_v41 }
 0x4ed   : > { %v4958_v38 = vadd.f32 %v5983_v61, %v4797_v31  ;;  %v4800_v3 = vadd.f32 %v5874_v29, %v8772_v4 }
 0x4ef   : > { %v4961_v33 = vadd.f32 %v5986_v21, %v4800_v3  ;;  %v5875_v28 = vpop.f32.mrb[212].mxu0  ;;  %v5987_v20 = vpop.f32.mrb[212].mxu1 }
 0x4f0   : > { %v5876_v14 = vpop.f32.mrb[213].mxu0  ;;  %v5988_v16 = vpop.f32.mrb[213].mxu1 }
 0x4f1   : > { %v5757_v36 = vpack.c.bf16 %v4961_v33, %v4958_v38  ;;  %v5877_v40 = vadd.f32 %v5876_v14, %v5875_v28  ;;  %v5989_v35 = vadd.f32 %v5988_v16, %v5987_v20  ;;  %v5878_v23 = vpop.f32.mrb[214].mxu0  ;;  %v5990_v17 = vpop.f32.mrb[214].mxu1 }
 0x4f2   : > { %v5879_v59 = vpop.f32.mrb[215].mxu0  ;;  %v5991_v15 = vpop.f32.mrb[215].mxu1 }
 0x4f3   : > { %5817 = vst [vmem:[%s8779_s16 + $0x20] sm:$0xff] %v5757_v36   ;;  %v4805_v45 = vadd.f32 %v5877_v40, %v8772_v4  ;;  %v5880_v44 = vadd.f32 %v5879_v59, %v5878_v23  ;;  %v5992_v56 = vadd.f32 %v5991_v15, %v5990_v17 }
 0x4f5   : > { %v4966_v62 = vadd.f32 %v5989_v35, %v4805_v45  ;;  %v4808_v50 = vadd.f32 %v5880_v44, %v8772_v4 }
 0x4f7   : > { %v4969_v32 = vadd.f32 %v5992_v56, %v4808_v50  ;;  %v5881_v5 = vpop.f32.mrb[216].mxu0  ;;  %v5993_v49 = vpop.f32.mrb[216].mxu1 }
 0x4f8   : > { %v5882_v48 = vpop.f32.mrb[217].mxu0  ;;  %v5994_v42 = vpop.f32.mrb[217].mxu1 }
 0x4f9   : > { %v5762_v34 = vpack.c.bf16 %v4969_v32, %v4966_v62  ;;  %v5883_v30 = vadd.f32 %v5882_v48, %v5881_v5  ;;  %v5995_v13 = vadd.f32 %v5994_v42, %v5993_v49  ;;  %v5884_v1 = vpop.f32.mrb[218].mxu0  ;;  %v5996_v22 = vpop.f32.mrb[218].mxu1 }
 0x4fa   : > { %v5885_v26 = vpop.f32.mrb[219].mxu0  ;;  %v5997_v60 = vpop.f32.mrb[219].mxu1 }
 0x4fb   : > { %5818 = vst [vmem:[%s8779_s16 + $0x28] sm:$0xff] %v5762_v34   ;;  %v4813_v10 = vadd.f32 %v5883_v30, %v8772_v4  ;;  %v5886_v2 = vadd.f32 %v5885_v26, %v5884_v1  ;;  %v5998_v63 = vadd.f32 %v5997_v60, %v5996_v22 }
 0x4fd   : > { %v4974_v58 = vadd.f32 %v5995_v13, %v4813_v10  ;;  %v4816_v27 = vadd.f32 %v5886_v2, %v8772_v4 }
 0x4ff   : > { %v4977_v18 = vadd.f32 %v5998_v63, %v4816_v27  ;;  %v5887_v47 = vpop.f32.mrb[220].mxu0  ;;  %v5999_v9 = vpop.f32.mrb[220].mxu1 }
 0x500   : > { %v5888_v19 = vpop.f32.mrb[221].mxu0  ;;  %v6000_v43 = vpop.f32.mrb[221].mxu1 }
 0x501   : > { %v5767_v6 = vpack.c.bf16 %v4977_v18, %v4974_v58  ;;  %v5889_v52 = vadd.f32 %v5888_v19, %v5887_v47  ;;  %v6001_v12 = vadd.f32 %v6000_v43, %v5999_v9  ;;  %v5890_v51 = vpop.f32.mrb[222].mxu0  ;;  %v6002_v55 = vpop.f32.mrb[222].mxu1 }
 0x502   : > { %v5891_v8 = vpop.f32.mrb[223].mxu0  ;;  %v6003_v25 = vpop.f32.mrb[223].mxu1 }
 0x503   : > { %5819 = vst [vmem:[%s8779_s16 + $0x30] sm:$0xff] %v5767_v6   ;;  %v4821_v53 = vadd.f32 %v5889_v52, %v8772_v4  ;;  %v5892_v37 = vadd.f32 %v5891_v8, %v5890_v51  ;;  %v6004_v7 = vadd.f32 %v6003_v25, %v6002_v55 }
 0x505   : > { %v4982_v54 = vadd.f32 %v6001_v12, %v4821_v53  ;;  %v4824_v57 = vadd.f32 %v5892_v37, %v8772_v4 }
 0x507   : > { %v4985_v11 = vadd.f32 %v6004_v7, %v4824_v57  ;;  %v5893_v46 = vpop.f32.mrb[224].mxu0  ;;  %v6005_v61 = vpop.f32.mrb[224].mxu1 }
 0x508   : > { %v5894_v39 = vpop.f32.mrb[225].mxu0  ;;  %v6006_v41 = vpop.f32.mrb[225].mxu1 }
 0x509   : > { %v5772_v0 = vpack.c.bf16 %v4985_v11, %v4982_v54  ;;  %v5895_v24 = vadd.f32 %v5894_v39, %v5893_v46  ;;  %v6007_v31 = vadd.f32 %v6006_v41, %v6005_v61  ;;  %v5896_v29 = vpop.f32.mrb[226].mxu0  ;;  %v6008_v21 = vpop.f32.mrb[226].mxu1 }
 0x50a   : > { %v5897_v38 = vpop.f32.mrb[227].mxu0  ;;  %v6009_v3 = vpop.f32.mrb[227].mxu1 }
 0x50b   : > { %5820 = vst [vmem:[%s8779_s16 + $0x38] sm:$0xff] %v5772_v0   ;;  %v4829_v33 = vadd.f32 %v5895_v24, %v8772_v4  ;;  %v5898_v28 = vadd.f32 %v5897_v38, %v5896_v29  ;;  %v6010_v20 = vadd.f32 %v6009_v3, %v6008_v21 }
 0x50d   : > { %v4990_v14 = vadd.f32 %v6007_v31, %v4829_v33  ;;  %v4832_v16 = vadd.f32 %v5898_v28, %v8772_v4 }
 0x50f   : > { %v4993_v36 = vadd.f32 %v6010_v20, %v4832_v16  ;;  %v5899_v40 = vpop.f32.mrb[228].mxu0  ;;  %v6011_v35 = vpop.f32.mrb[228].mxu1 }
 0x510   : > { %v5900_v23 = vpop.f32.mrb[229].mxu0  ;;  %v6012_v17 = vpop.f32.mrb[229].mxu1 }
 0x511   : > { %v5777_v59 = vpack.c.bf16 %v4993_v36, %v4990_v14  ;;  %v5901_v15 = vadd.f32 %v5900_v23, %v5899_v40  ;;  %v6013_v45 = vadd.f32 %v6012_v17, %v6011_v35  ;;  %v5902_v44 = vpop.f32.mrb[230].mxu0  ;;  %v6014_v56 = vpop.f32.mrb[230].mxu1 }
 0x512   : > { %v5903_v62 = vpop.f32.mrb[231].mxu0  ;;  %v6015_v50 = vpop.f32.mrb[231].mxu1 }
 0x513   : > { %5821 = vst [vmem:[%s8779_s16 + $0x40] sm:$0xff] %v5777_v59   ;;  %v4837_v32 = vadd.f32 %v5901_v15, %v8772_v4  ;;  %v5904_v5 = vadd.f32 %v5903_v62, %v5902_v44  ;;  %v6016_v49 = vadd.f32 %v6015_v50, %v6014_v56 }
 0x515   : > { %v4998_v48 = vadd.f32 %v6013_v45, %v4837_v32  ;;  %v4840_v42 = vadd.f32 %v5904_v5, %v8772_v4 }
 0x517   : > { %v5001_v34 = vadd.f32 %v6016_v49, %v4840_v42  ;;  %v5905_v30 = vpop.f32.mrb[232].mxu0  ;;  %v6017_v13 = vpop.f32.mrb[232].mxu1 }
 0x518   : > { %v5906_v1 = vpop.f32.mrb[233].mxu0  ;;  %v6018_v22 = vpop.f32.mrb[233].mxu1 }
 0x519   : > { %v5782_v26 = vpack.c.bf16 %v5001_v34, %v4998_v48  ;;  %v5907_v60 = vadd.f32 %v5906_v1, %v5905_v30  ;;  %v6019_v10 = vadd.f32 %v6018_v22, %v6017_v13  ;;  %v5908_v2 = vpop.f32.mrb[234].mxu0  ;;  %v6020_v63 = vpop.f32.mrb[234].mxu1 }
 0x51a   : > { %v5909_v58 = vpop.f32.mrb[235].mxu0  ;;  %v6021_v27 = vpop.f32.mrb[235].mxu1 }
 0x51b   : > { %5822 = vst [vmem:[%s8779_s16 + $0x48] sm:$0xff] %v5782_v26   ;;  %v4845_v18 = vadd.f32 %v5907_v60, %v8772_v4  ;;  %v5910_v47 = vadd.f32 %v5909_v58, %v5908_v2  ;;  %v6022_v9 = vadd.f32 %v6021_v27, %v6020_v63 }
 0x51d   : > { %v5006_v19 = vadd.f32 %v6019_v10, %v4845_v18  ;;  %v4848_v43 = vadd.f32 %v5910_v47, %v8772_v4 }
 0x51f   : > { %v5009_v6 = vadd.f32 %v6022_v9, %v4848_v43  ;;  %v5911_v52 = vpop.f32.mrb[236].mxu0  ;;  %v6023_v12 = vpop.f32.mrb[236].mxu1 }
 0x520   : > { %v5912_v51 = vpop.f32.mrb[237].mxu0  ;;  %v6024_v55 = vpop.f32.mrb[237].mxu1 }
 0x521   : > { %v5787_v8 = vpack.c.bf16 %v5009_v6, %v5006_v19  ;;  %v5913_v25 = vadd.f32 %v5912_v51, %v5911_v52  ;;  %v6025_v53 = vadd.f32 %v6024_v55, %v6023_v12  ;;  %v5914_v37 = vpop.f32.mrb[238].mxu0  ;;  %v6026_v7 = vpop.f32.mrb[238].mxu1 }
 0x522   : > { %v5915_v54 = vpop.f32.mrb[239].mxu0  ;;  %v6027_v57 = vpop.f32.mrb[239].mxu1 }
 0x523   : > { %5823 = vst [vmem:[%s8779_s16 + $0x50] sm:$0xff] %v5787_v8   ;;  %v4853_v11 = vadd.f32 %v5913_v25, %v8772_v4  ;;  %v5916_v46 = vadd.f32 %v5915_v54, %v5914_v37  ;;  %v6028_v61 = vadd.f32 %v6027_v57, %v6026_v7 }
 0x525   : > { %v5014_v39 = vadd.f32 %v6025_v53, %v4853_v11  ;;  %v4856_v41 = vadd.f32 %v5916_v46, %v8772_v4 }
 0x527   : > { %v5017_v0 = vadd.f32 %v6028_v61, %v4856_v41  ;;  %v5917_v24 = vpop.f32.mrb[240].mxu0  ;;  %v6029_v31 = vpop.f32.mrb[240].mxu1 }
 0x528   : > { %v5918_v29 = vpop.f32.mrb[241].mxu0  ;;  %v6030_v21 = vpop.f32.mrb[241].mxu1 }
 0x529   : > { %v5792_v38 = vpack.c.bf16 %v5017_v0, %v5014_v39  ;;  %v5919_v3 = vadd.f32 %v5918_v29, %v5917_v24  ;;  %v6031_v33 = vadd.f32 %v6030_v21, %v6029_v31  ;;  %v5920_v28 = vpop.f32.mrb[242].mxu0  ;;  %v6032_v20 = vpop.f32.mrb[242].mxu1 }
 0x52a   : > { %v5921_v14 = vpop.f32.mrb[243].mxu0  ;;  %v6033_v16 = vpop.f32.mrb[243].mxu1 }
 0x52b   : > { %5824 = vst [vmem:[%s8779_s16 + $0x58] sm:$0xff] %v5792_v38   ;;  %v4861_v36 = vadd.f32 %v5919_v3, %v8772_v4  ;;  %v5922_v40 = vadd.f32 %v5921_v14, %v5920_v28  ;;  %v6034_v35 = vadd.f32 %v6033_v16, %v6032_v20 }
 0x52d   : > { %v5022_v23 = vadd.f32 %v6031_v33, %v4861_v36  ;;  %v4864_v17 = vadd.f32 %v5922_v40, %v8772_v4 }
 0x52f   : > { %v5025_v59 = vadd.f32 %v6034_v35, %v4864_v17  ;;  %v5923_v15 = vpop.f32.mrb[244].mxu0  ;;  %v6035_v45 = vpop.f32.mrb[244].mxu1 }
 0x530   : > { %v5924_v44 = vpop.f32.mrb[245].mxu0  ;;  %v6036_v56 = vpop.f32.mrb[245].mxu1 }
 0x531   : > { %v5797_v62 = vpack.c.bf16 %v5025_v59, %v5022_v23  ;;  %v5925_v50 = vadd.f32 %v5924_v44, %v5923_v15  ;;  %v6037_v32 = vadd.f32 %v6036_v56, %v6035_v45  ;;  %v5926_v5 = vpop.f32.mrb[246].mxu0  ;;  %v6038_v49 = vpop.f32.mrb[246].mxu1 }
 0x532   : > { %v5927_v48 = vpop.f32.mrb[247].mxu0  ;;  %v6039_v42 = vpop.f32.mrb[247].mxu1 }
 0x533   : > { %5825 = vst [vmem:[%s8779_s16 + $0x60] sm:$0xff] %v5797_v62   ;;  %v4869_v34 = vadd.f32 %v5925_v50, %v8772_v4  ;;  %v5928_v30 = vadd.f32 %v5927_v48, %v5926_v5  ;;  %v6040_v13 = vadd.f32 %v6039_v42, %v6038_v49 }
 0x535   : > { %v5030_v1 = vadd.f32 %v6037_v32, %v4869_v34  ;;  %v4872_v22 = vadd.f32 %v5928_v30, %v8772_v4 }
 0x537   : > { %v5033_v26 = vadd.f32 %v6040_v13, %v4872_v22  ;;  %v5929_v60 = vpop.f32.mrb[248].mxu0  ;;  %v6041_v10 = vpop.f32.mrb[248].mxu1 }
 0x538   : > { %v5930_v2 = vpop.f32.mrb[249].mxu0  ;;  %v6042_v63 = vpop.f32.mrb[249].mxu1 }
 0x539   : > { %v5802_v58 = vpack.c.bf16 %v5033_v26, %v5030_v1  ;;  %v5931_v27 = vadd.f32 %v5930_v2, %v5929_v60  ;;  %v6043_v18 = vadd.f32 %v6042_v63, %v6041_v10  ;;  %v5932_v47 = vpop.f32.mrb[250].mxu0  ;;  %v6044_v9 = vpop.f32.mrb[250].mxu1 }
 0x53a   : > { %v5933_v19 = vpop.f32.mrb[251].mxu0  ;;  %v6045_v43 = vpop.f32.mrb[251].mxu1 }
 0x53b   : > { %5826 = vst [vmem:[%s8779_s16 + $0x68] sm:$0xff] %v5802_v58   ;;  %v4877_v6 = vadd.f32 %v5931_v27, %v8772_v4  ;;  %v5934_v52 = vadd.f32 %v5933_v19, %v5932_v47  ;;  %v6046_v12 = vadd.f32 %v6045_v43, %v6044_v9 }
 0x53d   : > { %v5038_v51 = vadd.f32 %v6043_v18, %v4877_v6  ;;  %v4880_v55 = vadd.f32 %v5934_v52, %v8772_v4 }
 0x53f   : > { %v5041_v8 = vadd.f32 %v6046_v12, %v4880_v55  ;;  %v5935_v25 = vpop.f32.mrb[252].mxu0  ;;  %v6047_v53 = vpop.f32.mrb[252].mxu1 }
 0x540   : > { %v5936_v37 = vpop.f32.mrb[253].mxu0  ;;  %v6048_v7 = vpop.f32.mrb[253].mxu1 }
 0x541   : > { %v5807_v54 = vpack.c.bf16 %v5041_v8, %v5038_v51  ;;  %v5937_v57 = vadd.f32 %v5936_v37, %v5935_v25  ;;  %v6049_v11 = vadd.f32 %v6048_v7, %v6047_v53  ;;  %v5938_v46 = vpop.f32.mrb[254].mxu0  ;;  %v6050_v61 = vpop.f32.mrb[254].mxu1 }
 0x542   : > { %v5939_v39 = vpop.f32.mrb[255].mxu0  ;;  %v6051_v41 = vpop.f32.mrb[255].mxu1 }
 0x543   : > { %5827 = vst [vmem:[%s8779_s16 + $0x70] sm:$0xff] %v5807_v54   ;;  %v4885_v0 = vadd.f32 %v5937_v57, %v8772_v4  ;;  %v5940_v24 = vadd.f32 %v5939_v39, %v5938_v46  ;;  %v6052_v31 = vadd.f32 %v6051_v41, %v6050_v61 }
 0x545   : > { %v5046_v29 = vadd.f32 %v6049_v11, %v4885_v0  ;;  %v4888_v21 = vadd.f32 %v5940_v24, %v8772_v4 }
 0x547   : > { %v5049_v38 = vadd.f32 %v6052_v31, %v4888_v21 }
 0x549   : > { %v5812_v3 = vpack.c.bf16 %v5049_v38, %v5046_v29 }
 0x54b   : > { %5828 = vst [vmem:[%s8779_s16 + $0x78] sm:$0xff] %v5812_v3  }
 0x54c   : > { %7135 = shalt.err (!%p7132_p11)
}
 0x54d   : > { %s7136_s26 = scalar_lea.hbm %s8831_s11, 2048  ;;  %s7140_s29 = scalar_lea.hbm %s8888_s9, 4096 }
 0x54e   : > { %p7137_p13 = scmp.ne.s32.totalorder %s8831_s11, %s7136_s26  ;;  %p7141_p6 = scmp.lt.u32.totalorder %s8831_s11, %s8888_s9 }
 0x54f   : > { %p7142_p9 = scmp.lt.u32.totalorder %s7140_s29, %s7136_s26  ;;  %p7144_p10 = scmp.lt.u32.totalorder %s7136_s26, %s8831_s11 }
 0x550   : > { %p7138_p5 = pnand %p7137_p13, %p9077_p1 }
 0x551   : > { %p7143_p12 = por %p7142_p9, %p7141_p6 }
 0x552   : > { %p7139_p0 = pneg %p7138_p5 }
 0x553   : > { %p7145_p2 = por %p7144_p10, %p7143_p12 }
 0x555   : > { %p7146_p3 = pnand %p7145_p2, %p7139_p0 }
 0x557   : > { %7149 = shalt.err (!%p7146_p3)
}
 0x558   : > { %s7200_s17 = smov 64   ;;  %s7201_s25 = smov 4  }
 0x559   : > { %6573 = dma.vmem_to_hbm [thread:$0]  (%p9077_p1), %s8833_s22, 2048, %s8831_s11, %s8838_s15, %s7200_s17, %s7200_s17, %s7201_s25  }
 0x55a PF: > { %p6590_p4 = scmp.ge.s32.totalorder %s7192_s12, 2  ;;  %s5241_s23 = sand.u32 1, %s7180_s30  }
 0x55b   : > { %p9078_p7 = scmp.ne.s32.totalorder %s8939_s20, 0  ;;  %s5242_s18 = scalar_lea.sflag [#allocation4], %s5241_s23 }
 0x55d   : > { %p6583_p8 = pnand %p6590_p4, %p9078_p7 }
 0x55f   : > { %7175 = dma.done.wait (!%p6583_p8), %s5242_s18, 2048  }
 0x560   : > { %7177 = vsyncadd (!%p6583_p8), %s5242_s18, 4294965248  ;;  %s9079_s12 = sld [smem:[#allocation12_spill]]  ;;  %s9080_s13 = sld [smem:[#allocation11_spill]] }
 0x561   : > { %s9081_s11 = sld [smem:[#allocation13_spill]]  ;;  %s9082_s30 = smov %s7184_s10 }
 0x566   : > { %p21_p11 = scmp.ge.s32.totalorder %s9079_s12, 4   ;;  %s9083_s10 = smov %s9080_s13 }
 0x568   :  { %23 = sbr.rel (!%p21_p11) target bundleno = 5 (0x5), region = 100 }
 0x56f   :  { %5247 = vsyncpa [#allocation3], 1 }
 0x570   :  { %5249 = vsyncpa [#allocation3 + $0x1], 1 }
 0x571   :  { %5250 = vsyncpa [#allocation6], 1 }
 0x572   :  { %5251 = vsyncpa [#allocation4], 1 }
 0x573   :  { %5253 = vsyncpa [#allocation4 + $0x1], 1 }

</bundles_post_ra>
